<compile_context>
chip_gen: v5e
topology: v5e:2x2
jax: 0.10.0
libtpu: 0.0.40
codegen_flags: <defaults>
</compile_context>

<pallas_src>
import jax
import jax.numpy as jnp
import numpy as np
from jax.experimental import pallas as pl
from jax.experimental.pallas import tpu as pltpu

# ----- model dimensions (scaled-down but structurally identical) -----
B = 2        # logical batch
BP = 8       # kernel-side batch, padded to the f32 sublane count (padding is free)
T = 8        # question length (max)
VOCAB = 50   # embedding_tokens
E = 64       # embedding_features   (300 in the original)
H = 128      # question / lstm features (1024 in the original)
V = 128      # vision_features      (config.output_features)
M = 128      # attention mid_features (512 in the original)
G = 2        # glimpses
C1 = 128     # classifier mid_features (1024 in the original)
A = 16       # max_answers          (config.max_answers)
LANE = 128   # lane width; tiny output dims are padded up to this

# ----- packed weight-slab column offsets (all contracted-dim-128 weights in one slab) -----
WV_OFF = 0                       # v_conv                    (V, M)
WQW1_OFF = WV_OFF + M            # fused q_lin || lin1(q)    (H, M + C1)
W2_OFF = WQW1_OFF + M + C1       # lin2 padded               (C1, LANE)  first A lanes valid
WX_OFF = W2_OFF + LANE           # x_conv padded             (M, LANE)   first G lanes valid
WHH_OFF = WX_OFF + LANE          # lstm weight_hh            (H, 4H)
WSLAB_N = WHH_OFF + 4 * H        # = 1152

# ----- packed bias-slab column offsets -----
BL_OFF = 0                       # lstm bias                 (1, 4H)
BQB1_OFF = BL_OFF + 4 * H        # fused [bq || b1']         (1, M + C1)  (dummy folded into b1')
BXP_OFF = BQB1_OFF + M + C1      # x_conv bias padded        (1, LANE)
B2P_OFF = BXP_OFF + LANE         # lin2 bias padded          (1, LANE)
BSLAB_N = B2P_OFF + LANE         # = 1024


# =====================================================================
# Single fused kernel
# =====================================================================
def fused_net_kernel(emb_ref, mask_ref, v_ref, wih_ref, wslab_ref, bslab_ref,
                     out_ref):
    # ---------------- TextProcessor: masked LSTM, final cell state ---------
    # Hoisted input projection: one (T*BP, E) @ (E, 4H) matmul + bias
    # (gate order i, f, g, o as in PyTorch).
    gates_in = (jnp.dot(emb_ref[...], wih_ref[...],
                        preferred_element_type=jnp.float32)
                + bslab_ref[:, BL_OFF:BL_OFF + 4 * H])          # (T*BP, 4H)
    # Sublane-tile-preserving split into per-step blocks (BP == 8 sublanes).
    gates_in = gates_in.reshape(T, BP, 4 * H)                   # (T, BP, 4H)
    mask = mask_ref[...]                                        # (T, BP, H)
    whh = wslab_ref[:, WHH_OFF:WHH_OFF + 4 * H]                 # (H, 4H)

    h = jnp.zeros((BP, H), jnp.float32)
    c = jnp.zeros((BP, H), jnp.float32)
    # Static trip count -> fully unrolled; only h @ W_hh is serial.
    for t in range(T):
        gates = gates_in[t] + jnp.dot(h, whh,
                                      preferred_element_type=jnp.float32)
        i = jax.nn.sigmoid(gates[:, 0 * H:1 * H])
        f = jax.nn.sigmoid(gates[:, 1 * H:2 * H])
        g = jnp.tanh(gates[:, 2 * H:3 * H])
        o = jax.nn.sigmoid(gates[:, 3 * H:4 * H])
        c_new = f * c + i * g
        h_new = o * jnp.tanh(c_new)
        # masked update == pack_padded_sequence semantics (state frozen past q_len)
        m = mask[t]                                             # (BP, H)
        c = m * c_new + (1.0 - m) * c
        h = m * h_new + (1.0 - m) * h
    qf = c                                                      # final cell state

    # ---------------- v = v / (||v||_2(dim=1) + 1e-8) ----------------------
    v = v_ref[...]                                              # (BP, V)
    norm = jnp.sqrt(jnp.sum(v * v, axis=1, keepdims=True))
    vn = v / (norm + 1e-8)

    # ---------------- fused qf projection: [q_lin || classifier lin1(q)] ---
    qproj = (jnp.dot(qf, wslab_ref[:, WQW1_OFF:WQW1_OFF + M + C1],
                     preferred_element_type=jnp.float32)
             + bslab_ref[:, BQB1_OFF:BQB1_OFF + M + C1])        # (BP, M+C1)
    qa = qproj[:, 0:M]                                          # attention q path
    h1 = jnp.maximum(qproj[:, M:M + C1], 0.0)                   # classifier hidden (ReLU)

    # ---------------- Attention on the 1x1 spatial map ---------------------
    va = jnp.dot(vn, wslab_ref[:, WV_OFF:WV_OFF + M],
                 preferred_element_type=jnp.float32)            # v_conv (no bias)
    xa = jnp.maximum(va + qa, 0.0)                              # relu(v + tiled q)
    att_full = (jnp.dot(xa, wslab_ref[:, WX_OFF:WX_OFF + LANE],
                        preferred_element_type=jnp.float32)
                + bslab_ref[:, BXP_OFF:BXP_OFF + LANE])         # (BP, 128), lanes [0:G] valid

    # ---------------- Classifier output ------------------------------------
    ans_full = (jnp.dot(h1, wslab_ref[:, W2_OFF:W2_OFF + LANE],
                        preferred_element_type=jnp.float32)
                + bslab_ref[:, B2P_OFF:B2P_OFF + LANE])         # (BP, 128), lanes [0:A] valid

    # Lane-dense output slab: two unmasked 128-lane stores, one output DMA.
    out_ref[:, 0:LANE] = ans_full
    out_ref[:, LANE:2 * LANE] = att_full


def fused_net(emb_flat, mask_b, v_p, p):
    vmem = pl.BlockSpec(memory_space=pltpu.MemorySpace.VMEM)
    return pl.pallas_call(
        fused_net_kernel,
        out_shape=jax.ShapeDtypeStruct((BP, 2 * LANE), jnp.float32),
        in_specs=[vmem] * 6,
        out_specs=vmem,
    )(emb_flat, mask_b, v_p, p['wih_t'], p['w_slab'], p['b_slab'])


# =====================================================================
# Full forward (glue in plain JAX: embedding gather, tanh, padding, masks)
# =====================================================================
@jax.jit
def net_forward(v, q_tok, q_len, params):
    # Embedding -> tanh, pad batch to BP=8 sublanes, time-major, flatten so
    # the kernel can do one input-projection matmul.
    emb = jnp.tanh(params['emb'][q_tok])                             # [B, T, E]
    emb_p = jnp.zeros((BP, T, E), jnp.float32).at[:B].set(emb)       # [BP, T, E]
    emb_flat = jnp.transpose(emb_p, (1, 0, 2)).reshape(T * BP, E)    # [T*BP, E]

    # Length mask pre-broadcast to (T, BP, H): in-loop masking is pure VPU work.
    q_len_p = jnp.zeros((BP,), jnp.int32).at[:B].set(q_len)
    t_idx = jnp.arange(T, dtype=jnp.int32)[:, None]                  # [T, 1]
    mask = (t_idx < q_len_p[None, :]).astype(jnp.float32)            # [T, BP]
    mask_b = jnp.broadcast_to(mask[:, :, None], (T, BP, H))          # [T, BP, H]

    v_p = jnp.zeros((BP, V), jnp.float32).at[:B].set(v)              # [BP, V]

    out = fused_net(emb_flat, mask_b, v_p, params)                   # [BP, 256]
    answer = out[:B, 0:A]
    att = out[:B, LANE:LANE + G]
    return answer, att


# =====================================================================
# Deterministic parameter init (xavier_uniform weights, zero biases,
# matching the PyTorch module's init) + kernel-side weight packing
# =====================================================================
def xavier(key, fan_out, fan_in):
    bound = float(np.sqrt(6.0 / (fan_in + fan_out)))
    return jax.random.uniform(key, (fan_out, fan_in), jnp.float32, -bound, bound)


def make_params(key):
    ks = jax.random.split(key, 16)
    # embedding [VOCAB, E]
    emb = xavier(ks[0], VOCAB, E)
    # LSTM: weight_ih [4H, E], weight_hh [4H, H], xavier per gate-chunk; biases zero
    wih = jnp.concatenate([xavier(ks[1 + i], H, E) for i in range(4)], axis=0)
    whh = jnp.concatenate([xavier(ks[5 + i], H, H) for i in range(4)], axis=0)
    # Attention: v_conv [M, V] (no bias), q_lin [M, H], x_conv [G, M]
    wv = xavier(ks[9], M, V)
    wq = xavier(ks[10], M, H)
    wx = xavier(ks[11], G, M)
    # Classifier: lin1 [C1, G*V+H], lin2 [A, C1]
    w1 = xavier(ks[12], C1, G * V + H)
    w2 = xavier(ks[13], A, C1)

    wih_t, whh_t = wih.T, whh.T                  # [E, 4H], [H, 4H]
    wv_t, wq_t, wx_t = wv.T, wq.T, wx.T          # [V, M], [H, M], [M, G]
    w1_t, w2_t = w1.T, w2.T                      # [G*V+H, C1], [C1, A]

    b_lstm = jnp.zeros((1, 4 * H), jnp.float32)  # b_ih + b_hh (both zero here)
    bq = jnp.zeros((1, M), jnp.float32)
    bx = jnp.zeros((1, G), jnp.float32)
    b1 = jnp.zeros((1, C1), jnp.float32)
    b2 = jnp.zeros((1, A), jnp.float32)

    # Fold the constant dummy_attention block into the classifier bias:
    #   dummy @ w1_t[:G*V] = (1/(G*V)) * sum(w1_t[:G*V], axis=0)   (same for every row)
    b1p = b1 + (1.0 / (G * V)) * jnp.sum(w1_t[:G * V, :], axis=0, keepdims=True)
    w1q_t = w1_t[G * V:, :]                       # [H, C1]

    # Fuse the two matmuls that share qf as LHS.
    wqw1_t = jnp.concatenate([wq_t, w1q_t], axis=1)              # [H, M+C1]

    # Pad the tiny-output weights/biases to 128 lanes (zero-padded lanes -> zero output).
    w2_pad = jnp.zeros((C1, LANE), jnp.float32).at[:, :A].set(w2_t)
    wx_pad = jnp.zeros((M, LANE), jnp.float32).at[:, :G].set(wx_t)
    bx_pad = jnp.zeros((1, LANE), jnp.float32).at[:, :G].set(bx)
    b2_pad = jnp.zeros((1, LANE), jnp.float32).at[:, :A].set(b2)

    # One VMEM slab for all contracted-dim-128 weights; one slab for biases.
    w_slab = jnp.concatenate([wv_t, wqw1_t, w2_pad, wx_pad, whh_t], axis=1)
    assert w_slab.shape == (128, WSLAB_N)
    b_slab = jnp.concatenate(
        [b_lstm, jnp.concatenate([bq, b1p], axis=1), bx_pad, b2_pad], axis=1)
    assert b_slab.shape == (1, BSLAB_N)

    return {
        # kernel-side packed params
        'emb': emb, 'wih_t': wih_t, 'w_slab': w_slab, 'b_slab': b_slab,
        # unfused params kept only for the pure-JAX reference check
        'whh_t': whh_t, 'b_lstm': b_lstm,
        'wv_t': wv_t, 'wq_t': wq_t, 'bq': bq, 'wx_t': wx_t, 'bx': bx,
        'w1_t': w1_t, 'b1': b1, 'w2_t': w2_t, 'b2': b2,
    }


# Pure-JAX reference (mirrors the PyTorch module, including the full
# dummy_attention + concatenate path, so it also validates the bias folding
# and the qf matmul fusion)
def reference(v, q_tok, q_len, p):
    emb = jnp.tanh(p['emb'][q_tok])                      # [B, T, E]
    h = jnp.zeros((B, H), jnp.float32)
    c = jnp.zeros((B, H), jnp.float32)
    for t in range(T):
        x = emb[:, t, :]
        gates = x @ p['wih_t'] + h @ p['whh_t'] + p['b_lstm'][0]
        i = jax.nn.sigmoid(gates[:, :H])
        f = jax.nn.sigmoid(gates[:, H:2 * H])
        g = jnp.tanh(gates[:, 2 * H:3 * H])
        o = jax.nn.sigmoid(gates[:, 3 * H:])
        c_new = f * c + i * g
        h_new = o * jnp.tanh(c_new)
        m = (t < q_len).astype(jnp.float32)[:, None]
        c = m * c_new + (1 - m) * c
        h = m * h_new + (1 - m) * h
    qf = c
    vn = v / (jnp.linalg.norm(v, axis=1, keepdims=True) + 1e-8)
    va = vn @ p['wv_t']
    qa = qf @ p['wq_t'] + p['bq']
    xa = jnp.maximum(va + qa, 0.0)
    att = xa @ p['wx_t'] + p['bx']
    dummy = jnp.full((B, G * V), 1.0 / (G * V), jnp.float32)
    combined = jnp.concatenate([dummy, qf], axis=1)
    h1 = jnp.maximum(combined @ p['w1_t'] + p['b1'], 0.0)
    ans = h1 @ p['w2_t'] + p['b2']
    return ans, att


if __name__ == "__main__":
    key = jax.random.PRNGKey(0)
    kp, kv, kq = jax.random.split(key, 3)
    params = make_params(kp)

    v = jax.random.normal(kv, (B, V), jnp.float32)
    q_tok = jax.random.randint(kq, (B, T), 0, VOCAB, dtype=jnp.int32)
    # pack_padded_sequence requires descending lengths
    q_len = jnp.array([T, 5], dtype=jnp.int32)

    answer, att = net_forward(v, q_tok, q_len, params)
    jax.block_until_ready(answer)
    jax.block_until_ready(att)

    ans_ref, att_ref = reference(v, q_tok, q_len, params)
    np.testing.assert_allclose(np.asarray(answer), np.asarray(ans_ref),
                               rtol=1e-4, atol=1e-4)
    np.testing.assert_allclose(np.asarray(att), np.asarray(att_ref),
                               rtol=1e-4, atol=1e-4)
    print("KERNEL_OK")
</pallas_src>

<mosaic_0001>
module attributes {stable_mosaic.version = 11 : i64} {
  func.func @fused_net_kernel(%arg0: memref<64x64xf32, #tpu.memory_space<vmem>>, %arg1: memref<8x8x128xf32, #tpu.memory_space<vmem>>, %arg2: memref<8x128xf32, #tpu.memory_space<vmem>>, %arg3: memref<64x512xf32, #tpu.memory_space<vmem>>, %arg4: memref<128x1152xf32, #tpu.memory_space<vmem>>, %arg5: memref<1x1024xf32, #tpu.memory_space<vmem>>, %arg6: memref<8x256xf32, #tpu.memory_space<vmem>>) attributes {dimension_semantics = [], scalar_prefetch = 0 : i64, scratch_operands = 0 : i64, tpu.core_type = #tpu.core_type<tc>} {
    %c0 = arith.constant 0 : index
    %c0_0 = arith.constant 0 : index
    %0 = vector.load %arg0[%c0, %c0_0] : memref<64x64xf32, #tpu.memory_space<vmem>>, vector<64x64xf32>
    %c0_1 = arith.constant 0 : index
    %c0_2 = arith.constant 0 : index
    %1 = vector.load %arg3[%c0_1, %c0_2] : memref<64x512xf32, #tpu.memory_space<vmem>>, vector<64x512xf32>
    %cst = arith.constant dense<0.000000e+00> : vector<64x512xf32>
    %2 = tpu.matmul %0, %1, %cst {dimension_numbers = #tpu.dot_dimension_numbers<[1], [0], [0], [1], [0, 0, 1, 1], [], []>} : vector<64x64xf32>, vector<64x512xf32>, vector<64x512xf32> -> vector<64x512xf32>
    %c0_3 = arith.constant 0 : index
    %c0_4 = arith.constant 0 : index
    %3 = vector.load %arg5[%c0_3, %c0_4] : memref<1x1024xf32, #tpu.memory_space<vmem>>, vector<1x512xf32>
    %4 = vector.broadcast %3 : vector<1x512xf32> to vector<64x512xf32>
    %5 = arith.addf %2, %4 : vector<64x512xf32>
    %6 = vector.shape_cast %5 : vector<64x512xf32> to vector<8x8x512xf32>
    %c0_5 = arith.constant 0 : index
    %c0_6 = arith.constant 0 : index
    %c0_7 = arith.constant 0 : index
    %7 = vector.load %arg1[%c0_5, %c0_6, %c0_7] : memref<8x8x128xf32, #tpu.memory_space<vmem>>, vector<8x8x128xf32>
    %c0_8 = arith.constant 0 : index
    %c640 = arith.constant 640 : index
    %8 = vector.load %arg4[%c0_8, %c640] : memref<128x1152xf32, #tpu.memory_space<vmem>>, vector<128x512xf32>
    %cst_9 = arith.constant 0.000000e+00 : f32
    %9 = vector.broadcast %cst_9 : f32 to vector<8x128xf32>
    %cst_10 = arith.constant 0.000000e+00 : f32
    %10 = vector.broadcast %cst_10 : f32 to vector<8x128xf32>
    %11 = vector.extract_strided_slice %6 {offsets = [0, 0, 0], sizes = [1, 8, 512], strides = [1, 1, 1]} : vector<8x8x512xf32> to vector<1x8x512xf32>
    %12 = vector.shape_cast %11 : vector<1x8x512xf32> to vector<8x512xf32>
    %cst_11 = arith.constant dense<0.000000e+00> : vector<8x512xf32>
    %13 = tpu.matmul %9, %8, %cst_11 {dimension_numbers = #tpu.dot_dimension_numbers<[1], [0], [0], [1], [0, 0, 1, 1], [], []>} : vector<8x128xf32>, vector<128x512xf32>, vector<8x512xf32> -> vector<8x512xf32>
    %14 = arith.addf %12, %13 : vector<8x512xf32>
    %15 = vector.extract_strided_slice %14 {offsets = [0, 0], sizes = [8, 128], strides = [1, 1]} : vector<8x512xf32> to vector<8x128xf32>
    %16 = arith.negf %15 : vector<8x128xf32>
    %17 = math.exp %16 : vector<8x128xf32>
    %cst_12 = arith.constant 1.000000e+00 : f32
    %18 = vector.broadcast %cst_12 : f32 to vector<8x128xf32>
    %19 = arith.addf %18, %17 : vector<8x128xf32>
    %20 = arith.divf %18, %19 : vector<8x128xf32>
    %21 = vector.extract_strided_slice %14 {offsets = [0, 128], sizes = [8, 128], strides = [1, 1]} : vector<8x512xf32> to vector<8x128xf32>
    %22 = arith.negf %21 : vector<8x128xf32>
    %23 = math.exp %22 : vector<8x128xf32>
    %cst_13 = arith.constant 1.000000e+00 : f32
    %24 = vector.broadcast %cst_13 : f32 to vector<8x128xf32>
    %25 = arith.addf %24, %23 : vector<8x128xf32>
    %26 = arith.divf %24, %25 : vector<8x128xf32>
    %27 = vector.extract_strided_slice %14 {offsets = [0, 256], sizes = [8, 128], strides = [1, 1]} : vector<8x512xf32> to vector<8x128xf32>
    %28 = math.tanh %27 : vector<8x128xf32>
    %29 = vector.extract_strided_slice %14 {offsets = [0, 384], sizes = [8, 128], strides = [1, 1]} : vector<8x512xf32> to vector<8x128xf32>
    %30 = arith.negf %29 : vector<8x128xf32>
    %31 = math.exp %30 : vector<8x128xf32>
    %cst_14 = arith.constant 1.000000e+00 : f32
    %32 = vector.broadcast %cst_14 : f32 to vector<8x128xf32>
    %33 = arith.addf %32, %31 : vector<8x128xf32>
    %34 = arith.divf %32, %33 : vector<8x128xf32>
    %35 = arith.mulf %26, %10 : vector<8x128xf32>
    %36 = arith.mulf %20, %28 : vector<8x128xf32>
    %37 = arith.addf %35, %36 : vector<8x128xf32>
    %38 = math.tanh %37 : vector<8x128xf32>
    %39 = arith.mulf %34, %38 : vector<8x128xf32>
    %40 = vector.extract_strided_slice %7 {offsets = [0, 0, 0], sizes = [1, 8, 128], strides = [1, 1, 1]} : vector<8x8x128xf32> to vector<1x8x128xf32>
    %41 = vector.shape_cast %40 : vector<1x8x128xf32> to vector<8x128xf32>
    %42 = arith.mulf %41, %37 : vector<8x128xf32>
    %cst_15 = arith.constant 1.000000e+00 : f32
    %43 = vector.broadcast %cst_15 : f32 to vector<8x128xf32>
    %44 = arith.subf %43, %41 : vector<8x128xf32>
    %45 = arith.mulf %44, %10 : vector<8x128xf32>
    %46 = arith.addf %42, %45 : vector<8x128xf32>
    %47 = arith.mulf %41, %39 : vector<8x128xf32>
    %cst_16 = arith.constant 1.000000e+00 : f32
    %48 = vector.broadcast %cst_16 : f32 to vector<8x128xf32>
    %49 = arith.subf %48, %41 : vector<8x128xf32>
    %50 = arith.mulf %49, %9 : vector<8x128xf32>
    %51 = arith.addf %47, %50 : vector<8x128xf32>
    %52 = vector.extract_strided_slice %6 {offsets = [1, 0, 0], sizes = [1, 8, 512], strides = [1, 1, 1]} : vector<8x8x512xf32> to vector<1x8x512xf32>
    %53 = vector.shape_cast %52 : vector<1x8x512xf32> to vector<8x512xf32>
    %cst_17 = arith.constant dense<0.000000e+00> : vector<8x512xf32>
    %54 = tpu.matmul %51, %8, %cst_17 {dimension_numbers = #tpu.dot_dimension_numbers<[1], [0], [0], [1], [0, 0, 1, 1], [], []>} : vector<8x128xf32>, vector<128x512xf32>, vector<8x512xf32> -> vector<8x512xf32>
    %55 = arith.addf %53, %54 : vector<8x512xf32>
    %56 = vector.extract_strided_slice %55 {offsets = [0, 0], sizes = [8, 128], strides = [1, 1]} : vector<8x512xf32> to vector<8x128xf32>
    %57 = arith.negf %56 : vector<8x128xf32>
    %58 = math.exp %57 : vector<8x128xf32>
    %cst_18 = arith.constant 1.000000e+00 : f32
    %59 = vector.broadcast %cst_18 : f32 to vector<8x128xf32>
    %60 = arith.addf %59, %58 : vector<8x128xf32>
    %61 = arith.divf %59, %60 : vector<8x128xf32>
    %62 = vector.extract_strided_slice %55 {offsets = [0, 128], sizes = [8, 128], strides = [1, 1]} : vector<8x512xf32> to vector<8x128xf32>
    %63 = arith.negf %62 : vector<8x128xf32>
    %64 = math.exp %63 : vector<8x128xf32>
    %cst_19 = arith.constant 1.000000e+00 : f32
    %65 = vector.broadcast %cst_19 : f32 to vector<8x128xf32>
    %66 = arith.addf %65, %64 : vector<8x128xf32>
    %67 = arith.divf %65, %66 : vector<8x128xf32>
    %68 = vector.extract_strided_slice %55 {offsets = [0, 256], sizes = [8, 128], strides = [1, 1]} : vector<8x512xf32> to vector<8x128xf32>
    %69 = math.tanh %68 : vector<8x128xf32>
    %70 = vector.extract_strided_slice %55 {offsets = [0, 384], sizes = [8, 128], strides = [1, 1]} : vector<8x512xf32> to vector<8x128xf32>
    %71 = arith.negf %70 : vector<8x128xf32>
    %72 = math.exp %71 : vector<8x128xf32>
    %cst_20 = arith.constant 1.000000e+00 : f32
    %73 = vector.broadcast %cst_20 : f32 to vector<8x128xf32>
    %74 = arith.addf %73, %72 : vector<8x128xf32>
    %75 = arith.divf %73, %74 : vector<8x128xf32>
    %76 = arith.mulf %67, %46 : vector<8x128xf32>
    %77 = arith.mulf %61, %69 : vector<8x128xf32>
    %78 = arith.addf %76, %77 : vector<8x128xf32>
    %79 = math.tanh %78 : vector<8x128xf32>
    %80 = arith.mulf %75, %79 : vector<8x128xf32>
    %81 = vector.extract_strided_slice %7 {offsets = [1, 0, 0], sizes = [1, 8, 128], strides = [1, 1, 1]} : vector<8x8x128xf32> to vector<1x8x128xf32>
    %82 = vector.shape_cast %81 : vector<1x8x128xf32> to vector<8x128xf32>
    %83 = arith.mulf %82, %78 : vector<8x128xf32>
    %cst_21 = arith.constant 1.000000e+00 : f32
    %84 = vector.broadcast %cst_21 : f32 to vector<8x128xf32>
    %85 = arith.subf %84, %82 : vector<8x128xf32>
    %86 = arith.mulf %85, %46 : vector<8x128xf32>
    %87 = arith.addf %83, %86 : vector<8x128xf32>
    %88 = arith.mulf %82, %80 : vector<8x128xf32>
    %cst_22 = arith.constant 1.000000e+00 : f32
    %89 = vector.broadcast %cst_22 : f32 to vector<8x128xf32>
    %90 = arith.subf %89, %82 : vector<8x128xf32>
    %91 = arith.mulf %90, %51 : vector<8x128xf32>
    %92 = arith.addf %88, %91 : vector<8x128xf32>
    %93 = vector.extract_strided_slice %6 {offsets = [2, 0, 0], sizes = [1, 8, 512], strides = [1, 1, 1]} : vector<8x8x512xf32> to vector<1x8x512xf32>
    %94 = vector.shape_cast %93 : vector<1x8x512xf32> to vector<8x512xf32>
    %cst_23 = arith.constant dense<0.000000e+00> : vector<8x512xf32>
    %95 = tpu.matmul %92, %8, %cst_23 {dimension_numbers = #tpu.dot_dimension_numbers<[1], [0], [0], [1], [0, 0, 1, 1], [], []>} : vector<8x128xf32>, vector<128x512xf32>, vector<8x512xf32> -> vector<8x512xf32>
    %96 = arith.addf %94, %95 : vector<8x512xf32>
    %97 = vector.extract_strided_slice %96 {offsets = [0, 0], sizes = [8, 128], strides = [1, 1]} : vector<8x512xf32> to vector<8x128xf32>
    %98 = arith.negf %97 : vector<8x128xf32>
    %99 = math.exp %98 : vector<8x128xf32>
    %cst_24 = arith.constant 1.000000e+00 : f32
    %100 = vector.broadcast %cst_24 : f32 to vector<8x128xf32>
    %101 = arith.addf %100, %99 : vector<8x128xf32>
    %102 = arith.divf %100, %101 : vector<8x128xf32>
    %103 = vector.extract_strided_slice %96 {offsets = [0, 128], sizes = [8, 128], strides = [1, 1]} : vector<8x512xf32> to vector<8x128xf32>
    %104 = arith.negf %103 : vector<8x128xf32>
    %105 = math.exp %104 : vector<8x128xf32>
    %cst_25 = arith.constant 1.000000e+00 : f32
    %106 = vector.broadcast %cst_25 : f32 to vector<8x128xf32>
    %107 = arith.addf %106, %105 : vector<8x128xf32>
    %108 = arith.divf %106, %107 : vector<8x128xf32>
    %109 = vector.extract_strided_slice %96 {offsets = [0, 256], sizes = [8, 128], strides = [1, 1]} : vector<8x512xf32> to vector<8x128xf32>
    %110 = math.tanh %109 : vector<8x128xf32>
    %111 = vector.extract_strided_slice %96 {offsets = [0, 384], sizes = [8, 128], strides = [1, 1]} : vector<8x512xf32> to vector<8x128xf32>
    %112 = arith.negf %111 : vector<8x128xf32>
    %113 = math.exp %112 : vector<8x128xf32>
    %cst_26 = arith.constant 1.000000e+00 : f32
    %114 = vector.broadcast %cst_26 : f32 to vector<8x128xf32>
    %115 = arith.addf %114, %113 : vector<8x128xf32>
    %116 = arith.divf %114, %115 : vector<8x128xf32>
    %117 = arith.mulf %108, %87 : vector<8x128xf32>
    %118 = arith.mulf %102, %110 : vector<8x128xf32>
    %119 = arith.addf %117, %118 : vector<8x128xf32>
    %120 = math.tanh %119 : vector<8x128xf32>
    %121 = arith.mulf %116, %120 : vector<8x128xf32>
    %122 = vector.extract_strided_slice %7 {offsets = [2, 0, 0], sizes = [1, 8, 128], strides = [1, 1, 1]} : vector<8x8x128xf32> to vector<1x8x128xf32>
    %123 = vector.shape_cast %122 : vector<1x8x128xf32> to vector<8x128xf32>
    %124 = arith.mulf %123, %119 : vector<8x128xf32>
    %cst_27 = arith.constant 1.000000e+00 : f32
    %125 = vector.broadcast %cst_27 : f32 to vector<8x128xf32>
    %126 = arith.subf %125, %123 : vector<8x128xf32>
    %127 = arith.mulf %126, %87 : vector<8x128xf32>
    %128 = arith.addf %124, %127 : vector<8x128xf32>
    %129 = arith.mulf %123, %121 : vector<8x128xf32>
    %cst_28 = arith.constant 1.000000e+00 : f32
    %130 = vector.broadcast %cst_28 : f32 to vector<8x128xf32>
    %131 = arith.subf %130, %123 : vector<8x128xf32>
    %132 = arith.mulf %131, %92 : vector<8x128xf32>
    %133 = arith.addf %129, %132 : vector<8x128xf32>
    %134 = vector.extract_strided_slice %6 {offsets = [3, 0, 0], sizes = [1, 8, 512], strides = [1, 1, 1]} : vector<8x8x512xf32> to vector<1x8x512xf32>
    %135 = vector.shape_cast %134 : vector<1x8x512xf32> to vector<8x512xf32>
    %cst_29 = arith.constant dense<0.000000e+00> : vector<8x512xf32>
    %136 = tpu.matmul %133, %8, %cst_29 {dimension_numbers = #tpu.dot_dimension_numbers<[1], [0], [0], [1], [0, 0, 1, 1], [], []>} : vector<8x128xf32>, vector<128x512xf32>, vector<8x512xf32> -> vector<8x512xf32>
    %137 = arith.addf %135, %136 : vector<8x512xf32>
    %138 = vector.extract_strided_slice %137 {offsets = [0, 0], sizes = [8, 128], strides = [1, 1]} : vector<8x512xf32> to vector<8x128xf32>
    %139 = arith.negf %138 : vector<8x128xf32>
    %140 = math.exp %139 : vector<8x128xf32>
    %cst_30 = arith.constant 1.000000e+00 : f32
    %141 = vector.broadcast %cst_30 : f32 to vector<8x128xf32>
    %142 = arith.addf %141, %140 : vector<8x128xf32>
    %143 = arith.divf %141, %142 : vector<8x128xf32>
    %144 = vector.extract_strided_slice %137 {offsets = [0, 128], sizes = [8, 128], strides = [1, 1]} : vector<8x512xf32> to vector<8x128xf32>
    %145 = arith.negf %144 : vector<8x128xf32>
    %146 = math.exp %145 : vector<8x128xf32>
    %cst_31 = arith.constant 1.000000e+00 : f32
    %147 = vector.broadcast %cst_31 : f32 to vector<8x128xf32>
    %148 = arith.addf %147, %146 : vector<8x128xf32>
    %149 = arith.divf %147, %148 : vector<8x128xf32>
    %150 = vector.extract_strided_slice %137 {offsets = [0, 256], sizes = [8, 128], strides = [1, 1]} : vector<8x512xf32> to vector<8x128xf32>
    %151 = math.tanh %150 : vector<8x128xf32>
    %152 = vector.extract_strided_slice %137 {offsets = [0, 384], sizes = [8, 128], strides = [1, 1]} : vector<8x512xf32> to vector<8x128xf32>
    %153 = arith.negf %152 : vector<8x128xf32>
    %154 = math.exp %153 : vector<8x128xf32>
    %cst_32 = arith.constant 1.000000e+00 : f32
    %155 = vector.broadcast %cst_32 : f32 to vector<8x128xf32>
    %156 = arith.addf %155, %154 : vector<8x128xf32>
    %157 = arith.divf %155, %156 : vector<8x128xf32>
    %158 = arith.mulf %149, %128 : vector<8x128xf32>
    %159 = arith.mulf %143, %151 : vector<8x128xf32>
    %160 = arith.addf %158, %159 : vector<8x128xf32>
    %161 = math.tanh %160 : vector<8x128xf32>
    %162 = arith.mulf %157, %161 : vector<8x128xf32>
    %163 = vector.extract_strided_slice %7 {offsets = [3, 0, 0], sizes = [1, 8, 128], strides = [1, 1, 1]} : vector<8x8x128xf32> to vector<1x8x128xf32>
    %164 = vector.shape_cast %163 : vector<1x8x128xf32> to vector<8x128xf32>
    %165 = arith.mulf %164, %160 : vector<8x128xf32>
    %cst_33 = arith.constant 1.000000e+00 : f32
    %166 = vector.broadcast %cst_33 : f32 to vector<8x128xf32>
    %167 = arith.subf %166, %164 : vector<8x128xf32>
    %168 = arith.mulf %167, %128 : vector<8x128xf32>
    %169 = arith.addf %165, %168 : vector<8x128xf32>
    %170 = arith.mulf %164, %162 : vector<8x128xf32>
    %cst_34 = arith.constant 1.000000e+00 : f32
    %171 = vector.broadcast %cst_34 : f32 to vector<8x128xf32>
    %172 = arith.subf %171, %164 : vector<8x128xf32>
    %173 = arith.mulf %172, %133 : vector<8x128xf32>
    %174 = arith.addf %170, %173 : vector<8x128xf32>
    %175 = vector.extract_strided_slice %6 {offsets = [4, 0, 0], sizes = [1, 8, 512], strides = [1, 1, 1]} : vector<8x8x512xf32> to vector<1x8x512xf32>
    %176 = vector.shape_cast %175 : vector<1x8x512xf32> to vector<8x512xf32>
    %cst_35 = arith.constant dense<0.000000e+00> : vector<8x512xf32>
    %177 = tpu.matmul %174, %8, %cst_35 {dimension_numbers = #tpu.dot_dimension_numbers<[1], [0], [0], [1], [0, 0, 1, 1], [], []>} : vector<8x128xf32>, vector<128x512xf32>, vector<8x512xf32> -> vector<8x512xf32>
    %178 = arith.addf %176, %177 : vector<8x512xf32>
    %179 = vector.extract_strided_slice %178 {offsets = [0, 0], sizes = [8, 128], strides = [1, 1]} : vector<8x512xf32> to vector<8x128xf32>
    %180 = arith.negf %179 : vector<8x128xf32>
    %181 = math.exp %180 : vector<8x128xf32>
    %cst_36 = arith.constant 1.000000e+00 : f32
    %182 = vector.broadcast %cst_36 : f32 to vector<8x128xf32>
    %183 = arith.addf %182, %181 : vector<8x128xf32>
    %184 = arith.divf %182, %183 : vector<8x128xf32>
    %185 = vector.extract_strided_slice %178 {offsets = [0, 128], sizes = [8, 128], strides = [1, 1]} : vector<8x512xf32> to vector<8x128xf32>
    %186 = arith.negf %185 : vector<8x128xf32>
    %187 = math.exp %186 : vector<8x128xf32>
    %cst_37 = arith.constant 1.000000e+00 : f32
    %188 = vector.broadcast %cst_37 : f32 to vector<8x128xf32>
    %189 = arith.addf %188, %187 : vector<8x128xf32>
    %190 = arith.divf %188, %189 : vector<8x128xf32>
    %191 = vector.extract_strided_slice %178 {offsets = [0, 256], sizes = [8, 128], strides = [1, 1]} : vector<8x512xf32> to vector<8x128xf32>
    %192 = math.tanh %191 : vector<8x128xf32>
    %193 = vector.extract_strided_slice %178 {offsets = [0, 384], sizes = [8, 128], strides = [1, 1]} : vector<8x512xf32> to vector<8x128xf32>
    %194 = arith.negf %193 : vector<8x128xf32>
    %195 = math.exp %194 : vector<8x128xf32>
    %cst_38 = arith.constant 1.000000e+00 : f32
    %196 = vector.broadcast %cst_38 : f32 to vector<8x128xf32>
    %197 = arith.addf %196, %195 : vector<8x128xf32>
    %198 = arith.divf %196, %197 : vector<8x128xf32>
    %199 = arith.mulf %190, %169 : vector<8x128xf32>
    %200 = arith.mulf %184, %192 : vector<8x128xf32>
    %201 = arith.addf %199, %200 : vector<8x128xf32>
    %202 = math.tanh %201 : vector<8x128xf32>
    %203 = arith.mulf %198, %202 : vector<8x128xf32>
    %204 = vector.extract_strided_slice %7 {offsets = [4, 0, 0], sizes = [1, 8, 128], strides = [1, 1, 1]} : vector<8x8x128xf32> to vector<1x8x128xf32>
    %205 = vector.shape_cast %204 : vector<1x8x128xf32> to vector<8x128xf32>
    %206 = arith.mulf %205, %201 : vector<8x128xf32>
    %cst_39 = arith.constant 1.000000e+00 : f32
    %207 = vector.broadcast %cst_39 : f32 to vector<8x128xf32>
    %208 = arith.subf %207, %205 : vector<8x128xf32>
    %209 = arith.mulf %208, %169 : vector<8x128xf32>
    %210 = arith.addf %206, %209 : vector<8x128xf32>
    %211 = arith.mulf %205, %203 : vector<8x128xf32>
    %cst_40 = arith.constant 1.000000e+00 : f32
    %212 = vector.broadcast %cst_40 : f32 to vector<8x128xf32>
    %213 = arith.subf %212, %205 : vector<8x128xf32>
    %214 = arith.mulf %213, %174 : vector<8x128xf32>
    %215 = arith.addf %211, %214 : vector<8x128xf32>
    %216 = vector.extract_strided_slice %6 {offsets = [5, 0, 0], sizes = [1, 8, 512], strides = [1, 1, 1]} : vector<8x8x512xf32> to vector<1x8x512xf32>
    %217 = vector.shape_cast %216 : vector<1x8x512xf32> to vector<8x512xf32>
    %cst_41 = arith.constant dense<0.000000e+00> : vector<8x512xf32>
    %218 = tpu.matmul %215, %8, %cst_41 {dimension_numbers = #tpu.dot_dimension_numbers<[1], [0], [0], [1], [0, 0, 1, 1], [], []>} : vector<8x128xf32>, vector<128x512xf32>, vector<8x512xf32> -> vector<8x512xf32>
    %219 = arith.addf %217, %218 : vector<8x512xf32>
    %220 = vector.extract_strided_slice %219 {offsets = [0, 0], sizes = [8, 128], strides = [1, 1]} : vector<8x512xf32> to vector<8x128xf32>
    %221 = arith.negf %220 : vector<8x128xf32>
    %222 = math.exp %221 : vector<8x128xf32>
    %cst_42 = arith.constant 1.000000e+00 : f32
    %223 = vector.broadcast %cst_42 : f32 to vector<8x128xf32>
    %224 = arith.addf %223, %222 : vector<8x128xf32>
    %225 = arith.divf %223, %224 : vector<8x128xf32>
    %226 = vector.extract_strided_slice %219 {offsets = [0, 128], sizes = [8, 128], strides = [1, 1]} : vector<8x512xf32> to vector<8x128xf32>
    %227 = arith.negf %226 : vector<8x128xf32>
    %228 = math.exp %227 : vector<8x128xf32>
    %cst_43 = arith.constant 1.000000e+00 : f32
    %229 = vector.broadcast %cst_43 : f32 to vector<8x128xf32>
    %230 = arith.addf %229, %228 : vector<8x128xf32>
    %231 = arith.divf %229, %230 : vector<8x128xf32>
    %232 = vector.extract_strided_slice %219 {offsets = [0, 256], sizes = [8, 128], strides = [1, 1]} : vector<8x512xf32> to vector<8x128xf32>
    %233 = math.tanh %232 : vector<8x128xf32>
    %234 = vector.extract_strided_slice %219 {offsets = [0, 384], sizes = [8, 128], strides = [1, 1]} : vector<8x512xf32> to vector<8x128xf32>
    %235 = arith.negf %234 : vector<8x128xf32>
    %236 = math.exp %235 : vector<8x128xf32>
    %cst_44 = arith.constant 1.000000e+00 : f32
    %237 = vector.broadcast %cst_44 : f32 to vector<8x128xf32>
    %238 = arith.addf %237, %236 : vector<8x128xf32>
    %239 = arith.divf %237, %238 : vector<8x128xf32>
    %240 = arith.mulf %231, %210 : vector<8x128xf32>
    %241 = arith.mulf %225, %233 : vector<8x128xf32>
    %242 = arith.addf %240, %241 : vector<8x128xf32>
    %243 = math.tanh %242 : vector<8x128xf32>
    %244 = arith.mulf %239, %243 : vector<8x128xf32>
    %245 = vector.extract_strided_slice %7 {offsets = [5, 0, 0], sizes = [1, 8, 128], strides = [1, 1, 1]} : vector<8x8x128xf32> to vector<1x8x128xf32>
    %246 = vector.shape_cast %245 : vector<1x8x128xf32> to vector<8x128xf32>
    %247 = arith.mulf %246, %242 : vector<8x128xf32>
    %cst_45 = arith.constant 1.000000e+00 : f32
    %248 = vector.broadcast %cst_45 : f32 to vector<8x128xf32>
    %249 = arith.subf %248, %246 : vector<8x128xf32>
    %250 = arith.mulf %249, %210 : vector<8x128xf32>
    %251 = arith.addf %247, %250 : vector<8x128xf32>
    %252 = arith.mulf %246, %244 : vector<8x128xf32>
    %cst_46 = arith.constant 1.000000e+00 : f32
    %253 = vector.broadcast %cst_46 : f32 to vector<8x128xf32>
    %254 = arith.subf %253, %246 : vector<8x128xf32>
    %255 = arith.mulf %254, %215 : vector<8x128xf32>
    %256 = arith.addf %252, %255 : vector<8x128xf32>
    %257 = vector.extract_strided_slice %6 {offsets = [6, 0, 0], sizes = [1, 8, 512], strides = [1, 1, 1]} : vector<8x8x512xf32> to vector<1x8x512xf32>
    %258 = vector.shape_cast %257 : vector<1x8x512xf32> to vector<8x512xf32>
    %cst_47 = arith.constant dense<0.000000e+00> : vector<8x512xf32>
    %259 = tpu.matmul %256, %8, %cst_47 {dimension_numbers = #tpu.dot_dimension_numbers<[1], [0], [0], [1], [0, 0, 1, 1], [], []>} : vector<8x128xf32>, vector<128x512xf32>, vector<8x512xf32> -> vector<8x512xf32>
    %260 = arith.addf %258, %259 : vector<8x512xf32>
    %261 = vector.extract_strided_slice %260 {offsets = [0, 0], sizes = [8, 128], strides = [1, 1]} : vector<8x512xf32> to vector<8x128xf32>
    %262 = arith.negf %261 : vector<8x128xf32>
    %263 = math.exp %262 : vector<8x128xf32>
    %cst_48 = arith.constant 1.000000e+00 : f32
    %264 = vector.broadcast %cst_48 : f32 to vector<8x128xf32>
    %265 = arith.addf %264, %263 : vector<8x128xf32>
    %266 = arith.divf %264, %265 : vector<8x128xf32>
    %267 = vector.extract_strided_slice %260 {offsets = [0, 128], sizes = [8, 128], strides = [1, 1]} : vector<8x512xf32> to vector<8x128xf32>
    %268 = arith.negf %267 : vector<8x128xf32>
    %269 = math.exp %268 : vector<8x128xf32>
    %cst_49 = arith.constant 1.000000e+00 : f32
    %270 = vector.broadcast %cst_49 : f32 to vector<8x128xf32>
    %271 = arith.addf %270, %269 : vector<8x128xf32>
    %272 = arith.divf %270, %271 : vector<8x128xf32>
    %273 = vector.extract_strided_slice %260 {offsets = [0, 256], sizes = [8, 128], strides = [1, 1]} : vector<8x512xf32> to vector<8x128xf32>
    %274 = math.tanh %273 : vector<8x128xf32>
    %275 = vector.extract_strided_slice %260 {offsets = [0, 384], sizes = [8, 128], strides = [1, 1]} : vector<8x512xf32> to vector<8x128xf32>
    %276 = arith.negf %275 : vector<8x128xf32>
    %277 = math.exp %276 : vector<8x128xf32>
    %cst_50 = arith.constant 1.000000e+00 : f32
    %278 = vector.broadcast %cst_50 : f32 to vector<8x128xf32>
    %279 = arith.addf %278, %277 : vector<8x128xf32>
    %280 = arith.divf %278, %279 : vector<8x128xf32>
    %281 = arith.mulf %272, %251 : vector<8x128xf32>
    %282 = arith.mulf %266, %274 : vector<8x128xf32>
    %283 = arith.addf %281, %282 : vector<8x128xf32>
    %284 = math.tanh %283 : vector<8x128xf32>
    %285 = arith.mulf %280, %284 : vector<8x128xf32>
    %286 = vector.extract_strided_slice %7 {offsets = [6, 0, 0], sizes = [1, 8, 128], strides = [1, 1, 1]} : vector<8x8x128xf32> to vector<1x8x128xf32>
    %287 = vector.shape_cast %286 : vector<1x8x128xf32> to vector<8x128xf32>
    %288 = arith.mulf %287, %283 : vector<8x128xf32>
    %cst_51 = arith.constant 1.000000e+00 : f32
    %289 = vector.broadcast %cst_51 : f32 to vector<8x128xf32>
    %290 = arith.subf %289, %287 : vector<8x128xf32>
    %291 = arith.mulf %290, %251 : vector<8x128xf32>
    %292 = arith.addf %288, %291 : vector<8x128xf32>
    %293 = arith.mulf %287, %285 : vector<8x128xf32>
    %cst_52 = arith.constant 1.000000e+00 : f32
    %294 = vector.broadcast %cst_52 : f32 to vector<8x128xf32>
    %295 = arith.subf %294, %287 : vector<8x128xf32>
    %296 = arith.mulf %295, %256 : vector<8x128xf32>
    %297 = arith.addf %293, %296 : vector<8x128xf32>
    %298 = vector.extract_strided_slice %6 {offsets = [7, 0, 0], sizes = [1, 8, 512], strides = [1, 1, 1]} : vector<8x8x512xf32> to vector<1x8x512xf32>
    %299 = vector.shape_cast %298 : vector<1x8x512xf32> to vector<8x512xf32>
    %cst_53 = arith.constant dense<0.000000e+00> : vector<8x512xf32>
    %300 = tpu.matmul %297, %8, %cst_53 {dimension_numbers = #tpu.dot_dimension_numbers<[1], [0], [0], [1], [0, 0, 1, 1], [], []>} : vector<8x128xf32>, vector<128x512xf32>, vector<8x512xf32> -> vector<8x512xf32>
    %301 = arith.addf %299, %300 : vector<8x512xf32>
    %302 = vector.extract_strided_slice %301 {offsets = [0, 0], sizes = [8, 128], strides = [1, 1]} : vector<8x512xf32> to vector<8x128xf32>
    %303 = arith.negf %302 : vector<8x128xf32>
    %304 = math.exp %303 : vector<8x128xf32>
    %cst_54 = arith.constant 1.000000e+00 : f32
    %305 = vector.broadcast %cst_54 : f32 to vector<8x128xf32>
    %306 = arith.addf %305, %304 : vector<8x128xf32>
    %307 = arith.divf %305, %306 : vector<8x128xf32>
    %308 = vector.extract_strided_slice %301 {offsets = [0, 128], sizes = [8, 128], strides = [1, 1]} : vector<8x512xf32> to vector<8x128xf32>
    %309 = arith.negf %308 : vector<8x128xf32>
    %310 = math.exp %309 : vector<8x128xf32>
    %cst_55 = arith.constant 1.000000e+00 : f32
    %311 = vector.broadcast %cst_55 : f32 to vector<8x128xf32>
    %312 = arith.addf %311, %310 : vector<8x128xf32>
    %313 = arith.divf %311, %312 : vector<8x128xf32>
    %314 = vector.extract_strided_slice %301 {offsets = [0, 256], sizes = [8, 128], strides = [1, 1]} : vector<8x512xf32> to vector<8x128xf32>
    %315 = math.tanh %314 : vector<8x128xf32>
    %316 = arith.mulf %313, %292 : vector<8x128xf32>
    %317 = arith.mulf %307, %315 : vector<8x128xf32>
    %318 = arith.addf %316, %317 : vector<8x128xf32>
    %319 = vector.extract_strided_slice %7 {offsets = [7, 0, 0], sizes = [1, 8, 128], strides = [1, 1, 1]} : vector<8x8x128xf32> to vector<1x8x128xf32>
    %320 = vector.shape_cast %319 : vector<1x8x128xf32> to vector<8x128xf32>
    %321 = arith.mulf %320, %318 : vector<8x128xf32>
    %cst_56 = arith.constant 1.000000e+00 : f32
    %322 = vector.broadcast %cst_56 : f32 to vector<8x128xf32>
    %323 = arith.subf %322, %320 : vector<8x128xf32>
    %324 = arith.mulf %323, %292 : vector<8x128xf32>
    %325 = arith.addf %321, %324 : vector<8x128xf32>
    %c0_57 = arith.constant 0 : index
    %c0_58 = arith.constant 0 : index
    %326 = vector.load %arg2[%c0_57, %c0_58] : memref<8x128xf32, #tpu.memory_space<vmem>>, vector<8x128xf32>
    %327 = arith.mulf %326, %326 : vector<8x128xf32>
    %cst_59 = arith.constant dense<0.000000e+00> : vector<8xf32>
    %328 = vector.multi_reduction <add>, %327, %cst_59 [1] : vector<8x128xf32> to vector<8xf32>
    %329 = vector.shape_cast %328 : vector<8xf32> to vector<8x1xf32>
    %330 = math.sqrt %329 : vector<8x1xf32>
    %cst_60 = arith.constant 9.99999993E-9 : f32
    %331 = vector.broadcast %cst_60 : f32 to vector<8x1xf32>
    %332 = arith.addf %330, %331 : vector<8x1xf32>
    %333 = vector.broadcast %332 : vector<8x1xf32> to vector<8x128xf32>
    %334 = arith.divf %326, %333 : vector<8x128xf32>
    %c0_61 = arith.constant 0 : index
    %c128 = arith.constant 128 : index
    %335 = vector.load %arg4[%c0_61, %c128] : memref<128x1152xf32, #tpu.memory_space<vmem>>, vector<128x256xf32>
    %cst_62 = arith.constant dense<0.000000e+00> : vector<8x256xf32>
    %336 = tpu.matmul %325, %335, %cst_62 {dimension_numbers = #tpu.dot_dimension_numbers<[1], [0], [0], [1], [0, 0, 1, 1], [], []>} : vector<8x128xf32>, vector<128x256xf32>, vector<8x256xf32> -> vector<8x256xf32>
    %c0_63 = arith.constant 0 : index
    %c512 = arith.constant 512 : index
    %337 = vector.load %arg5[%c0_63, %c512] : memref<1x1024xf32, #tpu.memory_space<vmem>>, vector<1x256xf32>
    %338 = vector.broadcast %337 : vector<1x256xf32> to vector<8x256xf32>
    %339 = arith.addf %336, %338 : vector<8x256xf32>
    %340 = vector.extract_strided_slice %339 {offsets = [0, 0], sizes = [8, 128], strides = [1, 1]} : vector<8x256xf32> to vector<8x128xf32>
    %341 = vector.extract_strided_slice %339 {offsets = [0, 128], sizes = [8, 128], strides = [1, 1]} : vector<8x256xf32> to vector<8x128xf32>
    %cst_64 = arith.constant 0.000000e+00 : f32
    %342 = vector.broadcast %cst_64 : f32 to vector<8x128xf32>
    %343 = arith.maximumf %341, %342 : vector<8x128xf32>
    %c0_65 = arith.constant 0 : index
    %c0_66 = arith.constant 0 : index
    %344 = vector.load %arg4[%c0_65, %c0_66] : memref<128x1152xf32, #tpu.memory_space<vmem>>, vector<128x128xf32>
    %cst_67 = arith.constant dense<0.000000e+00> : vector<8x128xf32>
    %345 = tpu.matmul %334, %344, %cst_67 {dimension_numbers = #tpu.dot_dimension_numbers<[1], [0], [0], [1], [0, 0, 1, 1], [], []>} : vector<8x128xf32>, vector<128x128xf32>, vector<8x128xf32> -> vector<8x128xf32>
    %346 = arith.addf %345, %340 : vector<8x128xf32>
    %cst_68 = arith.constant 0.000000e+00 : f32
    %347 = vector.broadcast %cst_68 : f32 to vector<8x128xf32>
    %348 = arith.maximumf %346, %347 : vector<8x128xf32>
    %c0_69 = arith.constant 0 : index
    %c512_70 = arith.constant 512 : index
    %349 = vector.load %arg4[%c0_69, %c512_70] : memref<128x1152xf32, #tpu.memory_space<vmem>>, vector<128x128xf32>
    %cst_71 = arith.constant dense<0.000000e+00> : vector<8x128xf32>
    %350 = tpu.matmul %348, %349, %cst_71 {dimension_numbers = #tpu.dot_dimension_numbers<[1], [0], [0], [1], [0, 0, 1, 1], [], []>} : vector<8x128xf32>, vector<128x128xf32>, vector<8x128xf32> -> vector<8x128xf32>
    %c0_72 = arith.constant 0 : index
    %c768 = arith.constant 768 : index
    %351 = vector.load %arg5[%c0_72, %c768] : memref<1x1024xf32, #tpu.memory_space<vmem>>, vector<1x128xf32>
    %352 = vector.broadcast %351 : vector<1x128xf32> to vector<8x128xf32>
    %353 = arith.addf %350, %352 : vector<8x128xf32>
    %c0_73 = arith.constant 0 : index
    %c384 = arith.constant 384 : index
    %354 = vector.load %arg4[%c0_73, %c384] : memref<128x1152xf32, #tpu.memory_space<vmem>>, vector<128x128xf32>
    %cst_74 = arith.constant dense<0.000000e+00> : vector<8x128xf32>
    %355 = tpu.matmul %343, %354, %cst_74 {dimension_numbers = #tpu.dot_dimension_numbers<[1], [0], [0], [1], [0, 0, 1, 1], [], []>} : vector<8x128xf32>, vector<128x128xf32>, vector<8x128xf32> -> vector<8x128xf32>
    %c0_75 = arith.constant 0 : index
    %c896 = arith.constant 896 : index
    %356 = vector.load %arg5[%c0_75, %c896] : memref<1x1024xf32, #tpu.memory_space<vmem>>, vector<1x128xf32>
    %357 = vector.broadcast %356 : vector<1x128xf32> to vector<8x128xf32>
    %358 = arith.addf %355, %357 : vector<8x128xf32>
    %c0_76 = arith.constant 0 : index
    %c0_77 = arith.constant 0 : index
    %359 = vector.load %arg6[%c0_76, %c0_77] : memref<8x256xf32, #tpu.memory_space<vmem>>, vector<8x128xf32>
    tpu.vector_store %arg6[%c0_76, %c0_77], %358 {strides = array<i32>} : memref<8x256xf32, #tpu.memory_space<vmem>>, vector<8x128xf32>,
    %c0_78 = arith.constant 0 : index
    %c128_79 = arith.constant 128 : index
    %360 = vector.load %arg6[%c0_78, %c128_79] : memref<8x256xf32, #tpu.memory_space<vmem>>, vector<8x128xf32>
    tpu.vector_store %arg6[%c0_78, %c128_79], %353 {strides = array<i32>} : memref<8x256xf32, #tpu.memory_space<vmem>>, vector<8x128xf32>,
    return
  }
}

</mosaic_0001>

<bundles_post_ra>
// kernel: net_forward.1
= control target key start
LH: loop header
LB: loop body
LE: loop exit
PB: predicated region body
PF: predicated region fallthrough
CT: control target
= control target key end

     0   :  { %11 = vsyncpa [#allocation3], 0  ;;  %s3166_s0 = inlined_call_operand.vmem [shape: f32[64,64], index: 0, kind: input, shape index: {}]   ;;  %s3167_s1 = inlined_call_operand.vmem [shape: f32[8,8,128], index: 1, kind: input, shape index: {}]   ;;  %s3168_s2 = inlined_call_operand.vmem [shape: f32[8,128], index: 2, kind: input, shape index: {}]   ;;  %s3169_s3 = inlined_call_operand.hbm [shape: f32[64,512], index: 3, kind: input, shape index: {}]   ;;  %s3170_s4 = inlined_call_operand.hbm [shape: f32[128,1152], index: 4, kind: input, shape index: {}]   ;;  %s3171_s5 = inlined_call_operand.vmem [shape: f32[1,1024], index: 5, kind: input, shape index: {}]   ;;  %s3172_s6 = inlined_call_operand.vmem [shape: f32[8,256], index: 6, kind: output, shape index: {}]  }
   0x1   :  { %s23_s23 = sshll.u32 %s3169_s3, 4  ;;  %s24_s23 = int_to_ptr.hbm [resolvable:$true] %s23_s23 }
   0x2   :  { %12 = vsyncpa [#allocation5], 0  ;;  %s2093_s24 = smov [#allocation2]   ;;  %s36_s28 = sshll.u32 %s3170_s4, 4  ;;  %s37_s28 = int_to_ptr.hbm [resolvable:$true] %s36_s28 }
   0x3   :  { %s25_s25 = sshll.u32 %s2093_s24, 4  ;;  %s2094_s29 = smov 512   ;;  %s26_s25 = int_to_ptr.vmem [resolvable:$true] %s25_s25 }
   0x4   :  { %s2095_s30 = smov 32   ;;  %s2096_s7 = smov [#allocation4]  }
   0x5   :  { %31 = dma.hbm_to_vmem [thread:$0]  %s24_s23, 4096, %s26_s25, [#allocation3], %s2094_s29, %s2094_s29, %s2095_s30  }
   0x6   :  { %s38_s8 = sshll.u32 %s2096_s7, 4  ;;  %s2097_s9 = smov 1152   ;;  %s39_s8 = int_to_ptr.vmem [resolvable:$true] %s38_s8 }
   0x7   :  { %s2098_s10 = smov 72  }
   0x8   :  { %44 = dma.hbm_to_vmem [thread:$0]  %s37_s28, 18432, %s39_s8, [#allocation5], %s2097_s9, %s2097_s9, %s2098_s10  }
   0x9   :  { %2089 = dma.done.wait [#allocation3], 4096  }
   0xa   :  { %2090 = vsyncadd [#allocation3], 4294963200 }
   0xb   :  { %2091 = dma.done.wait [#allocation5], 18432  }
   0xc   :  { %2092 = vsyncadd [#allocation5], 4294948864  ;;  %v91_v0 = vld [vmem:[#allocation2 + $0xe0] sm:$0xff]  ;;  %v92_v1 = vld [vmem:[#allocation2 + $0xe8] sm:$0xff]  ;;  %vm105_vm0 = vcmask 523264  }
   0xd   :  { %v93_v2 = vld [vmem:[#allocation2 + $0xf0] sm:$0xff]  ;;  %138 = vmatpush.msra.mxu0 %v91_v0  ;;  %179 = vmatpush.msra.mxu1 %v92_v1  ;;  %v94_v3 = vld [vmem:[#allocation2 + $0xf8] sm:$0xff]  ;;  %v87_v4 = vld [vmem:[#allocation2 + $0xc0] sm:$0xff] }
   0xe   :  { %v88_v5 = vld [vmem:[#allocation2 + $0xc8] sm:$0xff]  ;;  %220 = vmatpush.msra.mxu2 %v93_v2  ;;  %261 = vmatpush.msra.mxu3 %v94_v3  ;;  %v89_v6 = vld [vmem:[#allocation2 + $0xd0] sm:$0xff]  ;;  %v90_v7 = vld [vmem:[#allocation2 + $0xd8] sm:$0xff] }
   0xf   :  { %v83_v8 = vld [vmem:[#allocation2 + $0xa0] sm:$0xff]  ;;  %139 = vmatpush.msra.mxu0 %v87_v4  ;;  %180 = vmatpush.msra.mxu1 %v88_v5  ;;  %v84_v9 = vld [vmem:[#allocation2 + $0xa8] sm:$0xff]  ;;  %v85_v10 = vld [vmem:[#allocation2 + $0xb0] sm:$0xff] }
  0x10   :  { %v86_v11 = vld [vmem:[#allocation2 + $0xb8] sm:$0xff]  ;;  %221 = vmatpush.msra.mxu2 %v89_v6  ;;  %262 = vmatpush.msra.mxu3 %v90_v7  ;;  %v79_v12 = vld [vmem:[#allocation2 + $0x80] sm:$0xff]  ;;  %v80_v13 = vld [vmem:[#allocation2 + $0x88] sm:$0xff] }
  0x11   :  { %140 = vmatpush.msra.mxu0 %v83_v8  ;;  %181 = vmatpush.msra.mxu1 %v84_v9  ;;  %v81_v14 = vld [vmem:[#allocation2 + $0x90] sm:$0xff]  ;;  %v82_v15 = vld [vmem:[#allocation2 + $0x98] sm:$0xff]  ;;  %v75_v16 = vld [vmem:[#allocation2 + $0x60] sm:$0xff] }
  0x12   :  { %222 = vmatpush.msra.mxu2 %v85_v10  ;;  %263 = vmatpush.msra.mxu3 %v86_v11  ;;  %v76_v17 = vld [vmem:[#allocation2 + $0x68] sm:$0xff]  ;;  %v77_v18 = vld [vmem:[#allocation2 + $0x70] sm:$0xff]  ;;  %v78_v19 = vld [vmem:[#allocation2 + $0x78] sm:$0xff] }
  0x13   :  { %141 = vmatpush.msra.mxu0 %v79_v12  ;;  %182 = vmatpush.msra.mxu1 %v80_v13  ;;  %v71_v20 = vld [vmem:[#allocation2 + $0x40] sm:$0xff]  ;;  %v72_v21 = vld [vmem:[#allocation2 + $0x48] sm:$0xff]  ;;  %v73_v22 = vld [vmem:[#allocation2 + $0x50] sm:$0xff] }
  0x14   :  { %223 = vmatpush.msra.mxu2 %v81_v14  ;;  %264 = vmatpush.msra.mxu3 %v82_v15  ;;  %v74_v23 = vld [vmem:[#allocation2 + $0x58] sm:$0xff]  ;;  %v67_v24 = vld [vmem:[#allocation2 + $0x20] sm:$0xff]  ;;  %v68_v25 = vld [vmem:[#allocation2 + $0x28] sm:$0xff] }
  0x15   :  { %142 = vmatpush.msra.mxu0 %v75_v16  ;;  %183 = vmatpush.msra.mxu1 %v76_v17  ;;  %v69_v26 = vld [vmem:[#allocation2 + $0x30] sm:$0xff]  ;;  %v70_v27 = vld [vmem:[#allocation2 + $0x38] sm:$0xff]  ;;  %v63_v28 = vld [vmem:[#allocation2] sm:$0xff] }
  0x16   :  { %224 = vmatpush.msra.mxu2 %v77_v18  ;;  %265 = vmatpush.msra.mxu3 %v78_v19  ;;  %v64_v29 = vld [vmem:[#allocation2 + $0x8] sm:$0xff]  ;;  %v65_v30 = vld [vmem:[#allocation2 + $0x10] sm:$0xff]  ;;  %v66_v31 = vld [vmem:[#allocation2 + $0x18] sm:$0xff] }
  0x17   :  { %143 = vmatpush.msra.mxu0 %v71_v20  ;;  %184 = vmatpush.msra.mxu1 %v72_v21  ;;  %v55_v32 = vld [vmem:[%s3166_s0] sm:$0xff]  ;;  %v2146_v34 = vld [vmem:[#allocation4 + $0x468] sm:$0xff]  ;;  %v2150_v35 = vld [vmem:[#allocation4 + $0x478] sm:$0xff] }
  0x18   :  { %225 = vmatpush.msra.mxu2 %v73_v22  ;;  %266 = vmatpush.msra.mxu3 %v74_v23  ;;  %v2144_v33 = vld [vmem:[#allocation4 + $0x460] sm:$0xff]  ;;  %v2152_v36 = vld [vmem:[#allocation4 + $0x470] sm:$0xff]  ;;  %v2156_v37 = vld [vmem:[#allocation4 + $0x418] sm:$0xff] }
  0x19   :  { %144 = vmatpush.msra.mxu0 %v67_v24  ;;  %185 = vmatpush.msra.mxu1 %v68_v25  ;;  %v2158_v38 = vld [vmem:[#allocation4 + $0x420] sm:$0xff]  ;;  %v2162_v39 = vld [vmem:[#allocation4 + $0x430] sm:$0xff]  ;;  %v2164_v40 = vld [vmem:[#allocation4 + $0x428] sm:$0xff] }
  0x1a   :  { %226 = vmatpush.msra.mxu2 %v69_v26  ;;  %267 = vmatpush.msra.mxu3 %v70_v27  ;;  %v2167_v41 = vld [vmem:[#allocation4 + $0x3d0] sm:$0xff]  ;;  %v2169_v42 = vld [vmem:[#allocation4 + $0x3d8] sm:$0xff]  ;;  %v2174_v43 = vld [vmem:[#allocation4 + $0x3e8] sm:$0xff] }
  0x1b   :  { %145 = vmatpush.msra.mxu0 %v63_v28  ;;  %186 = vmatpush.msra.mxu1 %v64_v29  ;;  %v2176_v44 = vld [vmem:[#allocation4 + $0x3e0] sm:$0xff]  ;;  %v56_v45 = vld [vmem:[%s3166_s0 + $0x8] sm:$0xff]  ;;  %v2187_v47 = vld [vmem:[#allocation4 + $0x390] sm:$0xff] }
  0x1c   :  { %227 = vmatpush.msra.mxu2 %v65_v30  ;;  %268 = vmatpush.msra.mxu3 %v66_v31  ;;  %v2185_v46 = vld [vmem:[#allocation4 + $0x388] sm:$0xff]  ;;  %v2193_v48 = vld [vmem:[#allocation4 + $0x3a0] sm:$0xff]  ;;  %v2195_v49 = vld [vmem:[#allocation4 + $0x398] sm:$0xff] }
  0x1d   :  { %1787 = vmatmul.msk.f32.vlgmr.msra.gmra.mxu0 %vm105_vm0, %v55_v32  ;;  %1795 = vmatmul.msk.f32.vlgmr.msra.gmra.mxu1 %vm105_vm0, %v55_v32  ;;  %v2199_v50 = vld [vmem:[#allocation4 + $0x340] sm:$0xff]  ;;  %v2201_v51 = vld [vmem:[#allocation4 + $0x348] sm:$0xff]  ;;  %v2205_v52 = vld [vmem:[#allocation4 + $0x358] sm:$0xff] }
  0x1e   :  { %1803 = vmatmul.msk.f32.vlgmr.msra.gmra.mxu2 %vm105_vm0, %v55_v32  ;;  %1811 = vmatmul.msk.f32.vlgmr.msra.gmra.mxu3 %vm105_vm0, %v55_v32  ;;  %v2207_v53 = vld [vmem:[#allocation4 + $0x350] sm:$0xff]  ;;  %v2210_v54 = vld [vmem:[#allocation4 + $0x2f8] sm:$0xff]  ;;  %v2212_v55 = vld [vmem:[#allocation4 + $0x300] sm:$0xff] }
  0x1f   :  { %365 = vmatpush.msrb.mxu0 %v2144_v33  ;;  %385 = vmatpush.msrb.mxu1 %v2146_v34  ;;  %v2217_v56 = vld [vmem:[#allocation4 + $0x310] sm:$0xff]  ;;  %v2219_v57 = vld [vmem:[#allocation4 + $0x308] sm:$0xff]  ;;  %v2230_v60 = vld [vmem:[#allocation4 + $0x2b8] sm:$0xff] }
  0x20   :  { %425 = vmatpush.msrb.mxu3 %v2150_v35  ;;  %405 = vmatpush.msrb.mxu2 %v2152_v36  ;;  %v57_v58 = vld [vmem:[%s3166_s0 + $0x10] sm:$0xff]  ;;  %v2236_v61 = vld [vmem:[#allocation4 + $0x2c8] sm:$0xff]  ;;  %v2238_v62 = vld [vmem:[#allocation4 + $0x2c0] sm:$0xff] }
  0x21   :  { %366 = vmatpush.msrb.mxu0 %v2156_v37  ;;  %386 = vmatpush.msrb.mxu1 %v2158_v38  ;;  %v2228_v59 = vld [vmem:[#allocation4 + $0x2b0] sm:$0xff]  ;;  %v2242_v63 = vld [vmem:[#allocation4 + $0x268] sm:$0xff]  ;;  %v2248_v1 = vld [vmem:[#allocation4 + $0x280] sm:$0xff] }
  0x22   :  { %426 = vmatpush.msrb.mxu3 %v2162_v39  ;;  %406 = vmatpush.msrb.mxu2 %v2164_v40  ;;  %v2244_v0 = vld [vmem:[#allocation4 + $0x270] sm:$0xff]  ;;  %v2250_v2 = vld [vmem:[#allocation4 + $0x278] sm:$0xff]  ;;  %v2253_v3 = vld [vmem:[#allocation4 + $0x220] sm:$0xff] }
  0x23   :  { %367 = vmatpush.msrb.mxu0 %v2167_v41  ;;  %387 = vmatpush.msrb.mxu1 %v2169_v42  ;;  %v2255_v4 = vld [vmem:[#allocation4 + $0x228] sm:$0xff]  ;;  %v2260_v5 = vld [vmem:[#allocation4 + $0x238] sm:$0xff]  ;;  %v2262_v6 = vld [vmem:[#allocation4 + $0x230] sm:$0xff] }
  0x24   :  { %427 = vmatpush.msrb.mxu3 %v2174_v43  ;;  %407 = vmatpush.msrb.mxu2 %v2176_v44  ;;  %v58_v7 = vld [vmem:[%s3166_s0 + $0x18] sm:$0xff]  ;;  %v2273_v9 = vld [vmem:[#allocation4 + $0x1e0] sm:$0xff]  ;;  %v2279_v10 = vld [vmem:[#allocation4 + $0x1f0] sm:$0xff] }
  0x25   :  { %1788 = vmatmul.msk.f32.gmra.mxu0 %vm105_vm0, %v56_v45  ;;  %1796 = vmatmul.msk.f32.gmra.mxu1 %vm105_vm0, %v56_v45  ;;  %v2271_v8 = vld [vmem:[#allocation4 + $0x1d8] sm:$0xff]  ;;  %3262 = vst [vmem:[#allocation9_spill] sm:$0xff] %v2273_v9  ;;  %v2281_v11 = vld [vmem:[#allocation4 + $0x1e8] sm:$0xff]  ;;  %v2285_v12 = vld [vmem:[#allocation4 + $0x190] sm:$0xff] }
  0x26   :  { %1804 = vmatmul.msk.f32.gmra.mxu2 %vm105_vm0, %v56_v45  ;;  %1812 = vmatmul.msk.f32.gmra.mxu3 %vm105_vm0, %v56_v45  ;;  %3261 = vst [vmem:[#allocation8_spill] sm:$0xff] %v2271_v8  ;;  %v2287_v13 = vld [vmem:[#allocation4 + $0x198] sm:$0xff]  ;;  %v2291_v14 = vld [vmem:[#allocation4 + $0x1a8] sm:$0xff]  ;;  %v2293_v15 = vld [vmem:[#allocation4 + $0x1a0] sm:$0xff] }
  0x27   :  { %368 = vmatpush.msrb.mxu0 %v2185_v46  ;;  %388 = vmatpush.msrb.mxu1 %v2187_v47  ;;  %3263 = vst [vmem:[#allocation10_spill] sm:$0xff] %v2279_v10  ;;  %v2296_v16 = vld [vmem:[#allocation4 + $0x148] sm:$0xff]  ;;  %v2298_v17 = vld [vmem:[#allocation4 + $0x150] sm:$0xff]  ;;  %v2303_v18 = vld [vmem:[#allocation4 + $0x160] sm:$0xff] }
  0x28   :  { %428 = vmatpush.msrb.mxu3 %v2193_v48  ;;  %408 = vmatpush.msrb.mxu2 %v2195_v49  ;;  %3264 = vst [vmem:[#allocation11_spill] sm:$0xff] %v2281_v11  ;;  %v2305_v19 = vld [vmem:[#allocation4 + $0x158] sm:$0xff]  ;;  %v59_v20 = vld [vmem:[%s3166_s0 + $0x20] sm:$0xff]  ;;  %v2316_v22 = vld [vmem:[#allocation4 + $0x108] sm:$0xff] }
  0x29   :  { %369 = vmatpush.msrb.mxu0 %v2199_v50  ;;  %389 = vmatpush.msrb.mxu1 %v2201_v51  ;;  %3265 = vst [vmem:[#allocation12_spill] sm:$0xff] %v2285_v12  ;;  %v2314_v21 = vld [vmem:[#allocation4 + $0x100] sm:$0xff]  ;;  %v2322_v23 = vld [vmem:[#allocation4 + $0x118] sm:$0xff]  ;;  %v2324_v24 = vld [vmem:[#allocation4 + $0x110] sm:$0xff] }
  0x2a   :  { %429 = vmatpush.msrb.mxu3 %v2205_v52  ;;  %409 = vmatpush.msrb.mxu2 %v2207_v53  ;;  %3266 = vst [vmem:[#allocation13_spill] sm:$0xff] %v2287_v13  ;;  %v2328_v25 = vld [vmem:[#allocation4 + $0xb8] sm:$0xff]  ;;  %v2330_v26 = vld [vmem:[#allocation4 + $0xc0] sm:$0xff]  ;;  %v2334_v27 = vld [vmem:[#allocation4 + $0xd0] sm:$0xff] }
  0x2b   :  { %370 = vmatpush.msrb.mxu0 %v2210_v54  ;;  %390 = vmatpush.msrb.mxu1 %v2212_v55  ;;  %3267 = vst [vmem:[#allocation14_spill] sm:$0xff] %v2291_v14  ;;  %v2336_v28 = vld [vmem:[#allocation4 + $0xc8] sm:$0xff]  ;;  %v2339_v29 = vld [vmem:[#allocation4 + $0x70] sm:$0xff]  ;;  %v2341_v30 = vld [vmem:[#allocation4 + $0x78] sm:$0xff] }
  0x2c   :  { %430 = vmatpush.msrb.mxu3 %v2217_v56  ;;  %410 = vmatpush.msrb.mxu2 %v2219_v57  ;;  %3268 = vst [vmem:[#allocation15_spill] sm:$0xff] %v2293_v15  ;;  %v2346_v31 = vld [vmem:[#allocation4 + $0x80] sm:$0xff]  ;;  %v2348_v32 = vld [vmem:[#allocation4 + $0x88] sm:$0xff] }
  0x2d   :  { %1789 = vmatmul.msk.f32.gmra.mxu0 %vm105_vm0, %v57_v58  ;;  %1797 = vmatmul.msk.f32.gmra.mxu1 %vm105_vm0, %v57_v58  ;;  %3269 = vst [vmem:[#allocation16_spill] sm:$0xff] %v2296_v16  ;;  %v60_v45 = vld [vmem:[%s3166_s0 + $0x28] sm:$0xff] }
  0x2e   :  { %1805 = vmatmul.msk.f32.gmra.mxu2 %vm105_vm0, %v57_v58  ;;  %1813 = vmatmul.msk.f32.gmra.mxu3 %vm105_vm0, %v57_v58  ;;  %3270 = vst [vmem:[#allocation17_spill] sm:$0xff] %v2298_v17  ;;  %v2357_v58 = vld [vmem:[#allocation4 + $0x28] sm:$0xff] }
  0x2f   :  { %371 = vmatpush.msrb.mxu0 %v2228_v59  ;;  %391 = vmatpush.msrb.mxu1 %v2230_v60  ;;  %3271 = vst [vmem:[#allocation18_spill] sm:$0xff] %v2303_v18 }
  0x30   :  { %431 = vmatpush.msrb.mxu3 %v2236_v61  ;;  %411 = vmatpush.msrb.mxu2 %v2238_v62  ;;  %3272 = vst [vmem:[#allocation19_spill] sm:$0xff] %v2305_v19 }
  0x31   :  { %372 = vmatpush.msrb.mxu0 %v2242_v63  ;;  %392 = vmatpush.msrb.mxu1 %v2244_v0  ;;  %3273 = vst [vmem:[#allocation20_spill] sm:$0xff] %v2314_v21 }
  0x32   :  { %432 = vmatpush.msrb.mxu3 %v2248_v1  ;;  %412 = vmatpush.msrb.mxu2 %v2250_v2  ;;  %3274 = vst [vmem:[#allocation21_spill] sm:$0xff] %v2316_v22 }
  0x33   :  { %373 = vmatpush.msrb.mxu0 %v2253_v3  ;;  %393 = vmatpush.msrb.mxu1 %v2255_v4  ;;  %3275 = vst [vmem:[#allocation22_spill] sm:$0xff] %v2322_v23 }
  0x34   :  { %433 = vmatpush.msrb.mxu3 %v2260_v5  ;;  %413 = vmatpush.msrb.mxu2 %v2262_v6  ;;  %3276 = vst [vmem:[#allocation23_spill] sm:$0xff] %v2324_v24 }
  0x35   :  { %1790 = vmatmul.msk.f32.gmra.mxu0 %vm105_vm0, %v58_v7  ;;  %1798 = vmatmul.msk.f32.gmra.mxu1 %vm105_vm0, %v58_v7  ;;  %3277 = vst [vmem:[#allocation24_spill] sm:$0xff] %v2328_v25 }
  0x36   :  { %1806 = vmatmul.msk.f32.gmra.mxu2 %vm105_vm0, %v58_v7  ;;  %1814 = vmatmul.msk.f32.gmra.mxu3 %vm105_vm0, %v58_v7  ;;  %3278 = vst [vmem:[#allocation25_spill] sm:$0xff] %v2330_v26  ;;  %v2359_v7 = vld [vmem:[#allocation4 + $0x30] sm:$0xff] }
  0x37   :  { %374 = vmatpush.msrb.mxu0 %v2271_v8  ;;  %394 = vmatpush.msrb.mxu1 %v2273_v9  ;;  %3279 = vst [vmem:[#allocation26_spill] sm:$0xff] %v2334_v27 }
  0x38   :  { %434 = vmatpush.msrb.mxu3 %v2279_v10  ;;  %414 = vmatpush.msrb.mxu2 %v2281_v11  ;;  %3280 = vst [vmem:[#allocation27_spill] sm:$0xff] %v2336_v28 }
  0x39   :  { %375 = vmatpush.msrb.mxu0 %v2285_v12  ;;  %395 = vmatpush.msrb.mxu1 %v2287_v13  ;;  %3281 = vst [vmem:[#allocation28_spill] sm:$0xff] %v2339_v29 }
  0x3a   :  { %435 = vmatpush.msrb.mxu3 %v2291_v14  ;;  %415 = vmatpush.msrb.mxu2 %v2293_v15  ;;  %3282 = vst [vmem:[#allocation29_spill] sm:$0xff] %v2341_v30 }
  0x3b   :  { %376 = vmatpush.msrb.mxu0 %v2296_v16  ;;  %396 = vmatpush.msrb.mxu1 %v2298_v17  ;;  %3283 = vst [vmem:[#allocation30_spill] sm:$0xff] %v2346_v31 }
  0x3c   :  { %436 = vmatpush.msrb.mxu3 %v2303_v18  ;;  %416 = vmatpush.msrb.mxu2 %v2305_v19  ;;  %3284 = vst [vmem:[#allocation31_spill] sm:$0xff] %v2348_v32 }
  0x3d   :  { %1791 = vmatmul.msk.f32.gmra.mxu0 %vm105_vm0, %v59_v20  ;;  %1799 = vmatmul.msk.f32.gmra.mxu1 %vm105_vm0, %v59_v20  ;;  %3285 = vst [vmem:[#allocation32_spill] sm:$0xff] %v2357_v58 }
  0x3e   :  { %1807 = vmatmul.msk.f32.gmra.mxu2 %vm105_vm0, %v59_v20  ;;  %1815 = vmatmul.msk.f32.gmra.mxu3 %vm105_vm0, %v59_v20  ;;  %3286 = vst [vmem:[#allocation33_spill] sm:$0xff] %v2359_v7  ;;  %v2365_v20 = vld [vmem:[#allocation4 + $0x38] sm:$0xff] }
  0x3f   :  { %377 = vmatpush.msrb.mxu0 %v2314_v21  ;;  %397 = vmatpush.msrb.mxu1 %v2316_v22  ;;  %3287 = vst [vmem:[#allocation34_spill] sm:$0xff] %v2365_v20 }
  0x40   :  { %437 = vmatpush.msrb.mxu3 %v2322_v23  ;;  %417 = vmatpush.msrb.mxu2 %v2324_v24 }
  0x41   :  { %378 = vmatpush.msrb.mxu0 %v2328_v25  ;;  %398 = vmatpush.msrb.mxu1 %v2330_v26 }
  0x42   :  { %438 = vmatpush.msrb.mxu3 %v2334_v27  ;;  %418 = vmatpush.msrb.mxu2 %v2336_v28  ;;  %v2367_v27 = vld [vmem:[#allocation4 + $0x40] sm:$0xff] }
  0x43   :  { %379 = vmatpush.msrb.mxu0 %v2339_v29  ;;  %399 = vmatpush.msrb.mxu1 %v2341_v30  ;;  %3288 = vst [vmem:[#allocation35_spill] sm:$0xff] %v2367_v27 }
  0x44   :  { %419 = vmatpush.msrb.mxu2 %v2346_v31  ;;  %439 = vmatpush.msrb.mxu3 %v2348_v32  ;;  %v61_v32 = vld [vmem:[%s3166_s0 + $0x30] sm:$0xff] }
  0x45   :  { %1792 = vmatmul.msk.f32.gmra.mxu0 %vm105_vm0, %v60_v45  ;;  %1800 = vmatmul.msk.f32.gmra.mxu1 %vm105_vm0, %v60_v45 }
  0x46   :  { %1808 = vmatmul.msk.f32.gmra.mxu2 %vm105_vm0, %v60_v45  ;;  %1816 = vmatmul.msk.f32.gmra.mxu3 %vm105_vm0, %v60_v45  ;;  %v62_v45 = vld [vmem:[%s3166_s0 + $0x38] sm:$0xff] }
  0x47   :  { %380 = vmatpush.msrb.mxu0 %v2357_v58  ;;  %400 = vmatpush.msrb.mxu1 %v2359_v7 }
  0x48   :  { %420 = vmatpush.msrb.mxu2 %v2365_v20  ;;  %440 = vmatpush.msrb.mxu3 %v2367_v27 }
  0x49   :  { %518 = vmatpush.msra.mxu0 %v2144_v33  ;;  %538 = vmatpush.msra.mxu1 %v2146_v34 }
  0x4a   :  { %558 = vmatpush.msra.mxu2 %v2152_v36  ;;  %578 = vmatpush.msra.mxu3 %v2150_v35 }
  0x4b   :  { %519 = vmatpush.msra.mxu0 %v2156_v37  ;;  %539 = vmatpush.msra.mxu1 %v2158_v38 }
  0x4c   :  { %559 = vmatpush.msra.mxu2 %v2164_v40  ;;  %579 = vmatpush.msra.mxu3 %v2162_v39 }
  0x4d   :  { %1793 = vmatmul.msk.f32.gmra.mxu0 %vm105_vm0, %v61_v32  ;;  %1801 = vmatmul.msk.f32.gmra.mxu1 %vm105_vm0, %v61_v32 }
  0x4e   :  { %1809 = vmatmul.msk.f32.gmra.mxu2 %vm105_vm0, %v61_v32  ;;  %1817 = vmatmul.msk.f32.gmra.mxu3 %vm105_vm0, %v61_v32  ;;  %v2099_v32 = vmov 0.0  }
  0x4f   :  { %520 = vmatpush.msra.mxu0 %v2167_v41  ;;  %540 = vmatpush.msra.mxu1 %v2169_v42 }
  0x50   :  { %560 = vmatpush.msra.mxu2 %v2176_v44  ;;  %580 = vmatpush.msra.mxu3 %v2174_v43 }
  0x51   :  { %521 = vmatpush.msra.mxu0 %v2185_v46  ;;  %541 = vmatpush.msra.mxu1 %v2187_v47 }
  0x52   :  { %561 = vmatpush.msra.mxu2 %v2195_v49  ;;  %581 = vmatpush.msra.mxu3 %v2193_v48 }
  0x53   :  { %522 = vmatpush.msra.mxu0 %v2199_v50  ;;  %542 = vmatpush.msra.mxu1 %v2201_v51 }
  0x54   :  { %562 = vmatpush.msra.mxu2 %v2207_v53  ;;  %582 = vmatpush.msra.mxu3 %v2205_v52 }
  0x55   :  { %1794 = vmatmul.msk.f32.gmra.mxu0 %vm105_vm0, %v62_v45  ;;  %1802 = vmatmul.msk.f32.gmra.mxu1 %vm105_vm0, %v62_v45 }
  0x56   :  { %1810 = vmatmul.msk.f32.gmra.mxu2 %vm105_vm0, %v62_v45  ;;  %1818 = vmatmul.msk.f32.gmra.mxu3 %vm105_vm0, %v62_v45  ;;  %v3289_v45 = vld [vmem:[#allocation26_spill] sm:$0xff] }
  0x57   :  { %523 = vmatpush.msra.mxu0 %v2210_v54  ;;  %543 = vmatpush.msra.mxu1 %v2212_v55 }
  0x58   :  { %563 = vmatpush.msra.mxu2 %v2219_v57  ;;  %583 = vmatpush.msra.mxu3 %v2217_v56 }
  0x59   :  { %524 = vmatpush.msra.mxu0 %v2228_v59  ;;  %544 = vmatpush.msra.mxu1 %v2230_v60 }
  0x5a   :  { %564 = vmatpush.msra.mxu2 %v2238_v62  ;;  %584 = vmatpush.msra.mxu3 %v2236_v61 }
  0x5b   :  { %525 = vmatpush.msra.mxu0 %v2242_v63  ;;  %545 = vmatpush.msra.mxu1 %v2244_v0 }
  0x5c   :  { %565 = vmatpush.msra.mxu2 %v2250_v2  ;;  %585 = vmatpush.msra.mxu3 %v2248_v1 }
  0x5d   :  { %381 = vmatmul.f32.vlgmr.msrb.gmra.mxu0 %v2099_v32  ;;  %401 = vmatmul.f32.vlgmr.msrb.gmra.mxu1 %v2099_v32 }
  0x5e   :  { %421 = vmatmul.f32.vlgmr.msrb.gmra.mxu2 %v2099_v32  ;;  %441 = vmatmul.f32.vlgmr.msrb.gmra.mxu3 %v2099_v32  ;;  %v3290_v32 = vld [vmem:[#allocation31_spill] sm:$0xff] }
  0x5f   :  { %526 = vmatpush.msra.mxu0 %v2253_v3  ;;  %546 = vmatpush.msra.mxu1 %v2255_v4 }
  0x60   :  { %566 = vmatpush.msra.mxu2 %v2262_v6  ;;  %586 = vmatpush.msra.mxu3 %v2260_v5 }
  0x61   :  { %527 = vmatpush.msra.mxu0 %v2271_v8  ;;  %547 = vmatpush.msra.mxu1 %v2273_v9 }
  0x62   :  { %567 = vmatpush.msra.mxu2 %v2281_v11  ;;  %587 = vmatpush.msra.mxu3 %v2279_v10 }
  0x63   :  { %528 = vmatpush.msra.mxu0 %v2285_v12  ;;  %548 = vmatpush.msra.mxu1 %v2287_v13 }
  0x64   :  { %568 = vmatpush.msra.mxu2 %v2293_v15  ;;  %588 = vmatpush.msra.mxu3 %v2291_v14 }
  0x65   :  { %529 = vmatpush.msra.mxu0 %v2296_v16  ;;  %549 = vmatpush.msra.mxu1 %v2298_v17 }
  0x66   :  { %569 = vmatpush.msra.mxu2 %v2305_v19  ;;  %589 = vmatpush.msra.mxu3 %v2303_v18 }
  0x67   :  { %530 = vmatpush.msra.mxu0 %v2314_v21  ;;  %550 = vmatpush.msra.mxu1 %v2316_v22 }
  0x68   :  { %570 = vmatpush.msra.mxu2 %v2324_v24  ;;  %590 = vmatpush.msra.mxu3 %v2322_v23 }
  0x69   :  { %531 = vmatpush.msra.mxu0 %v2328_v25  ;;  %551 = vmatpush.msra.mxu1 %v2330_v26 }
  0x6a   :  { %571 = vmatpush.msra.mxu2 %v2336_v28  ;;  %591 = vmatpush.msra.mxu3 %v3289_v45 }
  0x6b   :  { %532 = vmatpush.msra.mxu0 %v2339_v29  ;;  %552 = vmatpush.msra.mxu1 %v2341_v30 }
  0x6c   :  { %572 = vmatpush.msra.mxu2 %v2346_v31  ;;  %592 = vmatpush.msra.mxu3 %v3290_v32 }
  0x6d   :  { %533 = vmatpush.msra.mxu0 %v2357_v58  ;;  %553 = vmatpush.msra.mxu1 %v2359_v7 }
  0x6e   :  { %573 = vmatpush.msra.mxu2 %v2365_v20  ;;  %593 = vmatpush.msra.mxu3 %v2367_v27 }
  0x6f   :  { %672 = vmatpush.msrb.mxu0 %v2144_v33  ;;  %692 = vmatpush.msrb.mxu1 %v2146_v34 }
  0x70   :  { %712 = vmatpush.msrb.mxu2 %v2152_v36  ;;  %732 = vmatpush.msrb.mxu3 %v2150_v35 }
  0x71   :  { %673 = vmatpush.msrb.mxu0 %v2156_v37  ;;  %693 = vmatpush.msrb.mxu1 %v2158_v38 }
  0x72   :  { %713 = vmatpush.msrb.mxu2 %v2164_v40  ;;  %733 = vmatpush.msrb.mxu3 %v2162_v39 }
  0x73   :  { %674 = vmatpush.msrb.mxu0 %v2167_v41  ;;  %694 = vmatpush.msrb.mxu1 %v2169_v42 }
  0x74   :  { %714 = vmatpush.msrb.mxu2 %v2176_v44  ;;  %734 = vmatpush.msrb.mxu3 %v2174_v43 }
  0x75   :  { %675 = vmatpush.msrb.mxu0 %v2185_v46  ;;  %695 = vmatpush.msrb.mxu1 %v2187_v47 }
  0x76   :  { %715 = vmatpush.msrb.mxu2 %v2195_v49  ;;  %735 = vmatpush.msrb.mxu3 %v2193_v48 }
  0x77   :  { %676 = vmatpush.msrb.mxu0 %v2199_v50  ;;  %696 = vmatpush.msrb.mxu1 %v2201_v51 }
  0x78   :  { %716 = vmatpush.msrb.mxu2 %v2207_v53  ;;  %736 = vmatpush.msrb.mxu3 %v2205_v52 }
  0x79   :  { %677 = vmatpush.msrb.mxu0 %v2210_v54  ;;  %697 = vmatpush.msrb.mxu1 %v2212_v55 }
  0x7a   :  { %717 = vmatpush.msrb.mxu2 %v2219_v57  ;;  %737 = vmatpush.msrb.mxu3 %v2217_v56 }
  0x7b   :  { %678 = vmatpush.msrb.mxu0 %v2228_v59  ;;  %698 = vmatpush.msrb.mxu1 %v2230_v60 }
  0x7c   :  { %718 = vmatpush.msrb.mxu2 %v2238_v62  ;;  %738 = vmatpush.msrb.mxu3 %v2236_v61 }
  0x7d   :  { %679 = vmatpush.msrb.mxu0 %v2242_v63  ;;  %699 = vmatpush.msrb.mxu1 %v2244_v0 }
  0x7e   :  { %719 = vmatpush.msrb.mxu2 %v2250_v2  ;;  %739 = vmatpush.msrb.mxu3 %v2248_v1 }
  0x7f   :  { %680 = vmatpush.msrb.mxu0 %v2253_v3  ;;  %700 = vmatpush.msrb.mxu1 %v2255_v4 }
  0x80   :  { %720 = vmatpush.msrb.mxu2 %v2262_v6  ;;  %740 = vmatpush.msrb.mxu3 %v2260_v5 }
  0x81   :  { %681 = vmatpush.msrb.mxu0 %v2271_v8  ;;  %701 = vmatpush.msrb.mxu1 %v2273_v9 }
  0x82   :  { %721 = vmatpush.msrb.mxu2 %v2281_v11  ;;  %741 = vmatpush.msrb.mxu3 %v2279_v10 }
  0x83   :  { %682 = vmatpush.msrb.mxu0 %v2285_v12  ;;  %702 = vmatpush.msrb.mxu1 %v2287_v13 }
  0x84   :  { %722 = vmatpush.msrb.mxu2 %v2293_v15  ;;  %742 = vmatpush.msrb.mxu3 %v2291_v14 }
  0x85   :  { %683 = vmatpush.msrb.mxu0 %v2296_v16  ;;  %703 = vmatpush.msrb.mxu1 %v2298_v17 }
  0x86   :  { %723 = vmatpush.msrb.mxu2 %v2305_v19  ;;  %743 = vmatpush.msrb.mxu3 %v2303_v18 }
  0x87   :  { %684 = vmatpush.msrb.mxu0 %v2314_v21  ;;  %704 = vmatpush.msrb.mxu1 %v2316_v22 }
  0x88   :  { %724 = vmatpush.msrb.mxu2 %v2324_v24  ;;  %744 = vmatpush.msrb.mxu3 %v2322_v23 }
  0x89   :  { %685 = vmatpush.msrb.mxu0 %v2328_v25  ;;  %705 = vmatpush.msrb.mxu1 %v2330_v26 }
  0x8a   :  { %725 = vmatpush.msrb.mxu2 %v2336_v28  ;;  %745 = vmatpush.msrb.mxu3 %v3289_v45 }
  0x8b   :  { %686 = vmatpush.msrb.mxu0 %v2339_v29  ;;  %706 = vmatpush.msrb.mxu1 %v2341_v30  ;;  %v95_v29 = vld [vmem:[%s3171_s5] sm:$0xf] }
  0x8c   :  { %726 = vmatpush.msrb.mxu2 %v2346_v31  ;;  %746 = vmatpush.msrb.mxu3 %v3290_v32  ;;  %v97_v45 = vperm.slane %v95_v29, 0  ;;  %v98_v30 = vperm.slane %v95_v29, 1 }
  0x8d   :  { %687 = vmatpush.msrb.mxu0 %v2357_v58  ;;  %707 = vmatpush.msrb.mxu1 %v2359_v7 }
  0x8e   :  { %727 = vmatpush.msrb.mxu2 %v2365_v20  ;;  %747 = vmatpush.msrb.mxu3 %v2367_v27  ;;  %v2528_v20 = vperm.slane %v95_v29, 2  ;;  %v100_v27 = vperm.slane %v95_v29, 3 }
  0x9a   :  { %v147_v26 = vpop.f32.mrf.mxu0  ;;  %v188_v28 = vpop.f32.mrf.mxu1 }
  0xa1   :  { %v2520_v25 = vpop.f32.mrf.mxu2  ;;  %v2522_v31 = vpop.f32.mrf.mxu3 }
  0xa2   :  { %v150_v32 = vpop.f32.mrf.mxu0  ;;  %v191_v58 = vpop.f32.mrf.mxu1 }
  0xa3   :  { %v2524_v23 = vadd.f32 %v150_v32, %v97_v45  ;;  %v2526_v7 = vadd.f32 %v191_v58, %v98_v30 }
  0xa5   :  { %3291 = vst [vmem:[#allocation36_spill] sm:$0xff] %v2524_v23 }
  0xa6   :  { %3292 = vst [vmem:[#allocation37_spill] sm:$0xff] %v2526_v7 }
  0xa9   :  { %v232_v24 = vpop.f32.mrf.mxu2  ;;  %v273_v22 = vpop.f32.mrf.mxu3 }
  0xaa   :  { %v2531_v21 = vadd.f32 %v232_v24, %v2528_v20  ;;  %v2533_v18 = vadd.f32 %v273_v22, %v100_v27  ;;  %v153_v19 = vpop.f32.mrf.mxu0  ;;  %v194_v17 = vpop.f32.mrf.mxu1 }
  0xab   :  { %v2535_v16 = vadd.f32 %v153_v19, %v97_v45  ;;  %v2537_v14 = vadd.f32 %v194_v17, %v98_v30 }
  0xac   :  { %3293 = vst [vmem:[#allocation38_spill] sm:$0xff] %v2531_v21 }
  0xad   :  { %3294 = vst [vmem:[#allocation39_spill] sm:$0xff] %v2533_v18 }
  0xae   :  { %3295 = vst [vmem:[#allocation40_spill] sm:$0xff] %v2535_v16 }
  0xaf   :  { %3296 = vst [vmem:[#allocation41_spill] sm:$0xff] %v2537_v14 }
  0xb1   :  { %v235_v32 = vpop.f32.mrf.mxu2  ;;  %v276_v23 = vpop.f32.mrf.mxu3 }
  0xb2   :  { %v2540_v58 = vadd.f32 %v235_v32, %v2528_v20  ;;  %v2542_v7 = vadd.f32 %v276_v23, %v100_v27  ;;  %v156_v29 = vpop.f32.mrf.mxu0  ;;  %v197_v15 = vpop.f32.mrf.mxu1 }
  0xb3   :  { %v2544_v13 = vadd.f32 %v156_v29, %v97_v45  ;;  %v2546_v24 = vadd.f32 %v197_v15, %v98_v30 }
  0xb4   :  { %3297 = vst [vmem:[#allocation42_spill] sm:$0xff] %v2540_v58 }
  0xb5   :  { %3298 = vst [vmem:[#allocation43_spill] sm:$0xff] %v2542_v7 }
  0xb6   :  { %3299 = vst [vmem:[#allocation44_spill] sm:$0xff] %v2544_v13 }
  0xb7   :  { %3300 = vst [vmem:[#allocation45_spill] sm:$0xff] %v2546_v24 }
  0xb9   :  { %v238_v22 = vpop.f32.mrf.mxu2  ;;  %v279_v21 = vpop.f32.mrf.mxu3 }
  0xba   :  { %v2549_v19 = vadd.f32 %v238_v22, %v2528_v20  ;;  %v2551_v17 = vadd.f32 %v279_v21, %v100_v27  ;;  %v159_v14 = vpop.f32.mrf.mxu0  ;;  %v200_v16 = vpop.f32.mrf.mxu1 }
  0xbb   :  { %v2553_v18 = vadd.f32 %v159_v14, %v97_v45  ;;  %v2555_v32 = vadd.f32 %v200_v16, %v98_v30 }
  0xbc   :  { %3301 = vst [vmem:[#allocation46_spill] sm:$0xff] %v2549_v19 }
  0xbd   :  { %3302 = vst [vmem:[#allocation47_spill] sm:$0xff] %v2551_v17 }
  0xbe   :  { %3303 = vst [vmem:[#allocation48_spill] sm:$0xff] %v2553_v18 }
  0xbf   :  { %3304 = vst [vmem:[#allocation49_spill] sm:$0xff] %v2555_v32 }
  0xc1   :  { %v241_v23 = vpop.f32.mrf.mxu2  ;;  %v282_v58 = vpop.f32.mrf.mxu3 }
  0xc2   :  { %v2558_v29 = vadd.f32 %v241_v23, %v2528_v20  ;;  %v2560_v15 = vadd.f32 %v282_v58, %v100_v27  ;;  %v162_v24 = vpop.f32.mrf.mxu0  ;;  %v203_v13 = vpop.f32.mrf.mxu1 }
  0xc3   :  { %v2562_v7 = vadd.f32 %v162_v24, %v97_v45  ;;  %v2564_v22 = vadd.f32 %v203_v13, %v98_v30 }
  0xc4   :  { %3305 = vst [vmem:[#allocation50_spill] sm:$0xff] %v2558_v29 }
  0xc5   :  { %3306 = vst [vmem:[#allocation51_spill] sm:$0xff] %v2560_v15 }
  0xc6   :  { %3307 = vst [vmem:[#allocation52_spill] sm:$0xff] %v2562_v7 }
  0xc7   :  { %3308 = vst [vmem:[#allocation53_spill] sm:$0xff] %v2564_v22 }
  0xc9   :  { %v244_v21 = vpop.f32.mrf.mxu2  ;;  %v285_v19 = vpop.f32.mrf.mxu3 }
  0xca   :  { %v2567_v14 = vadd.f32 %v244_v21, %v2528_v20  ;;  %v2569_v16 = vadd.f32 %v285_v19, %v100_v27  ;;  %v165_v32 = vpop.f32.mrf.mxu0  ;;  %v206_v18 = vpop.f32.mrf.mxu1  ;;  %v148_v19 = vadd.f32 %v147_v26, %v97_v45 }
  0xcb   :  { %v2571_v17 = vadd.f32 %v165_v32, %v97_v45  ;;  %v2573_v23 = vadd.f32 %v206_v18, %v98_v30 }
  0xcc   :  { %3309 = vst [vmem:[#allocation54_spill] sm:$0xff] %v2567_v14  ;;  %v189_v14 = vadd.f32 %v188_v28, %v98_v30 }
  0xcd   :  { %3310 = vst [vmem:[#allocation55_spill] sm:$0xff] %v2569_v16 }
  0xce   :  { %3311 = vst [vmem:[#allocation56_spill] sm:$0xff] %v2571_v17 }
  0xcf   :  { %3312 = vst [vmem:[#allocation57_spill] sm:$0xff] %v2573_v23 }
  0xd1   :  { %v247_v58 = vpop.f32.mrf.mxu2  ;;  %v288_v29 = vpop.f32.mrf.mxu3 }
  0xd2   :  { %v2576_v24 = vadd.f32 %v247_v58, %v2528_v20  ;;  %v2578_v13 = vadd.f32 %v288_v29, %v100_v27  ;;  %v168_v22 = vpop.f32.mrf.mxu0  ;;  %v209_v7 = vpop.f32.mrf.mxu1 }
  0xd3   :  { %v2580_v15 = vadd.f32 %v168_v22, %v97_v45  ;;  %v2582_v21 = vadd.f32 %v209_v7, %v98_v30 }
  0xd4   :  { %3313 = vst [vmem:[#allocation58_spill] sm:$0xff] %v2576_v24 }
  0xd5   :  { %3314 = vst [vmem:[#allocation59_spill] sm:$0xff] %v2578_v13  ;;  %v271_v13 = vadd.f32 %v2522_v31, %v100_v27 }
  0xd6   :  { %3315 = vst [vmem:[#allocation60_spill] sm:$0xff] %v2580_v15 }
  0xd7   :  { %3316 = vst [vmem:[#allocation61_spill] sm:$0xff] %v2582_v21 }
  0xd9   :  { %v250_v16 = vpop.f32.mrf.mxu2  ;;  %v291_v32 = vpop.f32.mrf.mxu3 }
  0xda   :  { %v2585_v18 = vadd.f32 %v250_v16, %v2528_v20  ;;  %v382_v23 = vpop.f32.mrf.mxu0  ;;  %v402_v17 = vpop.f32.mrf.mxu1 }
  0xdb   :  { %v445_v12 = vadd.f32 %v382_v23, %v148_v19  ;;  %v446_v58 = vadd.f32 %v402_v17, %v189_v14 }
  0xdc   :  { %3317 = vst [vmem:[#allocation62_spill] sm:$0xff] %v2585_v18 }
  0xdd   :  { %v1819_v24 = vmul.f32 -1.442695, %v445_v12  ;;  %v1820_v29 = vmul.f32 -1.442695, %v446_v58  ;;  %v230_v12 = vadd.f32 %v2520_v25, %v2528_v20  ;;  %v293_v25 = vld [vmem:[%s3167_s1] sm:$0xff] }
  0xdf   :  { %1851 = vpow2.f32 %v1819_v24 }
  0xe0   :  { %1853 = vpow2.f32 %v1820_v29 }
  0xe1   :  { %v442_v22 = vpop.f32.mrf.mxu3  ;;  %v422_v16 = vpop.f32.mrf.mxu2 }
  0xe2   :  { %v448_v7 = vadd.f32 %v442_v22, %v271_v13  ;;  %v447_v23 = vadd.f32 %v422_v16, %v230_v12 }
  0xe4   :  { %v1821_v21 = vmul.f32 -1.442695, %v448_v7 }
  0xe5   :  { %v1852_v26 = vpop.eup %1851 }
  0xe6   :  { %v1854_v28 = vpop.eup %1853  ;;  %v452_v30 = vadd.f32 1.0, %v1852_v26  ;;  %1855 = vpow2.f32 %v1821_v21 }
  0xe7   :  { %v471_v45 = vadd.f32 1.0, %v1854_v28 }
  0xe8   :  { %1857 = vrcp.f32 %v452_v30  ;;  %v464_v58 = vand.u32 2147483648, %v452_v30  ;;  %v462_v22 = vand.u32 2147483647, %v452_v30  ;;  %vm458_vm3 = vweird.f32 %v452_v30 }
  0xe9   :  { %1859 = vrcp.f32 %v471_v45  ;;  %v483_v21 = vand.u32 2147483648, %v471_v45  ;;  %v481_v20 = vand.u32 2147483647, %v471_v45  ;;  %vm477_vm4 = vweird.f32 %v471_v45 }
  0xea   :  { %v465_v16 = vor.u32 1.1754944e-38, %v464_v58  ;;  %vm463_vm6 = vcmp.eq.f32.partialorder %v462_v22, 8.507059e+37 }
  0xeb   :  { %vm482_vm8 = vcmp.eq.f32.partialorder %v481_v20, 8.507059e+37 }
  0xec   :  { %v1856_v32 = vpop.eup %1855 }
  0xed   :  { %v491_v17 = vadd.f32 1.0, %v1856_v32 }
  0xee   :  { %v1858_v14 = vpop.eup %1857 }
  0xef   :  { %v1860_v27 = vpop.eup %1859  ;;  %v454_v31 = vmul.f32 %v1858_v14, %v452_v30  ;;  %1861 = vrcp.f32 %v491_v17  ;;  %vm459_vm1 = vweird.f32 %v1858_v14  ;;  %vm497_vm10 = vweird.f32 %v491_v17 }
  0xf0   :  { %v473_v24 = vmul.f32 %v1860_v27, %v471_v45  ;;  %1863 = vtanh.f32 %v447_v23  ;;  %vm478_vm2 = vweird.f32 %v1860_v27  ;;  %vm460_vm5 = vmor %vm458_vm3, %vm459_vm1  ;;  %v484_v23 = vor.u32 1.1754944e-38, %v483_v21 }
  0xf1   :  { %v455_v13 = vsub.f32 1.0, %v454_v31  ;;  %vm479_vm7 = vmor %vm477_vm4, %vm478_vm2  ;;  %v503_v21 = vand.u32 2147483648, %v491_v17 }
  0xf2   :  { %v474_v19 = vsub.f32 1.0, %v473_v24  ;;  %v513_v24 = vsub.f32 1.0, %v293_v25 }
  0xf3   :  { %v456_v29 = vmul.f32 %v1858_v14, %v455_v13 }
  0xf4   :  { %v475_v7 = vmul.f32 %v1860_v27, %v474_v19  ;;  %v514_v45 = vmul.f32 0.0, %v513_v24 }
  0xf5   :  { %v1862_v26 = vpop.eup %1861  ;;  %v457_v28 = vadd.f32 %v1858_v14, %v456_v29 }
  0xf6   :  { %v476_v32 = vadd.f32 %v1860_v27, %v475_v7  ;;  %v493_v12 = vmul.f32 %v1862_v26, %v491_v17  ;;  %v1864_v13 = vpop.eup %1863  ;;  %vm498_vm9 = vweird.f32 %v1862_v26 }
  0xf7   :  { %v461_v31 = vsel %vm460_vm5, %v1858_v14, %v457_v28  ;;  %v501_v14 = vand.u32 2147483647, %v491_v17  ;;  %vm499_vm11 = vmor %vm497_vm10, %vm498_vm9 }
  0xf8   :  { %v466_v19 = vsel %vm463_vm6, %v465_v16, %v461_v31  ;;  %v480_v18 = vsel %vm479_vm7, %v1860_v27, %v476_v32  ;;  %v494_v15 = vsub.f32 1.0, %v493_v12  ;;  %v504_v27 = vor.u32 1.1754944e-38, %v503_v21 }
  0xf9   :  { %v485_v10 = vsel %vm482_vm8, %v484_v23, %v480_v18  ;;  %v508_v11 = vmul.f32 %v1864_v13, %v466_v19  ;;  %vm502_vm12 = vcmp.eq.f32.partialorder %v501_v14, 8.507059e+37  ;;  %v3349_v13 = vld [vmem:[#allocation38_spill] sm:$0xff] }
  0xfa   :  { %v507_v9 = vmul.f32 0.0, %v485_v10  ;;  %v495_v29 = vmul.f32 %v1862_v26, %v494_v15 }
  0xfc   :  { %v509_v30 = vadd.f32 %v508_v11, %v507_v9  ;;  %v496_v8 = vadd.f32 %v1862_v26, %v495_v29  ;;  %v3348_v9 = vld [vmem:[#allocation39_spill] sm:$0xff] }
  0xfe   :  { %1865 = vtanh.f32 %v509_v30  ;;  %v512_v58 = vmul.f32 %v509_v30, %v293_v25  ;;  %v500_v7 = vsel %vm499_vm11, %v1862_v26, %v496_v8 }
  0xff   :  { %v505_v18 = vsel %vm502_vm12, %v504_v27, %v500_v7 }
 0x100   :  { %v2593_v22 = vadd.f32 %v514_v45, %v512_v58 }
 0x104   :  { %v1866_v20 = vpop.eup %1865 }
 0x105   :  { %v511_v28 = vmul.f32 %v1866_v20, %v505_v18 }
 0x107   :  { %v516_v10 = vmul.f32 %v511_v28, %v293_v25 }
 0x109   :  { %v2595_v15 = vadd.f32 %v516_v10, %v514_v45 }
 0x10b   :  { %534 = vmatmul.f32.vlgmr.msra.gmra.mxu0 %v2595_v15  ;;  %554 = vmatmul.f32.vlgmr.msra.gmra.mxu1 %v2595_v15 }
 0x10c   :  { %574 = vmatmul.f32.vlgmr.msra.gmra.mxu2 %v2595_v15  ;;  %594 = vmatmul.f32.vlgmr.msra.gmra.mxu3 %v2595_v15 }
 0x10d   :  { %826 = vmatpush.msra.mxu0 %v2144_v33  ;;  %846 = vmatpush.msra.mxu1 %v2146_v34  ;;  %v3318_v33 = vld [vmem:[#allocation8_spill] sm:$0xff]  ;;  %v3319_v34 = vld [vmem:[#allocation9_spill] sm:$0xff] }
 0x10e   :  { %866 = vmatpush.msra.mxu2 %v2152_v36  ;;  %886 = vmatpush.msra.mxu3 %v2150_v35  ;;  %v3320_v35 = vld [vmem:[#allocation11_spill] sm:$0xff]  ;;  %v3321_v36 = vld [vmem:[#allocation10_spill] sm:$0xff] }
 0x10f   :  { %827 = vmatpush.msra.mxu0 %v2156_v37  ;;  %847 = vmatpush.msra.mxu1 %v2158_v38  ;;  %v3322_v37 = vld [vmem:[#allocation12_spill] sm:$0xff]  ;;  %v3323_v38 = vld [vmem:[#allocation13_spill] sm:$0xff] }
 0x110   :  { %867 = vmatpush.msra.mxu2 %v2164_v40  ;;  %887 = vmatpush.msra.mxu3 %v2162_v39  ;;  %v3324_v39 = vld [vmem:[#allocation15_spill] sm:$0xff]  ;;  %v3325_v40 = vld [vmem:[#allocation14_spill] sm:$0xff] }
 0x111   :  { %828 = vmatpush.msra.mxu0 %v2167_v41  ;;  %848 = vmatpush.msra.mxu1 %v2169_v42  ;;  %v3326_v41 = vld [vmem:[#allocation16_spill] sm:$0xff]  ;;  %v3327_v42 = vld [vmem:[#allocation17_spill] sm:$0xff] }
 0x112   :  { %868 = vmatpush.msra.mxu2 %v2176_v44  ;;  %888 = vmatpush.msra.mxu3 %v2174_v43  ;;  %v3328_v43 = vld [vmem:[#allocation19_spill] sm:$0xff]  ;;  %v3329_v44 = vld [vmem:[#allocation18_spill] sm:$0xff] }
 0x113   :  { %829 = vmatpush.msra.mxu0 %v2185_v46  ;;  %849 = vmatpush.msra.mxu1 %v2187_v47  ;;  %v3330_v46 = vld [vmem:[#allocation20_spill] sm:$0xff]  ;;  %v3331_v47 = vld [vmem:[#allocation21_spill] sm:$0xff] }
 0x114   :  { %869 = vmatpush.msra.mxu2 %v2195_v49  ;;  %889 = vmatpush.msra.mxu3 %v2193_v48  ;;  %v3332_v48 = vld [vmem:[#allocation23_spill] sm:$0xff]  ;;  %v3333_v49 = vld [vmem:[#allocation22_spill] sm:$0xff] }
 0x115   :  { %830 = vmatpush.msra.mxu0 %v2199_v50  ;;  %850 = vmatpush.msra.mxu1 %v2201_v51  ;;  %v3334_v50 = vld [vmem:[#allocation24_spill] sm:$0xff]  ;;  %v3335_v51 = vld [vmem:[#allocation25_spill] sm:$0xff] }
 0x116   :  { %870 = vmatpush.msra.mxu2 %v2207_v53  ;;  %890 = vmatpush.msra.mxu3 %v2205_v52  ;;  %v3336_v52 = vld [vmem:[#allocation27_spill] sm:$0xff]  ;;  %v3337_v53 = vld [vmem:[#allocation26_spill] sm:$0xff] }
 0x117   :  { %831 = vmatpush.msra.mxu0 %v2210_v54  ;;  %851 = vmatpush.msra.mxu1 %v2212_v55  ;;  %v3338_v54 = vld [vmem:[#allocation28_spill] sm:$0xff]  ;;  %v3339_v55 = vld [vmem:[#allocation29_spill] sm:$0xff] }
 0x118   :  { %871 = vmatpush.msra.mxu2 %v2219_v57  ;;  %891 = vmatpush.msra.mxu3 %v2217_v56  ;;  %v3340_v56 = vld [vmem:[#allocation30_spill] sm:$0xff]  ;;  %v3341_v57 = vld [vmem:[#allocation31_spill] sm:$0xff] }
 0x119   :  { %832 = vmatpush.msra.mxu0 %v2228_v59  ;;  %852 = vmatpush.msra.mxu1 %v2230_v60  ;;  %v3342_v59 = vld [vmem:[#allocation32_spill] sm:$0xff]  ;;  %v3343_v60 = vld [vmem:[#allocation33_spill] sm:$0xff] }
 0x11a   :  { %872 = vmatpush.msra.mxu2 %v2238_v62  ;;  %892 = vmatpush.msra.mxu3 %v2236_v61  ;;  %v3344_v61 = vld [vmem:[#allocation34_spill] sm:$0xff]  ;;  %v3345_v62 = vld [vmem:[#allocation35_spill] sm:$0xff] }
 0x11b   :  { %833 = vmatpush.msra.mxu0 %v2242_v63  ;;  %853 = vmatpush.msra.mxu1 %v2244_v0 }
 0x11c   :  { %873 = vmatpush.msra.mxu2 %v2250_v2  ;;  %893 = vmatpush.msra.mxu3 %v2248_v1  ;;  %v3346_v1 = vld [vmem:[#allocation36_spill] sm:$0xff] }
 0x11d   :  { %834 = vmatpush.msra.mxu0 %v2253_v3  ;;  %854 = vmatpush.msra.mxu1 %v2255_v4  ;;  %v3347_v3 = vld [vmem:[#allocation37_spill] sm:$0xff] }
 0x11e   :  { %874 = vmatpush.msra.mxu2 %v2262_v6  ;;  %894 = vmatpush.msra.mxu3 %v2260_v5 }
 0x11f   :  { %835 = vmatpush.msra.mxu0 %v3318_v33  ;;  %855 = vmatpush.msra.mxu1 %v3319_v34 }
 0x120   :  { %875 = vmatpush.msra.mxu2 %v3320_v35  ;;  %895 = vmatpush.msra.mxu3 %v3321_v36 }
 0x121   :  { %836 = vmatpush.msra.mxu0 %v3322_v37  ;;  %856 = vmatpush.msra.mxu1 %v3323_v38  ;;  %v294_v38 = vld [vmem:[%s3167_s1 + $0x8] sm:$0xff] }
 0x122   :  { %876 = vmatpush.msra.mxu2 %v3324_v39  ;;  %896 = vmatpush.msra.mxu3 %v3325_v40 }
 0x123   :  { %837 = vmatpush.msra.mxu0 %v3326_v41  ;;  %857 = vmatpush.msra.mxu1 %v3327_v42 }
 0x124   :  { %877 = vmatpush.msra.mxu2 %v3328_v43  ;;  %897 = vmatpush.msra.mxu3 %v3329_v44 }
 0x125   :  { %838 = vmatpush.msra.mxu0 %v3330_v46  ;;  %858 = vmatpush.msra.mxu1 %v3331_v47 }
 0x126   :  { %878 = vmatpush.msra.mxu2 %v3332_v48  ;;  %898 = vmatpush.msra.mxu3 %v3333_v49  ;;  %v666_v49 = vsub.f32 1.0, %v294_v38 }
 0x127   :  { %839 = vmatpush.msra.mxu0 %v3334_v50  ;;  %859 = vmatpush.msra.mxu1 %v3335_v51 }
 0x128   :  { %879 = vmatpush.msra.mxu2 %v3336_v52  ;;  %899 = vmatpush.msra.mxu3 %v3337_v53 }
 0x129   :  { %840 = vmatpush.msra.mxu0 %v3338_v54  ;;  %860 = vmatpush.msra.mxu1 %v3339_v55  ;;  %v667_v54 = vmul.f32 %v666_v49, %v2593_v22 }
 0x12a   :  { %880 = vmatpush.msra.mxu2 %v3340_v56  ;;  %900 = vmatpush.msra.mxu3 %v3341_v57 }
 0x12b   :  { %841 = vmatpush.msra.mxu0 %v3342_v59  ;;  %861 = vmatpush.msra.mxu1 %v3343_v60 }
 0x12c   :  { %881 = vmatpush.msra.mxu2 %v3344_v61  ;;  %901 = vmatpush.msra.mxu3 %v3345_v62 }
 0x188   :  { %v535_v63 = vpop.f32.mrf.mxu0  ;;  %v555_v0 = vpop.f32.mrf.mxu1 }
 0x189   :  { %v598_v2 = vadd.f32 %v535_v63, %v3346_v1  ;;  %v599_v4 = vadd.f32 %v555_v0, %v3347_v3  ;;  %v670_v0 = vmul.f32 %v666_v49, %v2595_v15  ;;  %v2689_v3 = vld [vmem:[#allocation4 + $0x470] sm:$0xff]  ;;  %v2692_v15 = vld [vmem:[#allocation4 + $0x478] sm:$0xff]  ;;  %v2827_v49 = vld [vmem:[#allocation4 + $0x100] sm:$0xff] }
 0x18a   :  { %3362 = vst [vmem:[#allocation20_spill] sm:$0xff] %v2827_v49 }
 0x18b   :  { %v1822_v5 = vmul.f32 -1.442695, %v598_v2  ;;  %v1823_v6 = vmul.f32 -1.442695, %v599_v4  ;;  %v2686_v2 = vld [vmem:[#allocation4 + $0x468] sm:$0xff]  ;;  %v2695_v4 = vld [vmem:[#allocation4 + $0x418] sm:$0xff] }
 0x18d   :  { %1867 = vpow2.f32 %v1822_v5  ;;  %v2698_v5 = vld [vmem:[#allocation4 + $0x420] sm:$0xff] }
 0x18e   :  { %1869 = vpow2.f32 %v1823_v6  ;;  %v2701_v6 = vld [vmem:[#allocation4 + $0x428] sm:$0xff] }
 0x18f   :  { %v595_v8 = vpop.f32.mrf.mxu3  ;;  %v575_v12 = vpop.f32.mrf.mxu2 }
 0x190   :  { %v601_v11 = vadd.f32 %v595_v8, %v3348_v9  ;;  %v600_v19 = vadd.f32 %v575_v12, %v3349_v13  ;;  %v2704_v8 = vld [vmem:[#allocation4 + $0x430] sm:$0xff]  ;;  %v2728_v12 = vld [vmem:[#allocation4 + $0x3a0] sm:$0xff]  ;;  %v2740_v13 = vld [vmem:[#allocation4 + $0x358] sm:$0xff] }
 0x191   :  { %v2707_v9 = vld [vmem:[#allocation4 + $0x3d0] sm:$0xff] }
 0x192   :  { %v1824_v17 = vmul.f32 -1.442695, %v601_v11  ;;  %v2710_v11 = vld [vmem:[#allocation4 + $0x3d8] sm:$0xff] }
 0x193   :  { %v1868_v25 = vpop.eup %1867 }
 0x194   :  { %v1870_v26 = vpop.eup %1869  ;;  %v605_v16 = vadd.f32 1.0, %v1868_v25  ;;  %1871 = vpow2.f32 %v1824_v17  ;;  %v2713_v17 = vld [vmem:[#allocation4 + $0x3e0] sm:$0xff]  ;;  %v2716_v25 = vld [vmem:[#allocation4 + $0x3e8] sm:$0xff] }
 0x195   :  { %v624_v32 = vadd.f32 1.0, %v1870_v26  ;;  %v2719_v26 = vld [vmem:[#allocation4 + $0x388] sm:$0xff] }
 0x196   :  { %1873 = vrcp.f32 %v605_v16  ;;  %v617_v14 = vand.u32 2147483648, %v605_v16  ;;  %v615_v20 = vand.u32 2147483647, %v605_v16  ;;  %vm611_vm15 = vweird.f32 %v605_v16 }
 0x197   :  { %1875 = vrcp.f32 %v624_v32  ;;  %v636_v7 = vand.u32 2147483648, %v624_v32  ;;  %v634_v28 = vand.u32 2147483647, %v624_v32  ;;  %vm630_vm0 = vweird.f32 %v624_v32 }
 0x198   :  { %v618_v34 = vor.u32 1.1754944e-38, %v617_v14  ;;  %vm616_vm3 = vcmp.eq.f32.partialorder %v615_v20, 8.507059e+37  ;;  %v2761_v14 = vld [vmem:[#allocation4 + $0x2c0] sm:$0xff]  ;;  %v2770_v20 = vld [vmem:[#allocation4 + $0x270] sm:$0xff] }
 0x199   :  { %v637_v37 = vor.u32 1.1754944e-38, %v636_v7  ;;  %vm635_vm4 = vcmp.eq.f32.partialorder %v634_v28, 8.507059e+37  ;;  %v2764_v7 = vld [vmem:[#allocation4 + $0x2c8] sm:$0xff]  ;;  %v2776_v28 = vld [vmem:[#allocation4 + $0x280] sm:$0xff] }
 0x19a   :  { %v1872_v23 = vpop.eup %1871 }
 0x19b   :  { %v644_v31 = vadd.f32 1.0, %v1872_v23  ;;  %v2731_v23 = vld [vmem:[#allocation4 + $0x340] sm:$0xff] }
 0x19c   :  { %v1874_v24 = vpop.eup %1873 }
 0x19d   :  { %v1876_v29 = vpop.eup %1875  ;;  %v607_v30 = vmul.f32 %v1874_v24, %v605_v16  ;;  %1877 = vrcp.f32 %v644_v31  ;;  %vm612_vm13 = vweird.f32 %v1874_v24  ;;  %v656_v53 = vand.u32 2147483648, %v644_v31  ;;  %v2722_v16 = vld [vmem:[#allocation4 + $0x390] sm:$0xff] }
 0x19e   :  { %v626_v45 = vmul.f32 %v1876_v29, %v624_v32  ;;  %1879 = vtanh.f32 %v600_v19  ;;  %vm631_vm14 = vweird.f32 %v1876_v29  ;;  %vm613_vm1 = vmor %vm611_vm15, %vm612_vm13  ;;  %vm650_vm6 = vweird.f32 %v644_v31  ;;  %v2725_v32 = vld [vmem:[#allocation4 + $0x398] sm:$0xff] }
 0x19f   :  { %v608_v58 = vsub.f32 1.0, %v607_v30  ;;  %vm632_vm2 = vmor %vm630_vm0, %vm631_vm14  ;;  %v654_v55 = vand.u32 2147483647, %v644_v31  ;;  %v657_v59 = vor.u32 1.1754944e-38, %v656_v53  ;;  %v2743_v19 = vld [vmem:[#allocation4 + $0x2f8] sm:$0xff]  ;;  %v2749_v30 = vld [vmem:[#allocation4 + $0x308] sm:$0xff] }
 0x1a0   :  { %v627_v21 = vsub.f32 1.0, %v626_v45  ;;  %v2752_v45 = vld [vmem:[#allocation4 + $0x310] sm:$0xff]  ;;  %v2839_v53 = vld [vmem:[#allocation4 + $0xb8] sm:$0xff] }
 0x1a1   :  { %v609_v27 = vmul.f32 %v1874_v24, %v608_v58  ;;  %vm655_vm8 = vcmp.eq.f32.partialorder %v654_v55, 8.507059e+37  ;;  %v2755_v58 = vld [vmem:[#allocation4 + $0x2b0] sm:$0xff]  ;;  %3366 = vst [vmem:[#allocation24_spill] sm:$0xff] %v2839_v53  ;;  %v2845_v55 = vld [vmem:[#allocation4 + $0xc8] sm:$0xff] }
 0x1a2   :  { %v628_v18 = vmul.f32 %v1876_v29, %v627_v21  ;;  %v2758_v21 = vld [vmem:[#allocation4 + $0x2b8] sm:$0xff]  ;;  %3368 = vst [vmem:[#allocation27_spill] sm:$0xff] %v2845_v55 }
 0x1a3   :  { %v1878_v10 = vpop.eup %1877  ;;  %v610_v33 = vadd.f32 %v1874_v24, %v609_v27  ;;  %v2767_v27 = vld [vmem:[#allocation4 + $0x268] sm:$0xff] }
 0x1a4   :  { %v629_v35 = vadd.f32 %v1876_v29, %v628_v18  ;;  %v646_v36 = vmul.f32 %v1878_v10, %v644_v31  ;;  %v1880_v40 = vpop.eup %1879  ;;  %vm651_vm5 = vweird.f32 %v1878_v10  ;;  %v2734_v31 = vld [vmem:[#allocation4 + $0x348] sm:$0xff]  ;;  %v2773_v18 = vld [vmem:[#allocation4 + $0x278] sm:$0xff] }
 0x1a5   :  { %v614_v39 = vsel %vm613_vm1, %v1874_v24, %v610_v33  ;;  %vm652_vm7 = vmor %vm650_vm6, %vm651_vm5  ;;  %v2737_v24 = vld [vmem:[#allocation4 + $0x350] sm:$0xff]  ;;  %v2782_v33 = vld [vmem:[#allocation4 + $0x228] sm:$0xff] }
 0x1a6   :  { %v619_v41 = vsel %vm616_vm3, %v618_v34, %v614_v39  ;;  %v633_v42 = vsel %vm632_vm2, %v1876_v29, %v629_v35  ;;  %v647_v43 = vsub.f32 1.0, %v646_v36  ;;  %v2746_v29 = vld [vmem:[#allocation4 + $0x300] sm:$0xff]  ;;  %v2785_v34 = vld [vmem:[#allocation4 + $0x230] sm:$0xff]  ;;  %v2788_v35 = vld [vmem:[#allocation4 + $0x238] sm:$0xff] }
 0x1a7   :  { %v638_v44 = vsel %vm635_vm4, %v637_v37, %v633_v42  ;;  %v661_v46 = vmul.f32 %v1880_v40, %v619_v41  ;;  %v2791_v36 = vld [vmem:[#allocation4 + $0x1d8] sm:$0xff]  ;;  %v2794_v37 = vld [vmem:[#allocation4 + $0x1e0] sm:$0xff]  ;;  %v2800_v39 = vld [vmem:[#allocation4 + $0x1f0] sm:$0xff] }
 0x1a8   :  { %v660_v47 = vmul.f32 %v638_v44, %v2593_v22  ;;  %v648_v48 = vmul.f32 %v1878_v10, %v647_v43  ;;  %v2683_v22 = vld [vmem:[#allocation4 + $0x460] sm:$0xff]  ;;  %3350 = vst [vmem:[#allocation8_spill] sm:$0xff] %v2791_v36  ;;  %v2803_v40 = vld [vmem:[#allocation4 + $0x190] sm:$0xff]  ;;  %v2806_v41 = vld [vmem:[#allocation4 + $0x198] sm:$0xff] }
 0x1a9   :  { %3351 = vst [vmem:[#allocation9_spill] sm:$0xff] %v2794_v37  ;;  %v2809_v42 = vld [vmem:[#allocation4 + $0x1a0] sm:$0xff]  ;;  %v2812_v43 = vld [vmem:[#allocation4 + $0x1a8] sm:$0xff] }
 0x1aa   :  { %v662_v50 = vadd.f32 %v661_v46, %v660_v47  ;;  %v649_v51 = vadd.f32 %v1878_v10, %v648_v48  ;;  %3353 = vst [vmem:[#allocation10_spill] sm:$0xff] %v2800_v39  ;;  %v2815_v44 = vld [vmem:[#allocation4 + $0x148] sm:$0xff]  ;;  %v2818_v46 = vld [vmem:[#allocation4 + $0x150] sm:$0xff]  ;;  %v2821_v47 = vld [vmem:[#allocation4 + $0x158] sm:$0xff] }
 0x1ab   :  { %3354 = vst [vmem:[#allocation12_spill] sm:$0xff] %v2803_v40  ;;  %v2824_v48 = vld [vmem:[#allocation4 + $0x160] sm:$0xff] }
 0x1ac   :  { %1881 = vtanh.f32 %v662_v50  ;;  %v665_v52 = vmul.f32 %v662_v50, %v294_v38  ;;  %v653_v57 = vsel %vm652_vm7, %v1878_v10, %v649_v51  ;;  %v2779_v10 = vld [vmem:[#allocation4 + $0x220] sm:$0xff]  ;;  %3355 = vst [vmem:[#allocation13_spill] sm:$0xff] %v2806_v41  ;;  %v2830_v50 = vld [vmem:[#allocation4 + $0x108] sm:$0xff]  ;;  %v2833_v51 = vld [vmem:[#allocation4 + $0x110] sm:$0xff] }
 0x1ad   :  { %v658_v61 = vsel %vm655_vm8, %v657_v59, %v653_v57  ;;  %3356 = vst [vmem:[#allocation15_spill] sm:$0xff] %v2809_v42  ;;  %v2848_v57 = vld [vmem:[#allocation4 + $0xd0] sm:$0xff] }
 0x1ae   :  { %v2674_v56 = vadd.f32 %v667_v54, %v665_v52  ;;  %3357 = vst [vmem:[#allocation14_spill] sm:$0xff] %v2812_v43  ;;  %v2836_v52 = vld [vmem:[#allocation4 + $0x118] sm:$0xff]  ;;  %v2842_v54 = vld [vmem:[#allocation4 + $0xc0] sm:$0xff]  ;;  %v2851_v59 = vld [vmem:[#allocation4 + $0x70] sm:$0xff] }
 0x1af   :  { %3358 = vst [vmem:[#allocation16_spill] sm:$0xff] %v2815_v44 }
 0x1b0   :  { %3359 = vst [vmem:[#allocation17_spill] sm:$0xff] %v2818_v46 }
 0x1b1   :  { %3360 = vst [vmem:[#allocation19_spill] sm:$0xff] %v2821_v47 }
 0x1b2   :  { %v1882_v60 = vpop.eup %1881  ;;  %3361 = vst [vmem:[#allocation18_spill] sm:$0xff] %v2824_v48 }
 0x1b3   :  { %v664_v62 = vmul.f32 %v1882_v60, %v658_v61  ;;  %3363 = vst [vmem:[#allocation21_spill] sm:$0xff] %v2830_v50  ;;  %v2854_v60 = vld [vmem:[#allocation4 + $0x78] sm:$0xff]  ;;  %v2857_v61 = vld [vmem:[#allocation4 + $0x80] sm:$0xff] }
 0x1b4   :  { %3364 = vst [vmem:[#allocation23_spill] sm:$0xff] %v2833_v51 }
 0x1b5   :  { %v669_v63 = vmul.f32 %v664_v62, %v294_v38  ;;  %v2797_v38 = vld [vmem:[#allocation4 + $0x1e8] sm:$0xff]  ;;  %3365 = vst [vmem:[#allocation22_spill] sm:$0xff] %v2836_v52 }
 0x1b6   :  { %3352 = vst [vmem:[#allocation11_spill] sm:$0xff] %v2797_v38  ;;  %v2860_v62 = vld [vmem:[#allocation4 + $0x88] sm:$0xff] }
 0x1b7   :  { %v2677_v1 = vadd.f32 %v670_v0, %v669_v63  ;;  %3367 = vst [vmem:[#allocation25_spill] sm:$0xff] %v2842_v54  ;;  %v2863_v63 = vld [vmem:[#allocation4 + $0x28] sm:$0xff]  ;;  %v2866_v0 = vld [vmem:[#allocation4 + $0x30] sm:$0xff] }
 0x1b8   :  { %3369 = vst [vmem:[#allocation26_spill] sm:$0xff] %v2848_v57 }
 0x1b9   :  { %688 = vmatmul.f32.vlgmr.msrb.gmra.mxu0 %v2677_v1  ;;  %708 = vmatmul.f32.vlgmr.msrb.gmra.mxu1 %v2677_v1  ;;  %3370 = vst [vmem:[#allocation28_spill] sm:$0xff] %v2851_v59 }
 0x1ba   :  { %728 = vmatmul.f32.vlgmr.msrb.gmra.mxu2 %v2677_v1  ;;  %748 = vmatmul.f32.vlgmr.msrb.gmra.mxu3 %v2677_v1  ;;  %3371 = vst [vmem:[#allocation29_spill] sm:$0xff] %v2854_v60 }
 0x1bb   :  { %980 = vmatpush.msrb.mxu0 %v2683_v22  ;;  %1000 = vmatpush.msrb.mxu1 %v2686_v2  ;;  %3372 = vst [vmem:[#allocation30_spill] sm:$0xff] %v2857_v61 }
 0x1bc   :  { %1020 = vmatpush.msrb.mxu2 %v2689_v3  ;;  %1040 = vmatpush.msrb.mxu3 %v2692_v15  ;;  %3373 = vst [vmem:[#allocation31_spill] sm:$0xff] %v2860_v62 }
 0x1bd   :  { %981 = vmatpush.msrb.mxu0 %v2695_v4  ;;  %1001 = vmatpush.msrb.mxu1 %v2698_v5  ;;  %3374 = vst [vmem:[#allocation32_spill] sm:$0xff] %v2863_v63 }
 0x1be   :  { %1021 = vmatpush.msrb.mxu2 %v2701_v6  ;;  %1041 = vmatpush.msrb.mxu3 %v2704_v8  ;;  %3375 = vst [vmem:[#allocation33_spill] sm:$0xff] %v2866_v0 }
 0x1bf   :  { %982 = vmatpush.msrb.mxu0 %v2707_v9  ;;  %1002 = vmatpush.msrb.mxu1 %v2710_v11 }
 0x1c0   :  { %1022 = vmatpush.msrb.mxu2 %v2713_v17  ;;  %1042 = vmatpush.msrb.mxu3 %v2716_v25 }
 0x1c1   :  { %983 = vmatpush.msrb.mxu0 %v2719_v26  ;;  %1003 = vmatpush.msrb.mxu1 %v2722_v16 }
 0x1c2   :  { %1023 = vmatpush.msrb.mxu2 %v2725_v32  ;;  %1043 = vmatpush.msrb.mxu3 %v2728_v12 }
 0x1c3   :  { %984 = vmatpush.msrb.mxu0 %v2731_v23  ;;  %1004 = vmatpush.msrb.mxu1 %v2734_v31 }
 0x1c4   :  { %1024 = vmatpush.msrb.mxu2 %v2737_v24  ;;  %1044 = vmatpush.msrb.mxu3 %v2740_v13 }
 0x1c5   :  { %985 = vmatpush.msrb.mxu0 %v2743_v19  ;;  %1005 = vmatpush.msrb.mxu1 %v2746_v29 }
 0x1c6   :  { %1025 = vmatpush.msrb.mxu2 %v2749_v30  ;;  %1045 = vmatpush.msrb.mxu3 %v2752_v45 }
 0x1c7   :  { %986 = vmatpush.msrb.mxu0 %v2755_v58  ;;  %1006 = vmatpush.msrb.mxu1 %v2758_v21 }
 0x1c8   :  { %1026 = vmatpush.msrb.mxu2 %v2761_v14  ;;  %1046 = vmatpush.msrb.mxu3 %v2764_v7 }
 0x1c9   :  { %987 = vmatpush.msrb.mxu0 %v2767_v27  ;;  %1007 = vmatpush.msrb.mxu1 %v2770_v20 }
 0x1ca   :  { %1027 = vmatpush.msrb.mxu2 %v2773_v18  ;;  %1047 = vmatpush.msrb.mxu3 %v2776_v28 }
 0x1cb   :  { %988 = vmatpush.msrb.mxu0 %v2779_v10  ;;  %1008 = vmatpush.msrb.mxu1 %v2782_v33 }
 0x1cc   :  { %1028 = vmatpush.msrb.mxu2 %v2785_v34  ;;  %1048 = vmatpush.msrb.mxu3 %v2788_v35 }
 0x1cd   :  { %989 = vmatpush.msrb.mxu0 %v2791_v36  ;;  %1009 = vmatpush.msrb.mxu1 %v2794_v37 }
 0x1ce   :  { %1029 = vmatpush.msrb.mxu2 %v2797_v38  ;;  %1049 = vmatpush.msrb.mxu3 %v2800_v39 }
 0x1cf   :  { %990 = vmatpush.msrb.mxu0 %v2803_v40  ;;  %1010 = vmatpush.msrb.mxu1 %v2806_v41 }
 0x1d0   :  { %1030 = vmatpush.msrb.mxu2 %v2809_v42  ;;  %1050 = vmatpush.msrb.mxu3 %v2812_v43 }
 0x1d1   :  { %991 = vmatpush.msrb.mxu0 %v2815_v44  ;;  %1011 = vmatpush.msrb.mxu1 %v2818_v46 }
 0x1d2   :  { %1031 = vmatpush.msrb.mxu2 %v2821_v47  ;;  %1051 = vmatpush.msrb.mxu3 %v2824_v48 }
 0x1d3   :  { %992 = vmatpush.msrb.mxu0 %v2827_v49  ;;  %1012 = vmatpush.msrb.mxu1 %v2830_v50 }
 0x1d4   :  { %1032 = vmatpush.msrb.mxu2 %v2833_v51  ;;  %1052 = vmatpush.msrb.mxu3 %v2836_v52 }
 0x1d5   :  { %993 = vmatpush.msrb.mxu0 %v2839_v53  ;;  %1013 = vmatpush.msrb.mxu1 %v2842_v54  ;;  %v3379_v54 = vld [vmem:[#allocation41_spill] sm:$0xff] }
 0x1d6   :  { %1033 = vmatpush.msrb.mxu2 %v2845_v55  ;;  %1053 = vmatpush.msrb.mxu3 %v2848_v57  ;;  %v3378_v55 = vld [vmem:[#allocation40_spill] sm:$0xff] }
 0x1d7   :  { %994 = vmatpush.msrb.mxu0 %v2851_v59  ;;  %1014 = vmatpush.msrb.mxu1 %v2854_v60  ;;  %v2869_v59 = vld [vmem:[#allocation4 + $0x38] sm:$0xff]  ;;  %v2872_v60 = vld [vmem:[#allocation4 + $0x40] sm:$0xff] }
 0x1d8   :  { %1034 = vmatpush.msrb.mxu2 %v2857_v61  ;;  %1054 = vmatpush.msrb.mxu3 %v2860_v62  ;;  %3376 = vst [vmem:[#allocation34_spill] sm:$0xff] %v2869_v59 }
 0x1d9   :  { %995 = vmatpush.msrb.mxu0 %v2863_v63  ;;  %1015 = vmatpush.msrb.mxu1 %v2866_v0  ;;  %3377 = vst [vmem:[#allocation35_spill] sm:$0xff] %v2872_v60  ;;  %v3380_v0 = vld [vmem:[#allocation43_spill] sm:$0xff] }
 0x1da   :  { %1035 = vmatpush.msrb.mxu2 %v2869_v59  ;;  %1055 = vmatpush.msrb.mxu3 %v2872_v60 }
 0x236   :  { %v689_v61 = vpop.f32.mrf.mxu0  ;;  %v709_v57 = vpop.f32.mrf.mxu1 }
 0x237   :  { %v752_v62 = vadd.f32 %v689_v61, %v3378_v55  ;;  %v753_v53 = vadd.f32 %v709_v57, %v3379_v54  ;;  %v3381_v54 = vld [vmem:[#allocation42_spill] sm:$0xff] }
 0x239   :  { %v1825_v52 = vmul.f32 -1.442695, %v752_v62  ;;  %v1826_v63 = vmul.f32 -1.442695, %v753_v53 }
 0x23b   :  { %1883 = vpow2.f32 %v1825_v52 }
 0x23c   :  { %1885 = vpow2.f32 %v1826_v63 }
 0x23d   :  { %v749_v51 = vpop.f32.mrf.mxu3  ;;  %v729_v60 = vpop.f32.mrf.mxu2 }
 0x23e   :  { %v755_v50 = vadd.f32 %v749_v51, %v3380_v0  ;;  %v754_v57 = vadd.f32 %v729_v60, %v3381_v54 }
 0x240   :  { %v1827_v49 = vmul.f32 -1.442695, %v755_v50 }
 0x241   :  { %v1884_v48 = vpop.eup %1883 }
 0x242   :  { %v1886_v59 = vpop.eup %1885  ;;  %v759_v47 = vadd.f32 1.0, %v1884_v48  ;;  %1887 = vpow2.f32 %v1827_v49 }
 0x243   :  { %v778_v46 = vadd.f32 1.0, %v1886_v59 }
 0x244   :  { %1889 = vrcp.f32 %v759_v47  ;;  %v771_v50 = vand.u32 2147483648, %v759_v47  ;;  %v769_v49 = vand.u32 2147483647, %v759_v47  ;;  %vm765_vm11 = vweird.f32 %v759_v47 }
 0x245   :  { %1891 = vrcp.f32 %v778_v46  ;;  %v790_v0 = vand.u32 2147483648, %v778_v46  ;;  %v788_v43 = vand.u32 2147483647, %v778_v46  ;;  %vm784_vm12 = vweird.f32 %v778_v46 }
 0x246   :  { %v772_v60 = vor.u32 1.1754944e-38, %v771_v50  ;;  %vm770_vm15 = vcmp.eq.f32.partialorder %v769_v49, 8.507059e+37 }
 0x247   :  { %vm789_vm0 = vcmp.eq.f32.partialorder %v788_v43, 8.507059e+37 }
 0x248   :  { %v1888_v44 = vpop.eup %1887 }
 0x249   :  { %v798_v55 = vadd.f32 1.0, %v1888_v44 }
 0x24a   :  { %v1890_v61 = vpop.eup %1889 }
 0x24b   :  { %v1892_v53 = vpop.eup %1891  ;;  %v761_v52 = vmul.f32 %v1890_v61, %v759_v47  ;;  %1893 = vrcp.f32 %v798_v55  ;;  %vm766_vm9 = vweird.f32 %v1890_v61  ;;  %v810_v36 = vand.u32 2147483648, %v798_v55 }
 0x24c   :  { %v780_v62 = vmul.f32 %v1892_v53, %v778_v46  ;;  %1895 = vtanh.f32 %v754_v57  ;;  %vm785_vm10 = vweird.f32 %v1892_v53  ;;  %vm767_vm13 = vmor %vm765_vm11, %vm766_vm9  ;;  %v295_v57 = vld [vmem:[%s3167_s1 + $0x10] sm:$0xff]  ;;  %vm804_vm2 = vweird.f32 %v798_v55 }
 0x24d   :  { %v762_v63 = vsub.f32 1.0, %v761_v52  ;;  %vm786_vm14 = vmor %vm784_vm12, %vm785_vm10  ;;  %v791_v52 = vor.u32 1.1754944e-38, %v790_v0  ;;  %v808_v49 = vand.u32 2147483647, %v798_v55 }
 0x24e   :  { %v781_v51 = vsub.f32 1.0, %v780_v62 }
 0x24f   :  { %v763_v48 = vmul.f32 %v1890_v61, %v762_v63  ;;  %vm809_vm4 = vcmp.eq.f32.partialorder %v808_v49, 8.507059e+37  ;;  %v3400_v49 = vld [vmem:[#allocation27_spill] sm:$0xff] }
 0x250   :  { %v782_v59 = vmul.f32 %v1892_v53, %v781_v51 }
 0x251   :  { %v1894_v42 = vpop.eup %1893  ;;  %v764_v44 = vadd.f32 %v1890_v61, %v763_v48 }
 0x252   :  { %v783_v54 = vadd.f32 %v1892_v53, %v782_v59  ;;  %v800_v41 = vmul.f32 %v1894_v42, %v798_v55  ;;  %v1896_v63 = vpop.eup %1895  ;;  %v820_v59 = vsub.f32 1.0, %v295_v57  ;;  %vm805_vm1 = vweird.f32 %v1894_v42  ;;  %v3388_v55 = vld [vmem:[#allocation15_spill] sm:$0xff] }
 0x253   :  { %v768_v62 = vsel %vm767_vm13, %v1890_v61, %v764_v44  ;;  %vm806_vm3 = vmor %vm804_vm2, %vm805_vm1 }
 0x254   :  { %v773_v51 = vsel %vm770_vm15, %v772_v60, %v768_v62  ;;  %v787_v40 = vsel %vm786_vm14, %v1892_v53, %v783_v54  ;;  %v801_v39 = vsub.f32 1.0, %v800_v41  ;;  %v821_v61 = vmul.f32 %v820_v59, %v2674_v56  ;;  %v3390_v62 = vld [vmem:[#allocation16_spill] sm:$0xff] }
 0x255   :  { %v792_v48 = vsel %vm789_vm0, %v791_v52, %v787_v40  ;;  %v815_v47 = vmul.f32 %v1896_v63, %v773_v51  ;;  %v811_v40 = vor.u32 1.1754944e-38, %v810_v36  ;;  %v824_v54 = vmul.f32 %v820_v59, %v2677_v1  ;;  %v3383_v1 = vld [vmem:[#allocation9_spill] sm:$0xff]  ;;  %v3384_v36 = vld [vmem:[#allocation11_spill] sm:$0xff]  ;;  %v3397_v59 = vld [vmem:[#allocation22_spill] sm:$0xff] }
 0x256   :  { %v814_v46 = vmul.f32 %v792_v48, %v2674_v56  ;;  %v802_v50 = vmul.f32 %v1894_v42, %v801_v39  ;;  %v3382_v56 = vld [vmem:[#allocation8_spill] sm:$0xff]  ;;  %v3391_v63 = vld [vmem:[#allocation17_spill] sm:$0xff]  ;;  %v3392_v51 = vld [vmem:[#allocation19_spill] sm:$0xff] }
 0x257   :  { %v3393_v48 = vld [vmem:[#allocation18_spill] sm:$0xff] }
 0x258   :  { %v816_v38 = vadd.f32 %v815_v47, %v814_v46  ;;  %v803_v37 = vadd.f32 %v1894_v42, %v802_v50  ;;  %v3394_v47 = vld [vmem:[#allocation20_spill] sm:$0xff]  ;;  %v3395_v46 = vld [vmem:[#allocation21_spill] sm:$0xff]  ;;  %v3396_v50 = vld [vmem:[#allocation23_spill] sm:$0xff] }
 0x25a   :  { %1897 = vtanh.f32 %v816_v38  ;;  %v819_v0 = vmul.f32 %v816_v38, %v295_v57  ;;  %v807_v41 = vsel %vm806_vm3, %v1894_v42, %v803_v37  ;;  %v3385_v37 = vld [vmem:[#allocation10_spill] sm:$0xff]  ;;  %v3386_v38 = vld [vmem:[#allocation12_spill] sm:$0xff]  ;;  %v3387_v42 = vld [vmem:[#allocation13_spill] sm:$0xff] }
 0x25b   :  { %v812_v44 = vsel %vm809_vm4, %v811_v40, %v807_v41  ;;  %v3401_v41 = vld [vmem:[#allocation26_spill] sm:$0xff]  ;;  %v3402_v40 = vld [vmem:[#allocation28_spill] sm:$0xff] }
 0x25c   :  { %v2884_v53 = vadd.f32 %v821_v61, %v819_v0  ;;  %v3398_v0 = vld [vmem:[#allocation24_spill] sm:$0xff]  ;;  %v3399_v61 = vld [vmem:[#allocation25_spill] sm:$0xff] }
 0x260   :  { %v1898_v43 = vpop.eup %1897 }
 0x261   :  { %v818_v39 = vmul.f32 %v1898_v43, %v812_v44  ;;  %v3403_v43 = vld [vmem:[#allocation29_spill] sm:$0xff]  ;;  %v3404_v44 = vld [vmem:[#allocation30_spill] sm:$0xff] }
 0x263   :  { %v823_v60 = vmul.f32 %v818_v39, %v295_v57  ;;  %v3389_v57 = vld [vmem:[#allocation14_spill] sm:$0xff]  ;;  %v3405_v39 = vld [vmem:[#allocation31_spill] sm:$0xff] }
 0x265   :  { %v2887_v52 = vadd.f32 %v824_v54, %v823_v60  ;;  %v3406_v60 = vld [vmem:[#allocation32_spill] sm:$0xff]  ;;  %v3407_v54 = vld [vmem:[#allocation33_spill] sm:$0xff] }
 0x267   :  { %842 = vmatmul.f32.vlgmr.msra.gmra.mxu0 %v2887_v52  ;;  %862 = vmatmul.f32.vlgmr.msra.gmra.mxu1 %v2887_v52 }
 0x268   :  { %882 = vmatmul.f32.vlgmr.msra.gmra.mxu2 %v2887_v52  ;;  %902 = vmatmul.f32.vlgmr.msra.gmra.mxu3 %v2887_v52 }
 0x269   :  { %1134 = vmatpush.msra.mxu0 %v2683_v22  ;;  %1154 = vmatpush.msra.mxu1 %v2686_v2 }
 0x26a   :  { %1174 = vmatpush.msra.mxu2 %v2689_v3  ;;  %1194 = vmatpush.msra.mxu3 %v2692_v15 }
 0x26b   :  { %1135 = vmatpush.msra.mxu0 %v2695_v4  ;;  %1155 = vmatpush.msra.mxu1 %v2698_v5 }
 0x26c   :  { %1175 = vmatpush.msra.mxu2 %v2701_v6  ;;  %1195 = vmatpush.msra.mxu3 %v2704_v8 }
 0x26d   :  { %1136 = vmatpush.msra.mxu0 %v2707_v9  ;;  %1156 = vmatpush.msra.mxu1 %v2710_v11 }
 0x26e   :  { %1176 = vmatpush.msra.mxu2 %v2713_v17  ;;  %1196 = vmatpush.msra.mxu3 %v2716_v25 }
 0x26f   :  { %1137 = vmatpush.msra.mxu0 %v2719_v26  ;;  %1157 = vmatpush.msra.mxu1 %v2722_v16 }
 0x270   :  { %1177 = vmatpush.msra.mxu2 %v2725_v32  ;;  %1197 = vmatpush.msra.mxu3 %v2728_v12 }
 0x271   :  { %1138 = vmatpush.msra.mxu0 %v2731_v23  ;;  %1158 = vmatpush.msra.mxu1 %v2734_v31 }
 0x272   :  { %1178 = vmatpush.msra.mxu2 %v2737_v24  ;;  %1198 = vmatpush.msra.mxu3 %v2740_v13 }
 0x273   :  { %1139 = vmatpush.msra.mxu0 %v2743_v19  ;;  %1159 = vmatpush.msra.mxu1 %v2746_v29 }
 0x274   :  { %1179 = vmatpush.msra.mxu2 %v2749_v30  ;;  %1199 = vmatpush.msra.mxu3 %v2752_v45 }
 0x275   :  { %1140 = vmatpush.msra.mxu0 %v2755_v58  ;;  %1160 = vmatpush.msra.mxu1 %v2758_v21 }
 0x276   :  { %1180 = vmatpush.msra.mxu2 %v2761_v14  ;;  %1200 = vmatpush.msra.mxu3 %v2764_v7 }
 0x277   :  { %1141 = vmatpush.msra.mxu0 %v2767_v27  ;;  %1161 = vmatpush.msra.mxu1 %v2770_v20 }
 0x278   :  { %1181 = vmatpush.msra.mxu2 %v2773_v18  ;;  %1201 = vmatpush.msra.mxu3 %v2776_v28 }
 0x279   :  { %1142 = vmatpush.msra.mxu0 %v2779_v10  ;;  %1162 = vmatpush.msra.mxu1 %v2782_v33 }
 0x27a   :  { %1182 = vmatpush.msra.mxu2 %v2785_v34  ;;  %1202 = vmatpush.msra.mxu3 %v2788_v35 }
 0x27b   :  { %1143 = vmatpush.msra.mxu0 %v3382_v56  ;;  %1163 = vmatpush.msra.mxu1 %v3383_v1 }
 0x27c   :  { %1183 = vmatpush.msra.mxu2 %v3384_v36  ;;  %1203 = vmatpush.msra.mxu3 %v3385_v37 }
 0x27d   :  { %1144 = vmatpush.msra.mxu0 %v3386_v38  ;;  %1164 = vmatpush.msra.mxu1 %v3387_v42 }
 0x27e   :  { %1184 = vmatpush.msra.mxu2 %v3388_v55  ;;  %1204 = vmatpush.msra.mxu3 %v3389_v57 }
 0x27f   :  { %1145 = vmatpush.msra.mxu0 %v3390_v62  ;;  %1165 = vmatpush.msra.mxu1 %v3391_v63 }
 0x280   :  { %1185 = vmatpush.msra.mxu2 %v3392_v51  ;;  %1205 = vmatpush.msra.mxu3 %v3393_v48 }
 0x281   :  { %1146 = vmatpush.msra.mxu0 %v3394_v47  ;;  %1166 = vmatpush.msra.mxu1 %v3395_v46  ;;  %v3411_v46 = vld [vmem:[#allocation45_spill] sm:$0xff] }
 0x282   :  { %1186 = vmatpush.msra.mxu2 %v3396_v50  ;;  %1206 = vmatpush.msra.mxu3 %v3397_v59  ;;  %v3408_v59 = vld [vmem:[#allocation34_spill] sm:$0xff]  ;;  %v3410_v50 = vld [vmem:[#allocation44_spill] sm:$0xff] }
 0x283   :  { %1147 = vmatpush.msra.mxu0 %v3398_v0  ;;  %1167 = vmatpush.msra.mxu1 %v3399_v61  ;;  %v3409_v0 = vld [vmem:[#allocation35_spill] sm:$0xff] }
 0x284   :  { %1187 = vmatpush.msra.mxu2 %v3400_v49  ;;  %1207 = vmatpush.msra.mxu3 %v3401_v41 }
 0x285   :  { %1148 = vmatpush.msra.mxu0 %v3402_v40  ;;  %1168 = vmatpush.msra.mxu1 %v3403_v43 }
 0x286   :  { %1188 = vmatpush.msra.mxu2 %v3404_v44  ;;  %1208 = vmatpush.msra.mxu3 %v3405_v39  ;;  %v3412_v39 = vld [vmem:[#allocation47_spill] sm:$0xff] }
 0x287   :  { %1149 = vmatpush.msra.mxu0 %v3406_v60  ;;  %1169 = vmatpush.msra.mxu1 %v3407_v54 }
 0x288   :  { %1189 = vmatpush.msra.mxu2 %v3408_v59  ;;  %1209 = vmatpush.msra.mxu3 %v3409_v0 }
 0x2e4   :  { %v843_v61 = vpop.f32.mrf.mxu0  ;;  %v863_v49 = vpop.f32.mrf.mxu1 }
 0x2e5   :  { %v906_v41 = vadd.f32 %v843_v61, %v3410_v50  ;;  %v907_v40 = vadd.f32 %v863_v49, %v3411_v46  ;;  %v3413_v46 = vld [vmem:[#allocation46_spill] sm:$0xff] }
 0x2e7   :  { %v1828_v47 = vmul.f32 -1.442695, %v906_v41  ;;  %v1829_v43 = vmul.f32 -1.442695, %v907_v40 }
 0x2e9   :  { %1899 = vpow2.f32 %v1828_v47 }
 0x2ea   :  { %1901 = vpow2.f32 %v1829_v43 }
 0x2eb   :  { %v903_v44 = vpop.f32.mrf.mxu3  ;;  %v883_v0 = vpop.f32.mrf.mxu2 }
 0x2ec   :  { %v909_v48 = vadd.f32 %v903_v44, %v3412_v39  ;;  %v908_v49 = vadd.f32 %v883_v0, %v3413_v46 }
 0x2ee   :  { %v1830_v60 = vmul.f32 -1.442695, %v909_v48 }
 0x2ef   :  { %v1900_v51 = vpop.eup %1899 }
 0x2f0   :  { %v1902_v54 = vpop.eup %1901  ;;  %v913_v63 = vadd.f32 1.0, %v1900_v51  ;;  %1903 = vpow2.f32 %v1830_v60 }
 0x2f1   :  { %v932_v59 = vadd.f32 1.0, %v1902_v54 }
 0x2f2   :  { %1905 = vrcp.f32 %v913_v63  ;;  %v925_v48 = vand.u32 2147483648, %v913_v63  ;;  %v923_v60 = vand.u32 2147483647, %v913_v63  ;;  %vm919_vm7 = vweird.f32 %v913_v63 }
 0x2f3   :  { %1907 = vrcp.f32 %v932_v59  ;;  %v944_v39 = vand.u32 2147483648, %v932_v59  ;;  %v942_v57 = vand.u32 2147483647, %v932_v59  ;;  %vm938_vm8 = vweird.f32 %v932_v59 }
 0x2f4   :  { %v926_v0 = vor.u32 1.1754944e-38, %v925_v48  ;;  %vm924_vm11 = vcmp.eq.f32.partialorder %v923_v60, 8.507059e+37 }
 0x2f5   :  { %vm943_vm12 = vcmp.eq.f32.partialorder %v942_v57, 8.507059e+37 }
 0x2f6   :  { %v1904_v62 = vpop.eup %1903 }
 0x2f7   :  { %v952_v50 = vadd.f32 1.0, %v1904_v62 }
 0x2f8   :  { %v1906_v61 = vpop.eup %1905 }
 0x2f9   :  { %v1908_v41 = vpop.eup %1907  ;;  %v915_v47 = vmul.f32 %v1906_v61, %v913_v63  ;;  %1909 = vrcp.f32 %v952_v50  ;;  %vm920_vm5 = vweird.f32 %v1906_v61  ;;  %v964_v56 = vand.u32 2147483648, %v952_v50 }
 0x2fa   :  { %v934_v40 = vmul.f32 %v1908_v41, %v932_v59  ;;  %1911 = vtanh.f32 %v908_v49  ;;  %vm939_vm6 = vweird.f32 %v1908_v41  ;;  %vm921_vm9 = vmor %vm919_vm7, %vm920_vm5  ;;  %v296_v49 = vld [vmem:[%s3167_s1 + $0x18] sm:$0xff]  ;;  %vm958_vm14 = vweird.f32 %v952_v50 }
 0x2fb   :  { %v916_v43 = vsub.f32 1.0, %v915_v47  ;;  %vm940_vm10 = vmor %vm938_vm8, %vm939_vm6  ;;  %v945_v47 = vor.u32 1.1754944e-38, %v944_v39  ;;  %v962_v60 = vand.u32 2147483647, %v952_v50 }
 0x2fc   :  { %v935_v44 = vsub.f32 1.0, %v934_v40 }
 0x2fd   :  { %v917_v51 = vmul.f32 %v1906_v61, %v916_v43  ;;  %vm963_vm0 = vcmp.eq.f32.partialorder %v962_v60, 8.507059e+37  ;;  %v3441_v60 = vld [vmem:[#allocation35_spill] sm:$0xff] }
 0x2fe   :  { %v936_v54 = vmul.f32 %v1908_v41, %v935_v44 }
 0x2ff   :  { %v1910_v55 = vpop.eup %1909  ;;  %v918_v62 = vadd.f32 %v1906_v61, %v917_v51 }
 0x300   :  { %v937_v46 = vadd.f32 %v1908_v41, %v936_v54  ;;  %v954_v42 = vmul.f32 %v1910_v55, %v952_v50  ;;  %v1912_v43 = vpop.eup %1911  ;;  %v974_v54 = vsub.f32 1.0, %v296_v49  ;;  %vm959_vm13 = vweird.f32 %v1910_v55  ;;  %v3429_v50 = vld [vmem:[#allocation22_spill] sm:$0xff] }
 0x301   :  { %v922_v40 = vsel %vm921_vm9, %v1906_v61, %v918_v62  ;;  %vm960_vm15 = vmor %vm958_vm14, %vm959_vm13 }
 0x302   :  { %v927_v44 = vsel %vm924_vm11, %v926_v0, %v922_v40  ;;  %v941_v38 = vsel %vm940_vm10, %v1908_v41, %v937_v46  ;;  %v955_v37 = vsub.f32 1.0, %v954_v42  ;;  %v975_v61 = vmul.f32 %v974_v54, %v2884_v53  ;;  %v3431_v40 = vld [vmem:[#allocation25_spill] sm:$0xff] }
 0x303   :  { %v946_v51 = vsel %vm943_vm12, %v945_v47, %v941_v38  ;;  %v969_v63 = vmul.f32 %v1912_v43, %v927_v44  ;;  %v965_v38 = vor.u32 1.1754944e-38, %v964_v56  ;;  %v978_v46 = vmul.f32 %v974_v54, %v2887_v52  ;;  %v3423_v52 = vld [vmem:[#allocation17_spill] sm:$0xff]  ;;  %v3425_v56 = vld [vmem:[#allocation18_spill] sm:$0xff]  ;;  %v3432_v43 = vld [vmem:[#allocation27_spill] sm:$0xff] }
 0x304   :  { %v968_v59 = vmul.f32 %v946_v51, %v2884_v53  ;;  %v956_v48 = vmul.f32 %v1910_v55, %v955_v37  ;;  %v3422_v53 = vld [vmem:[#allocation16_spill] sm:$0xff]  ;;  %v3433_v44 = vld [vmem:[#allocation26_spill] sm:$0xff] }
 0x305   :  { %v3434_v51 = vld [vmem:[#allocation28_spill] sm:$0xff] }
 0x306   :  { %v970_v36 = vadd.f32 %v969_v63, %v968_v59  ;;  %v957_v1 = vadd.f32 %v1910_v55, %v956_v48  ;;  %v3435_v63 = vld [vmem:[#allocation29_spill] sm:$0xff]  ;;  %v3436_v59 = vld [vmem:[#allocation30_spill] sm:$0xff]  ;;  %v3437_v48 = vld [vmem:[#allocation31_spill] sm:$0xff] }
 0x307   :  { %v3438_v54 = vld [vmem:[#allocation32_spill] sm:$0xff] }
 0x308   :  { %1913 = vtanh.f32 %v970_v36  ;;  %v973_v39 = vmul.f32 %v970_v36, %v296_v49  ;;  %v961_v42 = vsel %vm960_vm15, %v1910_v55, %v957_v1  ;;  %v3426_v1 = vld [vmem:[#allocation20_spill] sm:$0xff]  ;;  %v3427_v36 = vld [vmem:[#allocation21_spill] sm:$0xff]  ;;  %v3428_v55 = vld [vmem:[#allocation23_spill] sm:$0xff] }
 0x309   :  { %v966_v62 = vsel %vm963_vm0, %v965_v38, %v961_v42 }
 0x30a   :  { %v2966_v41 = vadd.f32 %v975_v61, %v973_v39  ;;  %v3439_v39 = vld [vmem:[#allocation33_spill] sm:$0xff]  ;;  %v3440_v61 = vld [vmem:[#allocation34_spill] sm:$0xff] }
 0x30e   :  { %v1914_v57 = vpop.eup %1913 }
 0x30f   :  { %v972_v37 = vmul.f32 %v1914_v57, %v966_v62  ;;  %v3442_v57 = vld [vmem:[#allocation48_spill] sm:$0xff] }
 0x311   :  { %v977_v0 = vmul.f32 %v972_v37, %v296_v49  ;;  %v3430_v49 = vld [vmem:[#allocation24_spill] sm:$0xff]  ;;  %v3443_v37 = vld [vmem:[#allocation49_spill] sm:$0xff] }
 0x313   :  { %v2969_v47 = vadd.f32 %v978_v46, %v977_v0 }
 0x315   :  { %996 = vmatmul.f32.vlgmr.msrb.gmra.mxu0 %v2969_v47  ;;  %1016 = vmatmul.f32.vlgmr.msrb.gmra.mxu1 %v2969_v47 }
 0x316   :  { %1036 = vmatmul.f32.vlgmr.msrb.gmra.mxu2 %v2969_v47  ;;  %1056 = vmatmul.f32.vlgmr.msrb.gmra.mxu3 %v2969_v47 }
 0x317   :  { %1288 = vmatpush.msrb.mxu0 %v2683_v22  ;;  %1308 = vmatpush.msrb.mxu1 %v2686_v2 }
 0x318   :  { %1328 = vmatpush.msrb.mxu2 %v2689_v3  ;;  %1348 = vmatpush.msrb.mxu3 %v2692_v15  ;;  %v3414_v15 = vld [vmem:[#allocation8_spill] sm:$0xff] }
 0x319   :  { %1289 = vmatpush.msrb.mxu0 %v2695_v4  ;;  %1309 = vmatpush.msrb.mxu1 %v2698_v5 }
 0x31a   :  { %1329 = vmatpush.msrb.mxu2 %v2701_v6  ;;  %1349 = vmatpush.msrb.mxu3 %v2704_v8  ;;  %v3415_v8 = vld [vmem:[#allocation9_spill] sm:$0xff] }
 0x31b   :  { %1290 = vmatpush.msrb.mxu0 %v2707_v9  ;;  %1310 = vmatpush.msrb.mxu1 %v2710_v11 }
 0x31c   :  { %1330 = vmatpush.msrb.mxu2 %v2713_v17  ;;  %1350 = vmatpush.msrb.mxu3 %v2716_v25  ;;  %v3416_v25 = vld [vmem:[#allocation11_spill] sm:$0xff] }
 0x31d   :  { %1291 = vmatpush.msrb.mxu0 %v2719_v26  ;;  %1311 = vmatpush.msrb.mxu1 %v2722_v16 }
 0x31e   :  { %1331 = vmatpush.msrb.mxu2 %v2725_v32  ;;  %1351 = vmatpush.msrb.mxu3 %v2728_v12  ;;  %v3417_v12 = vld [vmem:[#allocation10_spill] sm:$0xff] }
 0x31f   :  { %1292 = vmatpush.msrb.mxu0 %v2731_v23  ;;  %1312 = vmatpush.msrb.mxu1 %v2734_v31 }
 0x320   :  { %1332 = vmatpush.msrb.mxu2 %v2737_v24  ;;  %1352 = vmatpush.msrb.mxu3 %v2740_v13  ;;  %v3418_v13 = vld [vmem:[#allocation12_spill] sm:$0xff] }
 0x321   :  { %1293 = vmatpush.msrb.mxu0 %v2743_v19  ;;  %1313 = vmatpush.msrb.mxu1 %v2746_v29 }
 0x322   :  { %1333 = vmatpush.msrb.mxu2 %v2749_v30  ;;  %1353 = vmatpush.msrb.mxu3 %v2752_v45  ;;  %v3419_v45 = vld [vmem:[#allocation13_spill] sm:$0xff] }
 0x323   :  { %1294 = vmatpush.msrb.mxu0 %v2755_v58  ;;  %1314 = vmatpush.msrb.mxu1 %v2758_v21 }
 0x324   :  { %1334 = vmatpush.msrb.mxu2 %v2761_v14  ;;  %1354 = vmatpush.msrb.mxu3 %v2764_v7  ;;  %v3420_v7 = vld [vmem:[#allocation15_spill] sm:$0xff] }
 0x325   :  { %1295 = vmatpush.msrb.mxu0 %v2767_v27  ;;  %1315 = vmatpush.msrb.mxu1 %v2770_v20 }
 0x326   :  { %1335 = vmatpush.msrb.mxu2 %v2773_v18  ;;  %1355 = vmatpush.msrb.mxu3 %v2776_v28  ;;  %v3421_v28 = vld [vmem:[#allocation14_spill] sm:$0xff] }
 0x327   :  { %1296 = vmatpush.msrb.mxu0 %v2779_v10  ;;  %1316 = vmatpush.msrb.mxu1 %v2782_v33 }
 0x328   :  { %1336 = vmatpush.msrb.mxu2 %v2785_v34  ;;  %1356 = vmatpush.msrb.mxu3 %v2788_v35  ;;  %v3424_v35 = vld [vmem:[#allocation19_spill] sm:$0xff] }
 0x329   :  { %1297 = vmatpush.msrb.mxu0 %v3414_v15  ;;  %1317 = vmatpush.msrb.mxu1 %v3415_v8 }
 0x32a   :  { %1337 = vmatpush.msrb.mxu2 %v3416_v25  ;;  %1357 = vmatpush.msrb.mxu3 %v3417_v12 }
 0x32b   :  { %1298 = vmatpush.msrb.mxu0 %v3418_v13  ;;  %1318 = vmatpush.msrb.mxu1 %v3419_v45 }
 0x32c   :  { %1338 = vmatpush.msrb.mxu2 %v3420_v7  ;;  %1358 = vmatpush.msrb.mxu3 %v3421_v28 }
 0x32d   :  { %1299 = vmatpush.msrb.mxu0 %v3422_v53  ;;  %1319 = vmatpush.msrb.mxu1 %v3423_v52 }
 0x32e   :  { %1339 = vmatpush.msrb.mxu2 %v3424_v35  ;;  %1359 = vmatpush.msrb.mxu3 %v3425_v56  ;;  %v3444_v56 = vld [vmem:[#allocation51_spill] sm:$0xff] }
 0x32f   :  { %1300 = vmatpush.msrb.mxu0 %v3426_v1  ;;  %1320 = vmatpush.msrb.mxu1 %v3427_v36 }
 0x330   :  { %1340 = vmatpush.msrb.mxu2 %v3428_v55  ;;  %1360 = vmatpush.msrb.mxu3 %v3429_v50 }
 0x331   :  { %1301 = vmatpush.msrb.mxu0 %v3430_v49  ;;  %1321 = vmatpush.msrb.mxu1 %v3431_v40 }
 0x332   :  { %1341 = vmatpush.msrb.mxu2 %v3432_v43  ;;  %1361 = vmatpush.msrb.mxu3 %v3433_v44 }
 0x333   :  { %1302 = vmatpush.msrb.mxu0 %v3434_v51  ;;  %1322 = vmatpush.msrb.mxu1 %v3435_v63 }
 0x334   :  { %1342 = vmatpush.msrb.mxu2 %v3436_v59  ;;  %1362 = vmatpush.msrb.mxu3 %v3437_v48 }
 0x335   :  { %1303 = vmatpush.msrb.mxu0 %v3438_v54  ;;  %1323 = vmatpush.msrb.mxu1 %v3439_v39 }
 0x336   :  { %1343 = vmatpush.msrb.mxu2 %v3440_v61  ;;  %1363 = vmatpush.msrb.mxu3 %v3441_v60 }
 0x392   :  { %v997_v42 = vpop.f32.mrf.mxu0  ;;  %v1017_v38 = vpop.f32.mrf.mxu1 }
 0x393   :  { %v1060_v62 = vadd.f32 %v997_v42, %v3442_v57  ;;  %v1061_v0 = vadd.f32 %v1017_v38, %v3443_v37  ;;  %v3445_v38 = vld [vmem:[#allocation50_spill] sm:$0xff] }
 0x395   :  { %v1831_v46 = vmul.f32 -1.442695, %v1060_v62  ;;  %v1832_v12 = vmul.f32 -1.442695, %v1061_v0 }
 0x397   :  { %1915 = vpow2.f32 %v1831_v46 }
 0x398   :  { %1917 = vpow2.f32 %v1832_v12 }
 0x399   :  { %v1057_v28 = vpop.f32.mrf.mxu3  ;;  %v1037_v60 = vpop.f32.mrf.mxu2 }
 0x39a   :  { %v1063_v50 = vadd.f32 %v1057_v28, %v3444_v56  ;;  %v1062_v62 = vadd.f32 %v1037_v60, %v3445_v38 }
 0x39c   :  { %v1833_v44 = vmul.f32 -1.442695, %v1063_v50 }
 0x39d   :  { %v1916_v48 = vpop.eup %1915 }
 0x39e   :  { %v1918_v39 = vpop.eup %1917  ;;  %v1067_v54 = vadd.f32 1.0, %v1916_v48  ;;  %1919 = vpow2.f32 %v1833_v44 }
 0x39f   :  { %v1086_v61 = vadd.f32 1.0, %v1918_v39 }
 0x3a0   :  { %1921 = vrcp.f32 %v1067_v54  ;;  %v1079_v56 = vand.u32 2147483648, %v1067_v54  ;;  %v1077_v39 = vand.u32 2147483647, %v1067_v54  ;;  %vm1073_vm3 = vweird.f32 %v1067_v54 }
 0x3a1   :  { %1923 = vrcp.f32 %v1086_v61  ;;  %v1098_v50 = vand.u32 2147483648, %v1086_v61  ;;  %v1096_v63 = vand.u32 2147483647, %v1086_v61  ;;  %vm1092_vm4 = vweird.f32 %v1086_v61 }
 0x3a2   :  { %v1080_v60 = vor.u32 1.1754944e-38, %v1079_v56  ;;  %vm1078_vm7 = vcmp.eq.f32.partialorder %v1077_v39, 8.507059e+37 }
 0x3a3   :  { %vm1097_vm8 = vcmp.eq.f32.partialorder %v1096_v63, 8.507059e+37 }
 0x3a4   :  { %v1920_v59 = vpop.eup %1919 }
 0x3a5   :  { %v1106_v42 = vadd.f32 1.0, %v1920_v59 }
 0x3a6   :  { %v1922_v57 = vpop.eup %1921 }
 0x3a7   :  { %v1924_v37 = vpop.eup %1923  ;;  %v1069_v0 = vmul.f32 %v1922_v57, %v1067_v54  ;;  %1925 = vrcp.f32 %v1106_v42  ;;  %vm1074_vm1 = vweird.f32 %v1922_v57  ;;  %v1118_v1 = vand.u32 2147483648, %v1106_v42 }
 0x3a8   :  { %v1088_v46 = vmul.f32 %v1924_v37, %v1086_v61  ;;  %1927 = vtanh.f32 %v1062_v62  ;;  %vm1093_vm2 = vweird.f32 %v1924_v37  ;;  %vm1075_vm5 = vmor %vm1073_vm3, %vm1074_vm1  ;;  %v297_v62 = vld [vmem:[%s3167_s1 + $0x20] sm:$0xff]  ;;  %vm1112_vm10 = vweird.f32 %v1106_v42 }
 0x3a9   :  { %v1070_v12 = vsub.f32 1.0, %v1069_v0  ;;  %vm1094_vm6 = vmor %vm1092_vm4, %vm1093_vm2  ;;  %v1099_v0 = vor.u32 1.1754944e-38, %v1098_v50  ;;  %v1116_v39 = vand.u32 2147483647, %v1106_v42 }
 0x3aa   :  { %v1089_v28 = vsub.f32 1.0, %v1088_v46 }
 0x3ab   :  { %v1071_v48 = vmul.f32 %v1922_v57, %v1070_v12  ;;  %vm1117_vm12 = vcmp.eq.f32.partialorder %v1116_v39, 8.507059e+37 }
 0x3ac   :  { %v1090_v44 = vmul.f32 %v1924_v37, %v1089_v28 }
 0x3ad   :  { %v1926_v51 = vpop.eup %1925  ;;  %v1072_v59 = vadd.f32 %v1922_v57, %v1071_v48 }
 0x3ae   :  { %v1091_v38 = vadd.f32 %v1924_v37, %v1090_v44  ;;  %v1108_v43 = vmul.f32 %v1926_v51, %v1106_v42  ;;  %v1928_v12 = vpop.eup %1927  ;;  %v1128_v44 = vsub.f32 1.0, %v297_v62  ;;  %vm1113_vm9 = vweird.f32 %v1926_v51 }
 0x3af   :  { %v1076_v46 = vsel %vm1075_vm5, %v1922_v57, %v1072_v59  ;;  %vm1114_vm11 = vmor %vm1112_vm10, %vm1113_vm9 }
 0x3b0   :  { %v1081_v28 = vsel %vm1078_vm7, %v1080_v60, %v1076_v46  ;;  %v1095_v40 = vsel %vm1094_vm6, %v1924_v37, %v1091_v38  ;;  %v1109_v49 = vsub.f32 1.0, %v1108_v43  ;;  %v1129_v57 = vmul.f32 %v1128_v44, %v2966_v41 }
 0x3b1   :  { %v1100_v48 = vsel %vm1097_vm8, %v1099_v0, %v1095_v40  ;;  %v1123_v54 = vmul.f32 %v1928_v12, %v1081_v28  ;;  %v1119_v40 = vor.u32 1.1754944e-38, %v1118_v1  ;;  %v1132_v38 = vmul.f32 %v1128_v44, %v2969_v47  ;;  %v298_v44 = vld [vmem:[%s3167_s1 + $0x28] sm:$0xff] }
 0x3b2   :  { %v1122_v61 = vmul.f32 %v1100_v48, %v2966_v41  ;;  %v1110_v56 = vmul.f32 %v1926_v51, %v1109_v49 }
 0x3b4   :  { %v1124_v55 = vadd.f32 %v1123_v54, %v1122_v61  ;;  %v1111_v36 = vadd.f32 %v1926_v51, %v1110_v56 }
 0x3b6   :  { %1929 = vtanh.f32 %v1124_v55  ;;  %v1127_v50 = vmul.f32 %v1124_v55, %v297_v62  ;;  %v1115_v43 = vsel %vm1114_vm11, %v1926_v51, %v1111_v36 }
 0x3b7   :  { %v1120_v59 = vsel %vm1117_vm12, %v1119_v40, %v1115_v43 }
 0x3b8   :  { %v3048_v37 = vadd.f32 %v1129_v57, %v1127_v50 }
 0x3bc   :  { %v1930_v63 = vpop.eup %1929 }
 0x3bd   :  { %v1126_v49 = vmul.f32 %v1930_v63, %v1120_v59 }
 0x3bf   :  { %v1131_v60 = vmul.f32 %v1126_v49, %v297_v62 }
 0x3c1   :  { %v3051_v0 = vadd.f32 %v1132_v38, %v1131_v60  ;;  %v1282_v38 = vsub.f32 1.0, %v298_v44 }
 0x3c3   :  { %1150 = vmatmul.f32.vlgmr.msra.gmra.mxu0 %v3051_v0  ;;  %1170 = vmatmul.f32.vlgmr.msra.gmra.mxu1 %v3051_v0 }
 0x3c4   :  { %1190 = vmatmul.f32.vlgmr.msra.gmra.mxu2 %v3051_v0  ;;  %1210 = vmatmul.f32.vlgmr.msra.gmra.mxu3 %v3051_v0 }
 0x3c5   :  { %1442 = vmatpush.msra.mxu0 %v2683_v22  ;;  %1462 = vmatpush.msra.mxu1 %v2686_v2  ;;  %v3446_v22 = vld [vmem:[#allocation20_spill] sm:$0xff]  ;;  %v3447_v2 = vld [vmem:[#allocation21_spill] sm:$0xff] }
 0x3c6   :  { %1482 = vmatpush.msra.mxu2 %v2689_v3  ;;  %v3448_v3 = vld [vmem:[#allocation23_spill] sm:$0xff] }
 0x3c7   :  { %1443 = vmatpush.msra.mxu0 %v2695_v4  ;;  %1463 = vmatpush.msra.mxu1 %v2698_v5  ;;  %v3449_v4 = vld [vmem:[#allocation24_spill] sm:$0xff]  ;;  %v3450_v5 = vld [vmem:[#allocation25_spill] sm:$0xff] }
 0x3c8   :  { %1483 = vmatpush.msra.mxu2 %v2701_v6  ;;  %v3451_v6 = vld [vmem:[#allocation27_spill] sm:$0xff] }
 0x3c9   :  { %1444 = vmatpush.msra.mxu0 %v2707_v9  ;;  %1464 = vmatpush.msra.mxu1 %v2710_v11  ;;  %v3452_v9 = vld [vmem:[#allocation28_spill] sm:$0xff]  ;;  %v3453_v11 = vld [vmem:[#allocation29_spill] sm:$0xff] }
 0x3ca   :  { %1484 = vmatpush.msra.mxu2 %v2713_v17  ;;  %v3454_v17 = vld [vmem:[#allocation30_spill] sm:$0xff] }
 0x3cb   :  { %1445 = vmatpush.msra.mxu0 %v2719_v26  ;;  %1465 = vmatpush.msra.mxu1 %v2722_v16  ;;  %v3455_v26 = vld [vmem:[#allocation32_spill] sm:$0xff]  ;;  %v3456_v16 = vld [vmem:[#allocation33_spill] sm:$0xff] }
 0x3cc   :  { %1485 = vmatpush.msra.mxu2 %v2725_v32  ;;  %v3457_v32 = vld [vmem:[#allocation34_spill] sm:$0xff] }
 0x3cd   :  { %1446 = vmatpush.msra.mxu0 %v2731_v23  ;;  %1466 = vmatpush.msra.mxu1 %v2734_v31 }
 0x3ce   :  { %1486 = vmatpush.msra.mxu2 %v2737_v24  ;;  %v3458_v24 = vld [vmem:[#allocation52_spill] sm:$0xff] }
 0x3cf   :  { %1447 = vmatpush.msra.mxu0 %v2743_v19  ;;  %1467 = vmatpush.msra.mxu1 %v2746_v29  ;;  %v3459_v29 = vld [vmem:[#allocation53_spill] sm:$0xff] }
 0x3d0   :  { %1487 = vmatpush.msra.mxu2 %v2749_v30 }
 0x3d1   :  { %1448 = vmatpush.msra.mxu0 %v2755_v58  ;;  %1468 = vmatpush.msra.mxu1 %v2758_v21 }
 0x3d2   :  { %1488 = vmatpush.msra.mxu2 %v2761_v14 }
 0x3d3   :  { %1449 = vmatpush.msra.mxu0 %v2767_v27  ;;  %1469 = vmatpush.msra.mxu1 %v2770_v20  ;;  %v3460_v27 = vld [vmem:[#allocation55_spill] sm:$0xff] }
 0x3d4   :  { %1489 = vmatpush.msra.mxu2 %v2773_v18 }
 0x3d5   :  { %1450 = vmatpush.msra.mxu0 %v2779_v10  ;;  %1470 = vmatpush.msra.mxu1 %v2782_v33 }
 0x3d6   :  { %1490 = vmatpush.msra.mxu2 %v2785_v34 }
 0x3d7   :  { %1451 = vmatpush.msra.mxu0 %v3414_v15  ;;  %1471 = vmatpush.msra.mxu1 %v3415_v8 }
 0x3d8   :  { %1491 = vmatpush.msra.mxu2 %v3416_v25 }
 0x3d9   :  { %1452 = vmatpush.msra.mxu0 %v3418_v13  ;;  %1472 = vmatpush.msra.mxu1 %v3419_v45  ;;  %v3461_v13 = vld [vmem:[#allocation54_spill] sm:$0xff] }
 0x3da   :  { %1492 = vmatpush.msra.mxu2 %v3420_v7 }
 0x3db   :  { %1453 = vmatpush.msra.mxu0 %v3422_v53  ;;  %1473 = vmatpush.msra.mxu1 %v3423_v52 }
 0x3dc   :  { %1493 = vmatpush.msra.mxu2 %v3424_v35 }
 0x3dd   :  { %1454 = vmatpush.msra.mxu0 %v3446_v22  ;;  %1474 = vmatpush.msra.mxu1 %v3447_v2 }
 0x3de   :  { %1494 = vmatpush.msra.mxu2 %v3448_v3 }
 0x3df   :  { %1455 = vmatpush.msra.mxu0 %v3449_v4  ;;  %1475 = vmatpush.msra.mxu1 %v3450_v5  ;;  %v1283_v5 = vmul.f32 %v1282_v38, %v3048_v37 }
 0x3e0   :  { %1495 = vmatpush.msra.mxu2 %v3451_v6 }
 0x3e1   :  { %1456 = vmatpush.msra.mxu0 %v3452_v9  ;;  %1476 = vmatpush.msra.mxu1 %v3453_v11 }
 0x3e2   :  { %1496 = vmatpush.msra.mxu2 %v3454_v17 }
 0x3e3   :  { %1457 = vmatpush.msra.mxu0 %v3455_v26  ;;  %1477 = vmatpush.msra.mxu1 %v3456_v16 }
 0x3e4   :  { %1497 = vmatpush.msra.mxu2 %v3457_v32 }
 0x440   :  { %v1151_v23 = vpop.f32.mrf.mxu0  ;;  %v1171_v31 = vpop.f32.mrf.mxu1 }
 0x441   :  { %v1214_v19 = vadd.f32 %v1151_v23, %v3458_v24  ;;  %v1215_v30 = vadd.f32 %v1171_v31, %v3459_v29  ;;  %v1286_v31 = vmul.f32 %v1282_v38, %v3051_v0 }
 0x443   :  { %v1834_v58 = vmul.f32 -1.442695, %v1214_v19  ;;  %v1835_v21 = vmul.f32 -1.442695, %v1215_v30  ;;  %v3462_v30 = vld [vmem:[#allocation56_spill] sm:$0xff] }
 0x445   :  { %1931 = vpow2.f32 %v1834_v58 }
 0x446   :  { %1933 = vpow2.f32 %v1835_v21  ;;  %v3463_v21 = vld [vmem:[#allocation57_spill] sm:$0xff] }
 0x447   :  { %v1211_v14 = vpop.f32.mrf.mxu3  ;;  %v1191_v47 = vpop.f32.mrf.mxu2 }
 0x448   :  { %v1217_v20 = vadd.f32 %v1211_v14, %v3460_v27  ;;  %v1216_v45 = vadd.f32 %v1191_v47, %v3461_v13 }
 0x44a   :  { %v1836_v18 = vmul.f32 -1.442695, %v1217_v20 }
 0x44b   :  { %v1932_v10 = vpop.eup %1931 }
 0x44c   :  { %v1934_v33 = vpop.eup %1933  ;;  %v1221_v34 = vadd.f32 1.0, %v1932_v10  ;;  %1935 = vpow2.f32 %v1836_v18  ;;  %v3464_v10 = vld [vmem:[#allocation59_spill] sm:$0xff] }
 0x44d   :  { %v1240_v41 = vadd.f32 1.0, %v1934_v33 }
 0x44e   :  { %1937 = vrcp.f32 %v1221_v34  ;;  %v1233_v36 = vand.u32 2147483648, %v1221_v34  ;;  %v1231_v42 = vand.u32 2147483647, %v1221_v34  ;;  %vm1227_vm15 = vweird.f32 %v1221_v34 }
 0x44f   :  { %1939 = vrcp.f32 %v1240_v41  ;;  %v1252_v55 = vand.u32 2147483648, %v1240_v41  ;;  %v1250_v46 = vand.u32 2147483647, %v1240_v41  ;;  %vm1246_vm0 = vweird.f32 %v1240_v41 }
 0x450   :  { %v1234_v48 = vor.u32 1.1754944e-38, %v1233_v36  ;;  %vm1232_vm3 = vcmp.eq.f32.partialorder %v1231_v42, 8.507059e+37 }
 0x451   :  { %v1253_v56 = vor.u32 1.1754944e-38, %v1252_v55  ;;  %vm1251_vm4 = vcmp.eq.f32.partialorder %v1250_v46, 8.507059e+37 }
 0x452   :  { %v1936_v15 = vpop.eup %1935 }
 0x453   :  { %v1260_v8 = vadd.f32 1.0, %v1936_v15 }
 0x454   :  { %v1938_v25 = vpop.eup %1937 }
 0x455   :  { %v1940_v7 = vpop.eup %1939  ;;  %v1223_v53 = vmul.f32 %v1938_v25, %v1221_v34  ;;  %1941 = vrcp.f32 %v1260_v8  ;;  %vm1228_vm13 = vweird.f32 %v1938_v25  ;;  %v1272_v4 = vand.u32 2147483648, %v1260_v8 }
 0x456   :  { %v1242_v52 = vmul.f32 %v1940_v7, %v1240_v41  ;;  %1943 = vtanh.f32 %v1216_v45  ;;  %vm1247_vm14 = vweird.f32 %v1940_v7  ;;  %vm1229_vm1 = vmor %vm1227_vm15, %vm1228_vm13  ;;  %vm1266_vm6 = vweird.f32 %v1260_v8 }
 0x457   :  { %v1224_v35 = vsub.f32 1.0, %v1223_v53  ;;  %vm1248_vm2 = vmor %vm1246_vm0, %vm1247_vm14  ;;  %v1270_v6 = vand.u32 2147483647, %v1260_v8  ;;  %v1273_v17 = vor.u32 1.1754944e-38, %v1272_v4  ;;  %v3465_v53 = vld [vmem:[#allocation58_spill] sm:$0xff] }
 0x458   :  { %v1243_v1 = vsub.f32 1.0, %v1242_v52 }
 0x459   :  { %v1225_v51 = vmul.f32 %v1938_v25, %v1224_v35  ;;  %vm1271_vm8 = vcmp.eq.f32.partialorder %v1270_v6, 8.507059e+37 }
 0x45a   :  { %v1244_v62 = vmul.f32 %v1940_v7, %v1243_v1 }
 0x45b   :  { %v1942_v12 = vpop.eup %1941  ;;  %v1226_v28 = vadd.f32 %v1938_v25, %v1225_v51 }
 0x45c   :  { %v1245_v54 = vadd.f32 %v1940_v7, %v1244_v62  ;;  %v1262_v61 = vmul.f32 %v1942_v12, %v1260_v8  ;;  %v1944_v57 = vpop.eup %1943  ;;  %vm1267_vm5 = vweird.f32 %v1942_v12 }
 0x45d   :  { %v1230_v50 = vsel %vm1229_vm1, %v1938_v25, %v1226_v28  ;;  %vm1268_vm7 = vmor %vm1266_vm6, %vm1267_vm5 }
 0x45e   :  { %v1235_v39 = vsel %vm1232_vm3, %v1234_v48, %v1230_v50  ;;  %v1249_v43 = vsel %vm1248_vm2, %v1940_v7, %v1245_v54  ;;  %v1263_v40 = vsub.f32 1.0, %v1262_v61 }
 0x45f   :  { %v1254_v63 = vsel %vm1251_vm4, %v1253_v56, %v1249_v43  ;;  %v1277_v59 = vmul.f32 %v1944_v57, %v1235_v39  ;;  %v299_v43 = vld [vmem:[%s3167_s1 + $0x30] sm:$0xff] }
 0x460   :  { %v1276_v49 = vmul.f32 %v1254_v63, %v3048_v37  ;;  %v1264_v60 = vmul.f32 %v1942_v12, %v1263_v40  ;;  %v3126_v37 = vld [vmem:[%s3168_s2] sm:$0xff] }
 0x461   :  { %v1552_v19 = vmul.f32 %v3126_v37, %v3126_v37 }
 0x462   :  { %v1278_v22 = vadd.f32 %v1277_v59, %v1276_v49  ;;  %v1265_v2 = vadd.f32 %v1942_v12, %v1264_v60 }
 0x463   :  { %1553 = vadd.xlane.f32.xlu0 %v1552_v19 }
 0x464   :  { %1945 = vtanh.f32 %v1278_v22  ;;  %v1281_v3 = vmul.f32 %v1278_v22, %v298_v44  ;;  %v1269_v11 = vsel %vm1268_vm7, %v1942_v12, %v1265_v2 }
 0x465   :  { %v1274_v16 = vsel %vm1271_vm8, %v1273_v17, %v1269_v11 }
 0x466   :  { %v3114_v9 = vadd.f32 %v1283_v5, %v1281_v3  ;;  %v1436_v3 = vsub.f32 1.0, %v299_v43 }
 0x468   :  { %v1437_v17 = vmul.f32 %v1436_v3, %v3114_v9 }
 0x46a   :  { %v1946_v26 = vpop.eup %1945 }
 0x46b   :  { %v1280_v32 = vmul.f32 %v1946_v26, %v1274_v16 }
 0x46d   :  { %v1285_v23 = vmul.f32 %v1280_v32, %v298_v44 }
 0x46f   :  { %v3117_v24 = vadd.f32 %v1286_v31, %v1285_v23 }
 0x471   :  { %1304 = vmatmul.f32.vlgmr.msrb.gmra.mxu0 %v3117_v24  ;;  %1324 = vmatmul.f32.vlgmr.msrb.gmra.mxu1 %v3117_v24 }
 0x472   :  { %1344 = vmatmul.f32.vlgmr.msrb.gmra.mxu2 %v3117_v24  ;;  %1364 = vmatmul.f32.vlgmr.msrb.gmra.mxu3 %v3117_v24 }
 0x4ee   :  { %v1305_v29 = vpop.f32.mrf.mxu0  ;;  %v1325_v0 = vpop.f32.mrf.mxu1 }
 0x4ef   :  { %v1368_v58 = vadd.f32 %v1305_v29, %v3462_v30  ;;  %v1369_v14 = vadd.f32 %v1325_v0, %v3463_v21  ;;  %v1440_v30 = vmul.f32 %v1436_v3, %v3117_v24  ;;  %v1677_v21 = vld [vmem:[#allocation4 + $0x438] sm:$0xff]  ;;  %v1670_v24 = vld [vmem:[#allocation4 + $0x240] sm:$0xff] }
 0x4f0   :  { %1678 = vmatpush.msrb.mxu1 %v1677_v21  ;;  %v1605_v3 = vld [vmem:[#allocation4 + $0x320] sm:$0xff] }
 0x4f1   :  { %v1837_v27 = vmul.f32 -1.442695, %v1368_v58  ;;  %v1838_v20 = vmul.f32 -1.442695, %v1369_v14  ;;  %v1675_v14 = vld [vmem:[#allocation4 + $0x3a8] sm:$0xff] }
 0x4f3   :  { %1947 = vpow2.f32 %v1837_v27  ;;  %v1674_v27 = vld [vmem:[#allocation4 + $0x360] sm:$0xff] }
 0x4f4   :  { %1949 = vpow2.f32 %v1838_v20  ;;  %v1673_v20 = vld [vmem:[#allocation4 + $0x318] sm:$0xff] }
 0x4f5   :  { %v1365_v18 = vpop.f32.mrf.mxu3  ;;  %v1345_v25 = vpop.f32.mrf.mxu2 }
 0x4f6   :  { %v1371_v33 = vadd.f32 %v1365_v18, %v3464_v10  ;;  %v1370_v52 = vadd.f32 %v1345_v25, %v3465_v53  ;;  %v1554_v18 = vpop.xlane.xlu0 %1553  ;;  %v1672_v10 = vld [vmem:[#allocation4 + $0x2d0] sm:$0xff] }
 0x4f7   :  { %vm1562_vm5 = vcmp.eq.f32.partialorder %v1554_v18, inf  ;;  %vm1564_vm6 = vcmp.eq.f32.partialorder %v1554_v18, 0.0 }
 0x4f8   :  { %v1839_v34 = vmul.f32 -1.442695, %v1371_v33  ;;  %v1671_v33 = vld [vmem:[#allocation4 + $0x288] sm:$0xff] }
 0x4f9   :  { %v1948_v41 = vpop.eup %1947 }
 0x4fa   :  { %v1950_v47 = vpop.eup %1949  ;;  %v1375_v15 = vadd.f32 1.0, %v1948_v41  ;;  %1951 = vpow2.f32 %v1839_v34 }
 0x4fb   :  { %v1394_v8 = vadd.f32 1.0, %v1950_v47 }
 0x4fc   :  { %1953 = vrcp.f32 %v1375_v15  ;;  %v1387_v42 = vand.u32 2147483648, %v1375_v15  ;;  %v1385_v12 = vand.u32 2147483647, %v1375_v15  ;;  %vm1381_vm11 = vweird.f32 %v1375_v15 }
 0x4fd   :  { %1955 = vrcp.f32 %v1394_v8  ;;  %v1406_v62 = vand.u32 2147483648, %v1394_v8  ;;  %v1404_v48 = vand.u32 2147483647, %v1394_v8  ;;  %vm1400_vm12 = vweird.f32 %v1394_v8 }
 0x4fe   :  { %v1388_v56 = vor.u32 1.1754944e-38, %v1387_v42  ;;  %vm1386_vm15 = vcmp.eq.f32.partialorder %v1385_v12, 8.507059e+37  ;;  %v1666_v42 = vld [vmem:[#allocation4 + $0x120] sm:$0xff]  ;;  %v1614_v12 = vld [vmem:[#allocation4 + $0x448] sm:$0xff] }
 0x4ff   :  { %v1407_v57 = vor.u32 1.1754944e-38, %v1406_v62  ;;  %vm1405_vm0 = vcmp.eq.f32.partialorder %v1404_v48, 8.507059e+37  ;;  %1641 = vmatpush.msrb.mxu0 %v1614_v12 }
 0x500   :  { %v1952_v13 = vpop.eup %1951 }
 0x501   :  { %v1414_v45 = vadd.f32 1.0, %v1952_v13  ;;  %v1565_v13 = vand.u32 2147483648, %v1554_v18 }
 0x502   :  { %v1954_v7 = vpop.eup %1953 }
 0x503   :  { %v1956_v35 = vpop.eup %1955  ;;  %v1377_v1 = vmul.f32 %v1954_v7, %v1375_v15  ;;  %1957 = vrcp.f32 %v1414_v45  ;;  %vm1382_vm9 = vweird.f32 %v1954_v7  ;;  %v1426_v6 = vand.u32 2147483648, %v1414_v45 }
 0x504   :  { %v1396_v36 = vmul.f32 %v1956_v35, %v1394_v8  ;;  %1959 = vtanh.f32 %v1370_v52  ;;  %vm1401_vm10 = vweird.f32 %v1956_v35  ;;  %vm1383_vm13 = vmor %vm1381_vm11, %vm1382_vm9  ;;  %vm1420_vm2 = vweird.f32 %v1414_v45 }
 0x505   :  { %v1378_v55 = vsub.f32 1.0, %v1377_v1  ;;  %vm1402_vm14 = vmor %vm1400_vm12, %vm1401_vm10  ;;  %v1424_v26 = vand.u32 2147483647, %v1414_v45  ;;  %v1427_v23 = vor.u32 1.1754944e-38, %v1426_v6  ;;  %v1668_v1 = vld [vmem:[#allocation4 + $0x1b0] sm:$0xff]  ;;  %v1604_v6 = vld [vmem:[#allocation4 + $0x2e0] sm:$0xff] }
 0x506   :  { %v1397_v51 = vsub.f32 1.0, %v1396_v36 }
 0x507   :  { %v1379_v46 = vmul.f32 %v1954_v7, %v1378_v55  ;;  %vm1425_vm4 = vcmp.eq.f32.partialorder %v1424_v26, 8.507059e+37  ;;  %v1667_v55 = vld [vmem:[#allocation4 + $0x168] sm:$0xff] }
 0x508   :  { %v1398_v28 = vmul.f32 %v1956_v35, %v1397_v51  ;;  %v1599_v26 = vld [vmem:[#allocation4 + $0x248] sm:$0xff] }
 0x509   :  { %v1958_v54 = vpop.eup %1957  ;;  %v1380_v61 = vadd.f32 %v1954_v7, %v1379_v46  ;;  %v1613_v46 = vld [vmem:[#allocation4 + $0x440] sm:$0xff] }
 0x50a   :  { %v1399_v44 = vadd.f32 %v1956_v35, %v1398_v28  ;;  %v1416_v50 = vmul.f32 %v1958_v54, %v1414_v45  ;;  %v1960_v40 = vpop.eup %1959  ;;  %vm1421_vm1 = vweird.f32 %v1958_v54  ;;  %v1665_v28 = vld [vmem:[#allocation4 + $0xd8] sm:$0xff]  ;;  %1621 = vmatpush.msra.mxu3 %v1613_v46 }
 0x50b   :  { %v1384_v39 = vsel %vm1383_vm13, %v1954_v7, %v1380_v61  ;;  %vm1422_vm3 = vmor %vm1420_vm2, %vm1421_vm1  ;;  %v1611_v61 = vld [vmem:[#allocation4 + $0x3f8] sm:$0xff] }
 0x50c   :  { %v1389_v63 = vsel %vm1386_vm15, %v1388_v56, %v1384_v39  ;;  %v1403_v59 = vsel %vm1402_vm14, %v1956_v35, %v1399_v44  ;;  %v1417_v49 = vsub.f32 1.0, %v1416_v50  ;;  %v1669_v35 = vld [vmem:[#allocation4 + $0x1f8] sm:$0xff]  ;;  %v1612_v56 = vld [vmem:[#allocation4 + $0x400] sm:$0xff]  ;;  %v1664_v44 = vld [vmem:[#allocation4 + $0x90] sm:$0xff]  ;;  %1622 = vmatpush.msra.mxu3 %v1611_v61 }
 0x50d   :  { %v1408_v60 = vsel %vm1405_vm0, %v1407_v57, %v1403_v59  ;;  %v1431_v38 = vmul.f32 %v1960_v40, %v1389_v63  ;;  %1642 = vmatpush.msrb.mxu0 %v1612_v56  ;;  %v1610_v40 = vld [vmem:[#allocation4 + $0x3b8] sm:$0xff]  ;;  %v1663_v63 = vld [vmem:[#allocation4 + $0x48] sm:$0xff] }
 0x50e   :  { %v1430_v22 = vmul.f32 %v1408_v60, %v3114_v9  ;;  %v1418_v2 = vmul.f32 %v1958_v54, %v1417_v49  ;;  %v1676_v9 = vld [vmem:[#allocation4 + $0x3f0] sm:$0xff]  ;;  %v1607_v60 = vld [vmem:[#allocation4 + $0x368] sm:$0xff] }
 0x50f   :  { %1679 = vmatpush.msrb.mxu1 %v1676_v9  ;;  %1643 = vmatpush.msrb.mxu0 %v1610_v40 }
 0x510   :  { %v1432_v4 = vadd.f32 %v1431_v38, %v1430_v22  ;;  %v1419_v5 = vadd.f32 %v1958_v54, %v1418_v2  ;;  %v1608_v38 = vld [vmem:[#allocation4 + $0x370] sm:$0xff]  ;;  %v1662_v22 = vld [vmem:[#allocation4] sm:$0xff] }
 0x511   :  { %1680 = vmatpush.msrb.mxu1 %v1675_v14  ;;  %1644 = vmatpush.msrb.mxu0 %v1608_v38  ;;  %v1589_v14 = vld [vmem:[#allocation4 + $0xe0] sm:$0xff] }
 0x512   :  { %1961 = vtanh.f32 %v1432_v4  ;;  %v1435_v11 = vmul.f32 %v1432_v4, %v299_v43  ;;  %v1423_v32 = vsel %vm1422_vm3, %v1958_v54, %v1419_v5  ;;  %v1606_v4 = vld [vmem:[#allocation4 + $0x328] sm:$0xff]  ;;  %v1603_v5 = vld [vmem:[#allocation4 + $0x2d8] sm:$0xff] }
 0x513   :  { %v1428_v19 = vsel %vm1425_vm4, %v1427_v23, %v1423_v32  ;;  %1681 = vmatpush.msrb.mxu1 %v1674_v27  ;;  %1963 = vrsqrt.f32 %v1554_v18  ;;  %1645 = vmatpush.msrb.mxu0 %v1606_v4  ;;  %v1600_v32 = vld [vmem:[#allocation4 + $0x250] sm:$0xff]  ;;  %v1598_v23 = vld [vmem:[#allocation4 + $0x208] sm:$0xff] }
 0x514   :  { %v3139_v16 = vadd.f32 %v1437_v17, %v1435_v11  ;;  %v1601_v11 = vld [vmem:[#allocation4 + $0x290] sm:$0xff]  ;;  %v1602_v17 = vld [vmem:[#allocation4 + $0x298] sm:$0xff]  ;;  %v1590_v27 = vld [vmem:[#allocation4 + $0xe8] sm:$0xff] }
 0x515   :  { %1682 = vmatpush.msrb.mxu1 %v1673_v20  ;;  %1646 = vmatpush.msrb.mxu0 %v1604_v6  ;;  %v3466_v20 = vld [vmem:[#allocation60_spill] sm:$0xff] }
 0x517   :  { %1683 = vmatpush.msrb.mxu1 %v1672_v10  ;;  %1647 = vmatpush.msrb.mxu0 %v1602_v17  ;;  %v3467_v10 = vld [vmem:[#allocation61_spill] sm:$0xff] }
 0x518   :  { %v1962_v31 = vpop.eup %1961 }
 0x519   :  { %v1434_v29 = vmul.f32 %v1962_v31, %v1428_v19  ;;  %1684 = vmatpush.msrb.mxu1 %v1671_v33  ;;  %v1964_v34 = vpop.eup %1963  ;;  %1648 = vmatpush.msrb.mxu0 %v1600_v32  ;;  %v1595_v31 = vld [vmem:[#allocation4 + $0x1b8] sm:$0xff]  ;;  %v1596_v19 = vld [vmem:[#allocation4 + $0x1c0] sm:$0xff] }
 0x51a   :  { %v1556_v41 = vmul.f32 %v1964_v34, %v1554_v18  ;;  %v1752_v32 = vld [vmem:[#allocation4 + $0x3c0] sm:$0xff] }
 0x51b   :  { %v1439_v0 = vmul.f32 %v1434_v29, %v299_v43  ;;  %1685 = vmatpush.msrb.mxu1 %v1670_v24  ;;  %v1609_v43 = vld [vmem:[#allocation4 + $0x3b0] sm:$0xff]  ;;  %1649 = vmatpush.msrb.mxu0 %v1598_v23  ;;  %v1587_v24 = vld [vmem:[#allocation4 + $0x98] sm:$0xff] }
 0x51c   :  { %v1557_v47 = vmul.f32 %v1964_v34, %v1556_v41  ;;  %1623 = vmatpush.msra.mxu3 %v1609_v43  ;;  %v1593_v29 = vld [vmem:[#allocation4 + $0x170] sm:$0xff] }
 0x51d   :  { %v1441_v58 = vadd.f32 %v1440_v30, %v1439_v0  ;;  %1686 = vmatpush.msrb.mxu1 %v1669_v35  ;;  %1650 = vmatpush.msrb.mxu0 %v1596_v19  ;;  %v1594_v0 = vld [vmem:[#allocation4 + $0x178] sm:$0xff]  ;;  %v1591_v30 = vld [vmem:[#allocation4 + $0x128] sm:$0xff]  ;;  %v1585_v41 = vld [vmem:[#allocation4 + $0x50] sm:$0xff] }
 0x51e   :  { %v1558_v15 = vmul.f32 0.5, %v1557_v47  ;;  %1624 = vmatpush.msra.mxu3 %v1607_v60  ;;  %v1713_v23 = vld [vmem:[#allocation4 + $0x410] sm:$0xff]  ;;  %v1712_v19 = vld [vmem:[#allocation4 + $0x3c8] sm:$0xff] }
 0x51f   :  { %1458 = vmatmul.f32.vlgmr.msra.gmra.mxu0 %v1441_v58  ;;  %1478 = vmatmul.f32.vlgmr.msra.gmra.mxu1 %v1441_v58 }
 0x520   :  { %1498 = vmatmul.f32.vlgmr.msra.gmra.mxu2 %v1441_v58  ;;  %v1559_v8 = vsub.f32 1.5, %v1558_v15  ;;  %1687 = vmatpush.msrb.mxu1 %v1668_v1  ;;  %v1592_v58 = vld [vmem:[#allocation4 + $0x130] sm:$0xff] }
 0x521   :  { %1625 = vmatpush.msra.mxu3 %v1605_v3  ;;  %1651 = vmatpush.msrb.mxu0 %v1594_v0  ;;  %v1711_v0 = vld [vmem:[#allocation4 + $0x380] sm:$0xff] }
 0x522   :  { %v1560_v25 = vmul.f32 %v1964_v34, %v1559_v8  ;;  %1688 = vmatpush.msrb.mxu1 %v1667_v55  ;;  %v1588_v34 = vld [vmem:[#allocation4 + $0xa0] sm:$0xff]  ;;  %v1586_v8 = vld [vmem:[#allocation4 + $0x58] sm:$0xff]  ;;  %v3468_v55 = vld [vmem:[#allocation62_spill] sm:$0xff] }
 0x523   :  { %1626 = vmatpush.msra.mxu3 %v1603_v5  ;;  %1652 = vmatpush.msrb.mxu0 %v1592_v58  ;;  %v1748_v58 = vld [vmem:[#allocation4 + $0x2a0] sm:$0xff] }
 0x524   :  { %v1561_v45 = vmul.f32 %v1560_v25, %v1554_v18  ;;  %1689 = vmatpush.msrb.mxu1 %v1666_v42  ;;  %v1583_v25 = vld [vmem:[#allocation4 + $0x8] sm:$0xff] }
 0x525   :  { %1627 = vmatpush.msra.mxu3 %v1601_v11  ;;  %1653 = vmatpush.msrb.mxu0 %v1590_v27  ;;  %v1746_v27 = vld [vmem:[#allocation4 + $0x210] sm:$0xff] }
 0x526   :  { %v1563_v7 = vsel %vm1562_vm5, %v1554_v18, %v1561_v45  ;;  %1690 = vmatpush.msrb.mxu1 %v1665_v28  ;;  %v1754_v45 = vld [vmem:[#allocation4 + $0x450] sm:$0xff] }
 0x527   :  { %v1566_v53 = vsel %vm1564_vm6, %v1565_v13, %v1563_v7  ;;  %1628 = vmatpush.msra.mxu3 %v1599_v26  ;;  %1654 = vmatpush.msrb.mxu0 %v1588_v34  ;;  %v1584_v13 = vld [vmem:[#allocation4 + $0x10] sm:$0xff]  ;;  %v1753_v26 = vld [vmem:[#allocation4 + $0x408] sm:$0xff] }
 0x528   :  { %v1567_v52 = vadd.f32 1e-08, %v1566_v53  ;;  %1691 = vmatpush.msrb.mxu1 %v1664_v44  ;;  %v1742_v34 = vld [vmem:[#allocation4 + $0xf0] sm:$0xff] }
 0x529   :  { %1655 = vmatpush.msrb.mxu0 %v1586_v8  ;;  %v1740_v8 = vld [vmem:[#allocation4 + $0x60] sm:$0xff] }
 0x52a   :  { %1965 = vrcp.f32 %v1567_v52  ;;  %v1579_v54 = vand.u32 2147483648, %v1567_v52  ;;  %vm1573_vm7 = vweird.f32 %v1567_v52  ;;  %v1577_v57 = vand.u32 2147483647, %v1567_v52  ;;  %1692 = vmatpush.msrb.mxu1 %v1663_v63 }
 0x52b   :  { %1656 = vmatpush.msrb.mxu0 %v1584_v13  ;;  %v1739_v13 = vld [vmem:[#allocation4 + $0x18] sm:$0xff] }
 0x52c   :  { %v1580_v39 = vor.u32 1.1754944e-38, %v1579_v54  ;;  %vm1578_vm10 = vcmp.eq.f32.partialorder %v1577_v57, 8.507059e+37  ;;  %1693 = vmatpush.msrb.mxu1 %v1662_v22 }
 0x530   :  { %v1966_v36 = vpop.eup %1965 }
 0x531   :  { %v1569_v51 = vmul.f32 %v1966_v36, %v1567_v52  ;;  %vm1574_vm8 = vweird.f32 %v1966_v36 }
 0x532   :  { %vm1575_vm9 = vmor %vm1573_vm7, %vm1574_vm8 }
 0x533   :  { %v1570_v62 = vsub.f32 1.0, %v1569_v51 }
 0x535   :  { %v1571_v48 = vmul.f32 %v1966_v36, %v1570_v62 }
 0x537   :  { %v1572_v50 = vadd.f32 %v1966_v36, %v1571_v48 }
 0x539   :  { %v1576_v59 = vsel %vm1575_vm9, %v1966_v36, %v1572_v50 }
 0x53a   :  { %v1581_v49 = vsel %vm1578_vm10, %v1580_v39, %v1576_v59  ;;  %v300_v59 = vld [vmem:[%s3167_s1 + $0x38] sm:$0xff] }
 0x53b   :  { %v1582_v2 = vmul.f32 %v1581_v49, %v3126_v37  ;;  %v1597_v37 = vld [vmem:[#allocation4 + $0x200] sm:$0xff]  ;;  %v1548_v4 = vsub.f32 1.0, %v300_v59 }
 0x53c   :  { %1629 = vmatpush.msra.mxu3 %v1597_v37  ;;  %v1714_v37 = vld [vmem:[#allocation4 + $0x458] sm:$0xff] }
 0x53d   :  { %1694 = vmatmul.f32.vlgmr.msrb.gmra.mxu1 %v1582_v2  ;;  %v1549_v11 = vmul.f32 %v1548_v4, %v3139_v16  ;;  %1719 = vmatpush.msrb.mxu2 %v1714_v37 }
 0x53e   :  { %1630 = vmatpush.msra.mxu3 %v1595_v31  ;;  %v1751_v31 = vld [vmem:[#allocation4 + $0x378] sm:$0xff] }
 0x53f   :  { %1720 = vmatpush.msrb.mxu2 %v1713_v23 }
 0x540   :  { %1631 = vmatpush.msra.mxu3 %v1593_v29  ;;  %v1750_v29 = vld [vmem:[#allocation4 + $0x330] sm:$0xff] }
 0x541   :  { %1721 = vmatpush.msrb.mxu2 %v1712_v19 }
 0x542   :  { %1632 = vmatpush.msra.mxu3 %v1591_v30  ;;  %v1749_v30 = vld [vmem:[#allocation4 + $0x2e8] sm:$0xff] }
 0x543   :  { %1722 = vmatpush.msrb.mxu2 %v1711_v0 }
 0x544   :  { %1633 = vmatpush.msra.mxu3 %v1589_v14  ;;  %v1708_v14 = vld [vmem:[#allocation4 + $0x2a8] sm:$0xff] }
 0x546   :  { %1634 = vmatpush.msra.mxu3 %v1587_v24  ;;  %v1743_v24 = vld [vmem:[#allocation4 + $0x138] sm:$0xff] }
 0x548   :  { %1635 = vmatpush.msra.mxu3 %v1585_v41  ;;  %v1705_v41 = vld [vmem:[#allocation4 + $0x1d0] sm:$0xff] }
 0x54a   :  { %1636 = vmatpush.msra.mxu3 %v1583_v25  ;;  %v1703_v25 = vld [vmem:[#allocation4 + $0x140] sm:$0xff] }
 0x54c   :  { %1759 = vmatpush.msrb.mxu3 %v1754_v45  ;;  %v1702_v45 = vld [vmem:[#allocation4 + $0xf8] sm:$0xff] }
 0x54e   :  { %1760 = vmatpush.msrb.mxu3 %v1753_v26 }
 0x550   :  { %1761 = vmatpush.msrb.mxu3 %v1752_v32 }
 0x552   :  { %1762 = vmatpush.msrb.mxu3 %v1751_v31 }
 0x554   :  { %1763 = vmatpush.msrb.mxu3 %v1750_v29 }
 0x556   :  { %1764 = vmatpush.msrb.mxu3 %v1749_v30 }
 0x558   :  { %1765 = vmatpush.msrb.mxu3 %v1748_v58 }
 0x59c   :  { %v1459_v21 = vpop.f32.mrf.mxu0  ;;  %v1479_v9 = vpop.f32.mrf.mxu1 }
 0x59d   :  { %v1502_v18 = vadd.f32 %v1459_v21, %v3466_v20  ;;  %v1503_v33 = vadd.f32 %v1479_v9, %v3467_v10  ;;  %v1709_v21 = vld [vmem:[#allocation4 + $0x2f0] sm:$0xff]  ;;  %v1747_v9 = vld [vmem:[#allocation4 + $0x258] sm:$0xff]  ;;  %v1707_v20 = vld [vmem:[#allocation4 + $0x260] sm:$0xff] }
 0x59e   :  { %1766 = vmatpush.msrb.mxu3 %v1747_v9  ;;  %v1706_v10 = vld [vmem:[#allocation4 + $0x218] sm:$0xff] }
 0x59f   :  { %v1840_v47 = vmul.f32 -1.442695, %v1502_v18  ;;  %v1841_v15 = vmul.f32 -1.442695, %v1503_v33  ;;  %v1745_v18 = vld [vmem:[#allocation4 + $0x1c8] sm:$0xff]  ;;  %v1744_v33 = vld [vmem:[#allocation4 + $0x180] sm:$0xff] }
 0x5a0   :  { %1767 = vmatpush.msrb.mxu3 %v1746_v27 }
 0x5a1   :  { %1967 = vpow2.f32 %v1840_v47  ;;  %v1741_v47 = vld [vmem:[#allocation4 + $0xa8] sm:$0xff] }
 0x5a2   :  { %1969 = vpow2.f32 %v1841_v15  ;;  %1768 = vmatpush.msrb.mxu3 %v1745_v18  ;;  %v1704_v15 = vld [vmem:[#allocation4 + $0x188] sm:$0xff] }
 0x5a3   :  { %v1499_v1 = vpop.f32.mrf.mxu2 }
 0x5a4   :  { %v1504_v51 = vadd.f32 %v1499_v1, %v3468_v55  ;;  %1769 = vmatpush.msrb.mxu3 %v1744_v33 }
 0x5a6   :  { %1770 = vmatpush.msrb.mxu3 %v1743_v24 }
 0x5a7   :  { %v1968_v7 = vpop.eup %1967 }
 0x5a8   :  { %v1970_v53 = vpop.eup %1969  ;;  %v1508_v52 = vadd.f32 1.0, %v1968_v7  ;;  %1771 = vmatpush.msrb.mxu3 %v1742_v34  ;;  %v1701_v7 = vld [vmem:[#allocation4 + $0xb0] sm:$0xff] }
 0x5a9   :  { %v1527_v35 = vadd.f32 1.0, %v1970_v53  ;;  %v1700_v53 = vld [vmem:[#allocation4 + $0x68] sm:$0xff] }
 0x5aa   :  { %1971 = vrcp.f32 %v1508_v52  ;;  %v1520_v48 = vand.u32 2147483648, %v1508_v52  ;;  %v1518_v56 = vand.u32 2147483647, %v1508_v52  ;;  %vm1514_vm13 = vweird.f32 %v1508_v52  ;;  %1772 = vmatpush.msrb.mxu3 %v1741_v47 }
 0x5ab   :  { %1973 = vrcp.f32 %v1527_v35  ;;  %v1539_v54 = vand.u32 2147483648, %v1527_v35  ;;  %v1537_v50 = vand.u32 2147483647, %v1527_v35  ;;  %vm1533_vm14 = vweird.f32 %v1527_v35 }
 0x5ac   :  { %1975 = vtanh.f32 %v1504_v51  ;;  %v1521_v39 = vor.u32 1.1754944e-38, %v1520_v48  ;;  %vm1519_vm1 = vcmp.eq.f32.partialorder %v1518_v56, 8.507059e+37  ;;  %1773 = vmatpush.msrb.mxu3 %v1740_v8 }
 0x5ad   :  { %v1540_v40 = vor.u32 1.1754944e-38, %v1539_v54  ;;  %vm1538_vm2 = vcmp.eq.f32.partialorder %v1537_v50, 8.507059e+37  ;;  %v1849_v54 = vld [vmem:[%s3171_s5 + $0x7] ss:$0 sm:$0xff] }
 0x5ae   :  { %1774 = vmatpush.msrb.mxu3 %v1739_v13 }
 0x5b0   :  { %v1972_v36 = vpop.eup %1971 }
 0x5b1   :  { %v1974_v42 = vpop.eup %1973  ;;  %v1510_v62 = vmul.f32 %v1972_v36, %v1508_v52  ;;  %vm1515_vm11 = vweird.f32 %v1972_v36  ;;  %v1699_v52 = vld [vmem:[#allocation4 + $0x20] sm:$0xff] }
 0x5b2   :  { %v1529_v46 = vmul.f32 %v1974_v42, %v1527_v35  ;;  %vm1534_vm12 = vweird.f32 %v1974_v42  ;;  %vm1516_vm15 = vmor %vm1514_vm13, %vm1515_vm11  ;;  %v1976_v49 = vpop.eup %1975  ;;  %v1615_v35 = vld [vmem:[%s3171_s5 + $0x4] sm:$0x3] }
 0x5b3   :  { %v1511_v12 = vsub.f32 1.0, %v1510_v62  ;;  %vm1535_vm0 = vmor %vm1533_vm14, %vm1534_vm12  ;;  %v1618_v1 = vperm.slane %v1615_v35, 1 }
 0x5b4   :  { %v1530_v28 = vsub.f32 1.0, %v1529_v46 }
 0x5b5   :  { %v1512_v61 = vmul.f32 %v1972_v36, %v1511_v12 }
 0x5b6   :  { %v1531_v44 = vmul.f32 %v1974_v42, %v1530_v28 }
 0x5b7   :  { %v1513_v57 = vadd.f32 %v1972_v36, %v1512_v61 }
 0x5b8   :  { %v1532_v43 = vadd.f32 %v1974_v42, %v1531_v44  ;;  %v1850_v44 = vld [vmem:[%s3171_s5 + $0x6] ss:$0 sm:$0xff] }
 0x5b9   :  { %v1517_v63 = vsel %vm1516_vm15, %v1972_v36, %v1513_v57 }
 0x5ba   :  { %v1522_v60 = vsel %vm1519_vm1, %v1521_v39, %v1517_v63  ;;  %v1536_v38 = vsel %vm1535_vm0, %v1974_v42, %v1532_v43  ;;  %v1617_v42 = vperm.slane %v1615_v35, 0  ;;  %v1695_v12 = vpop.f32.mrf.mxu1 }
 0x5bb   :  { %v1541_v22 = vsel %vm1538_vm2, %v1540_v40, %v1536_v38  ;;  %v1545_v2 = vmul.f32 %v1976_v49, %v1522_v60 }
 0x5bc   :  { %v1544_v3 = vmul.f32 %v1541_v22, %v3139_v16  ;;  %v1710_v16 = vld [vmem:[#allocation4 + $0x338] sm:$0xff] }
 0x5bd   :  { %1723 = vmatpush.msrb.mxu2 %v1710_v16 }
 0x5be   :  { %v1546_v5 = vadd.f32 %v1545_v2, %v1544_v3 }
 0x5bf   :  { %1724 = vmatpush.msrb.mxu2 %v1709_v21 }
 0x5c0   :  { %v1547_v6 = vmul.f32 %v1546_v5, %v300_v59 }
 0x5c1   :  { %1725 = vmatpush.msrb.mxu2 %v1708_v14 }
 0x5c2   :  { %v1550_v17 = vadd.f32 %v1549_v11, %v1547_v6 }
 0x5c3   :  { %1726 = vmatpush.msrb.mxu2 %v1707_v20 }
 0x5c4   :  { %1637 = vmatmul.f32.vlgmr.msra.gmra.mxu3 %v1550_v17  ;;  %1657 = vmatmul.f32.vlgmr.msrb.gmra.mxu0 %v1550_v17 }
 0x5c5   :  { %1727 = vmatpush.msrb.mxu2 %v1706_v10 }
 0x5c7   :  { %1728 = vmatpush.msrb.mxu2 %v1705_v41 }
 0x5c9   :  { %1729 = vmatpush.msrb.mxu2 %v1704_v15 }
 0x5cb   :  { %1730 = vmatpush.msrb.mxu2 %v1703_v25 }
 0x5cd   :  { %1731 = vmatpush.msrb.mxu2 %v1702_v45 }
 0x5cf   :  { %1732 = vmatpush.msrb.mxu2 %v1701_v7 }
 0x5d1   :  { %1733 = vmatpush.msrb.mxu2 %v1700_v53 }
 0x5d3   :  { %1734 = vmatpush.msrb.mxu2 %v1699_v52 }
 0x641   :  { %v1658_v36 = vpop.f32.mrf.mxu0 }
 0x642   :  { %v1659_v55 = vadd.f32 %v1658_v36, %v1618_v1 }
 0x644   :  { %v1661_v51 = vmax.f32 %v1659_v55, 0.0 }
 0x646   :  { %1775 = vmatmul.f32.vlgmr.msrb.gmra.mxu3 %v1661_v51 }
 0x647   :  { %v1638_v62 = vpop.f32.mrf.mxu3 }
 0x648   :  { %v1639_v46 = vadd.f32 %v1638_v62, %v1617_v42 }
 0x64a   :  { %v1696_v28 = vadd.f32 %v1695_v12, %v1639_v46 }
 0x64c   :  { %v1698_v48 = vmax.f32 %v1696_v28, 0.0 }
 0x64e   :  { %1735 = vmatmul.f32.vlgmr.msrb.gmra.mxu2 %v1698_v48 }
 0x6c9   :  { %v1776_v61 = vpop.f32.mrf.mxu3 }
 0x6ca   :  { %v1777_v56 = vadd.f32 %v1849_v54, %v1776_v61 }
 0x6cc   :  { %1779 = vst [vmem:[%s3172_s6] sm:$0xff] %v1777_v56 }
 0x6d1   :  { %v1736_v50 = vpop.f32.mrf.mxu2 }
 0x6d2   :  { %v1737_v57 = vadd.f32 %v1850_v44, %v1736_v50 }
 0x6d4   :  { %1780 = vst [vmem:[%s3172_s6 + $0x8] sm:$0xff] %v1737_v57 }
 0x6d5   :  { %1785 = vsyncpa [#allocation3], 1 }
 0x6d6   :  { %1786 = vsyncpa [#allocation5], 1 }

</bundles_post_ra>
